<compile_context>
chip_gen: v7x
topology: tpu7x:2x2x1
jax: 0.10.0
libtpu: 0.0.40
codegen_flags: <defaults>
</compile_context>

<pallas_src>
import functools

import numpy as np
import jax
import jax.numpy as jnp
from jax.experimental import pallas as pl
from jax.experimental.pallas import tpu as pltpu


# ----------------------------------------------------------------------------
# host-side helper: edge-validity masks for the 9 taps of a 3x3 depthwise conv
# acting on the flattened [H*W] spatial axis (padding=1 semantics).
# ----------------------------------------------------------------------------
def _dw_edge_masks(H, W):
    ii = np.repeat(np.arange(H), W)
    jj = np.tile(np.arange(W), H)
    m = np.zeros((9, H * W), np.float32)
    t = 0
    for di in (-1, 0, 1):
        for dj in (-1, 0, 1):
            valid = (ii + di >= 0) & (ii + di < H) & (jj + dj >= 0) & (jj + dj < W)
            m[t] = valid.astype(np.float32)
            t += 1
    return jnp.asarray(m)


# ----------------------------------------------------------------------------
# fused kernel: one grid step == one batch element, everything VMEM-resident
# ----------------------------------------------------------------------------
def _fused_attention_kernel(
    x_ref, r_ref, mask_ref,
    kv_w_ref, kv_b_ref, q_w_ref, q_b_ref,
    dw_w_ref, dw_b_ref,
    proj_w_ref, proj_b_ref, temp_ref,
    o_ref, *, H, W, num_heads):
    HW = H * W
    C = q_w_ref.shape[0]
    ch = C // num_heads
    f32 = jnp.float32
    bf16 = jnp.bfloat16

    masks = mask_ref[...]                        # [9, HW] f32 (shared by all taps)

    # ---- 1x1 conv as lane-dense MXU matmul (bf16 operands, f32 accumulate) ----
    def pointwise(w_ref, b_ref, inp):
        return (jnp.dot(w_ref[...].astype(bf16), inp.astype(bf16),
                        preferred_element_type=f32)
                + b_ref[...])                    # [Cout, HW] + [Cout, 1]

    kv_pw = pointwise(kv_w_ref, kv_b_ref, x_ref[...])   # [2C, HW]
    q_pw = pointwise(q_w_ref, q_b_ref, r_ref[...])      # [C,  HW]

    # ---- ONE fused 3x3 depthwise conv (padding=1) over kv|q = [3C, HW] ----
    # out[p] = sum_t w[:, t] * z[p + s_t] with wrapped lanes masked to 0.
    z = jnp.concatenate([kv_pw, q_pw], axis=0)   # [3C, HW]
    w9 = dw_w_ref[...]                           # [3C, 9]
    acc = jnp.zeros_like(z)
    t = 0
    for di in (-1, 0, 1):
        for dj in (-1, 0, 1):
            s = di * W + dj                      # flat-index offset of the tap
            if s == 0:
                term = z
            else:
                term = pltpu.roll(z, shift=(-s) % HW, axis=1) * masks[t:t + 1, :]
            acc = acc + w9[:, t:t + 1] * term
            t += 1
    z = acc + dw_b_ref[...]                      # [3C, HW] + [3C, 1] bias

    k = z[:C, :]
    v = z[C:2 * C, :]
    q = z[2 * C:, :]

    # ---- per-row L2-normalize (F.normalize(dim=-1)); temperature folded into q ----
    qn = q * jax.lax.rsqrt(jnp.maximum(jnp.sum(q * q, axis=-1, keepdims=True), 1e-24))
    kn = k * jax.lax.rsqrt(jnp.maximum(jnp.sum(k * k, axis=-1, keepdims=True), 1e-24))
    qn = qn * temp_ref[...]                      # [C, 1] per-channel temperature

    # ---- batched per-head channel attention (two MXU batched matmuls) ----
    q3 = qn.reshape(num_heads, ch, HW).astype(bf16)
    k3 = kn.reshape(num_heads, ch, HW).astype(bf16)
    v3 = v.reshape(num_heads, ch, HW).astype(bf16)

    # q @ k^T : contract the HW axis directly (no XLU transpose)
    attn = jax.lax.dot_general(
        q3, k3, dimension_numbers=(((2,), (2,)), ((0,), (0,))),
        preferred_element_type=f32)              # [heads, ch, ch]
    attn = attn - jnp.max(attn, axis=-1, keepdims=True)
    e = jnp.exp(attn)
    p = e * pl.reciprocal(jnp.sum(e, axis=-1, keepdims=True), approx=True)

    out3 = jax.lax.dot_general(
        p.astype(bf16), v3, dimension_numbers=(((2,), (1,)), ((0,), (0,))),
        preferred_element_type=f32)              # [heads, ch, HW]
    att = out3.reshape(C, HW)

    # ---- output projection (1x1 conv) ----
    y = (jnp.dot(proj_w_ref[...].astype(bf16), att.astype(bf16),
                 preferred_element_type=f32)
         + proj_b_ref[...])
    o_ref[...] = y.astype(o_ref.dtype)


# ----------------------------------------------------------------------------
# module wrapper: params + forward
# ----------------------------------------------------------------------------
def init_attention_params(key, dim, num_heads, dtype=jnp.float32):
    ks = jax.random.split(key, 10)

    def w(k, shape, fan_in):
        return jax.random.normal(k, shape, dtype) / jnp.sqrt(float(fan_in))

    return {
        "temperature": jnp.ones((num_heads, 1, 1), dtype),
        # kv: Conv2d(dim, 2*dim, 1)
        "kv_w": w(ks[0], (dim * 2, dim), dim),
        "kv_b": w(ks[1], (dim * 2,), dim),
        # kv_dwconv: Conv2d(2*dim, 2*dim, 3, padding=1, groups=2*dim)
        "kv_dw_w": w(ks[2], (dim * 2, 3, 3), 9),
        "kv_dw_b": w(ks[3], (dim * 2,), 9),
        # q: Conv2d(dim, dim, 1)
        "q_w": w(ks[4], (dim, dim), dim),
        "q_b": w(ks[5], (dim,), dim),
        # q_dwconv: Conv2d(dim, dim, 3, padding=1, groups=dim)
        "q_dw_w": w(ks[6], (dim, 3, 3), 9),
        "q_dw_b": w(ks[7], (dim,), 9),
        # project_out: Conv2d(dim, dim, 1)
        "proj_w": w(ks[8], (dim, dim), dim),
        "proj_b": w(ks[9], (dim,), dim),
    }


def attention_forward(params, x, ref, num_heads):
    B, C, H, W = x.shape
    HW = H * W
    ch = C // num_heads
    x2 = x.reshape(B, C, HW)
    r2 = ref.reshape(B, C, HW)
    masks = _dw_edge_masks(H, W)                                 # [9, HW] f32

    # fuse the two depthwise convs (kv then q) into one [3C, 9] weight table
    dw_w = jnp.concatenate([params["kv_dw_w"].reshape(2 * C, 9),
                            params["q_dw_w"].reshape(C, 9)], axis=0)
    dw_b = jnp.concatenate([params["kv_dw_b"], params["q_dw_b"]]).reshape(3 * C, 1)
    # per-channel temperature column (head h repeated ch times)
    temp_c = jnp.repeat(params["temperature"].reshape(num_heads), ch).reshape(C, 1)

    kernel = functools.partial(_fused_attention_kernel, H=H, W=W,
                               num_heads=num_heads)

    def full(shape):
        return pl.BlockSpec(shape, lambda b, _n=len(shape): (0,) * _n)

    out2 = pl.pallas_call(
        kernel,
        out_shape=jax.ShapeDtypeStruct((B, C, HW), x.dtype),
        grid=(B,),
        in_specs=[
            pl.BlockSpec((None, C, HW), lambda b: (b, 0, 0)),    # x
            pl.BlockSpec((None, C, HW), lambda b: (b, 0, 0)),    # ref
            full((9, HW)),                                       # dwconv edge masks
            full((2 * C, C)), full((2 * C, 1)),                  # kv 1x1 w, b
            full((C, C)), full((C, 1)),                          # q 1x1 w, b
            full((3 * C, 9)), full((3 * C, 1)),                  # fused dw w, b
            full((C, C)), full((C, 1)),                          # proj w, b
            full((C, 1)),                                        # per-channel temperature
        ],
        out_specs=pl.BlockSpec((None, C, HW), lambda b: (b, 0, 0)),
        compiler_params=pltpu.CompilerParams(
            dimension_semantics=("parallel",)),
    )(x2, r2, masks,
      params["kv_w"], params["kv_b"].reshape(2 * C, 1),
      params["q_w"], params["q_b"].reshape(C, 1),
      dw_w, dw_b,
      params["proj_w"], params["proj_b"].reshape(C, 1),
      temp_c)
    return out2.reshape(B, C, H, W)


# ----------------------------------------------------------------------------
# pure-JAX reference (f32) of the PyTorch module, for a sanity check
# ----------------------------------------------------------------------------
def attention_reference(params, x, ref, num_heads):
    B, C, H, W = x.shape

    def conv1x1(w, b, z):
        return jnp.einsum('oi,bihw->bohw', w, z) + b[None, :, None, None]

    def dwconv3x3(w, b, z):
        zp = jnp.pad(z, ((0, 0), (0, 0), (1, 1), (1, 1)))
        out = jnp.zeros_like(z)
        for di in range(3):
            for dj in range(3):
                out = out + w[None, :, di, dj, None, None] * zp[:, :, di:di + H, dj:dj + W]
        return out + b[None, :, None, None]

    kv = dwconv3x3(params["kv_dw_w"], params["kv_dw_b"],
                   conv1x1(params["kv_w"], params["kv_b"], x))
    q = dwconv3x3(params["q_dw_w"], params["q_dw_b"],
                  conv1x1(params["q_w"], params["q_b"], ref))
    k, v = kv[:, :C], kv[:, C:]
    ch = C // num_heads

    def split(z):
        return z.reshape(B, num_heads, ch, H * W)

    qh, kh, vh = split(q), split(k), split(v)
    qh = qh / jnp.maximum(jnp.linalg.norm(qh, axis=-1, keepdims=True), 1e-12)
    kh = kh / jnp.maximum(jnp.linalg.norm(kh, axis=-1, keepdims=True), 1e-12)
    attn = jnp.einsum('bhcd,bhed->bhce', qh, kh) * params["temperature"][None]
    attn = jax.nn.softmax(attn, axis=-1)
    out = jnp.einsum('bhce,bhed->bhcd', attn, vh).reshape(B, C, H, W)
    return conv1x1(params["proj_w"], params["proj_b"], out)


if __name__ == "__main__":
    dim = 32
    num_heads = 4
    B, H, W = 2, 16, 16        # H*W = 256 -> lane-dense tiles (multiple of 128)

    key = jax.random.PRNGKey(0)
    k_params, k_x, k_ref = jax.random.split(key, 3)
    params = init_attention_params(k_params, dim, num_heads)
    x = jax.random.normal(k_x, (B, dim, H, W), jnp.float32)
    ref = jax.random.normal(k_ref, (B, dim, H, W), jnp.float32)

    out = attention_forward(params, x, ref, num_heads)
    out = jax.block_until_ready(out)
    assert out.shape == (B, dim, H, W)

    # loose tolerance: kernel uses bf16 MXU matmuls with f32 accumulation
    ref_out = jax.block_until_ready(attention_reference(params, x, ref, num_heads))
    err = float(jnp.max(jnp.abs(out - ref_out)))
    assert err < 0.2, f"max abs error vs reference too large: {err}"
    print("KERNEL_OK")
</pallas_src>

<mosaic_0001>
module attributes {stable_mosaic.version = 11 : i64} {
  func.func @_fused_attention_kernel(%arg0: i32, %arg1: memref<1x32x256xf32, #tpu.memory_space<vmem>>, %arg2: memref<1x32x256xf32, #tpu.memory_space<vmem>>, %arg3: memref<9x256xf32, #tpu.memory_space<vmem>>, %arg4: memref<64x32xf32, #tpu.memory_space<vmem>>, %arg5: memref<64x1xf32, #tpu.memory_space<vmem>>, %arg6: memref<32x32xf32, #tpu.memory_space<vmem>>, %arg7: memref<32x1xf32, #tpu.memory_space<vmem>>, %arg8: memref<96x9xf32, #tpu.memory_space<vmem>>, %arg9: memref<96x1xf32, #tpu.memory_space<vmem>>, %arg10: memref<32x32xf32, #tpu.memory_space<vmem>>, %arg11: memref<32x1xf32, #tpu.memory_space<vmem>>, %arg12: memref<32x1xf32, #tpu.memory_space<vmem>>, %arg13: memref<1x32x256xf32, #tpu.memory_space<vmem>>) attributes {dimension_semantics = [#tpu.dimension_semantics<parallel>], iteration_bounds = array<i64: 2>, scalar_prefetch = 0 : i64, scratch_operands = 0 : i64, tpu.core_type = #tpu.core_type<tc>, window_params = [{transform_indices = @transform_0, window_bounds = array<i64: 1, 32, 256>}, {transform_indices = @transform_1, window_bounds = array<i64: 1, 32, 256>}, {pipeline_mode = #tpu.pipeline_mode<synchronous>, transform_indices = @transform_2, window_bounds = array<i64: 9, 256>}, {pipeline_mode = #tpu.pipeline_mode<synchronous>, transform_indices = @transform_3, window_bounds = array<i64: 64, 32>}, {pipeline_mode = #tpu.pipeline_mode<synchronous>, transform_indices = @transform_4, window_bounds = array<i64: 64, 1>}, {pipeline_mode = #tpu.pipeline_mode<synchronous>, transform_indices = @transform_5, window_bounds = array<i64: 32, 32>}, {pipeline_mode = #tpu.pipeline_mode<synchronous>, transform_indices = @transform_6, window_bounds = array<i64: 32, 1>}, {pipeline_mode = #tpu.pipeline_mode<synchronous>, transform_indices = @transform_7, window_bounds = array<i64: 96, 9>}, {pipeline_mode = #tpu.pipeline_mode<synchronous>, transform_indices = @transform_8, window_bounds = array<i64: 96, 1>}, {pipeline_mode = #tpu.pipeline_mode<synchronous>, transform_indices = @transform_9, window_bounds = array<i64: 32, 32>}, {pipeline_mode = #tpu.pipeline_mode<synchronous>, transform_indices = @transform_10, window_bounds = array<i64: 32, 1>}, {pipeline_mode = #tpu.pipeline_mode<synchronous>, transform_indices = @transform_11, window_bounds = array<i64: 32, 1>}, {transform_indices = @transform_12, window_bounds = array<i64: 1, 32, 256>}]} {
    %c0 = arith.constant 0 : index
    %c0_0 = arith.constant 0 : index
    %0 = vector.load %arg3[%c0, %c0_0] : memref<9x256xf32, #tpu.memory_space<vmem>>, vector<9x256xf32>
    %c0_1 = arith.constant 0 : index
    %c0_2 = arith.constant 0 : index
    %c0_3 = arith.constant 0 : index
    %1 = vector.load %arg1[%c0_1, %c0_2, %c0_3] : memref<1x32x256xf32, #tpu.memory_space<vmem>>, vector<1x32x256xf32>
    %2 = vector.shape_cast %1 : vector<1x32x256xf32> to vector<32x256xf32>
    %c0_4 = arith.constant 0 : index
    %c0_5 = arith.constant 0 : index
    %3 = vector.load %arg4[%c0_4, %c0_5] : memref<64x32xf32, #tpu.memory_space<vmem>>, vector<64x32xf32>
    %4 = arith.truncf %3 : vector<64x32xf32> to vector<64x32xbf16>
    %5 = arith.truncf %2 : vector<32x256xf32> to vector<32x256xbf16>
    %cst = arith.constant dense<0.000000e+00> : vector<64x256xf32>
    %6 = tpu.matmul %4, %5, %cst {dimension_numbers = #tpu.dot_dimension_numbers<[1], [0], [0], [1], [0, 0, 1, 1], [], []>} : vector<64x32xbf16>, vector<32x256xbf16>, vector<64x256xf32> -> vector<64x256xf32>
    %c0_6 = arith.constant 0 : index
    %c0_7 = arith.constant 0 : index
    %7 = vector.load %arg5[%c0_6, %c0_7] : memref<64x1xf32, #tpu.memory_space<vmem>>, vector<64x1xf32>
    %8 = vector.broadcast %7 : vector<64x1xf32> to vector<64x256xf32>
    %9 = arith.addf %6, %8 : vector<64x256xf32>
    %c0_8 = arith.constant 0 : index
    %c0_9 = arith.constant 0 : index
    %c0_10 = arith.constant 0 : index
    %10 = vector.load %arg2[%c0_8, %c0_9, %c0_10] : memref<1x32x256xf32, #tpu.memory_space<vmem>>, vector<1x32x256xf32>
    %11 = vector.shape_cast %10 : vector<1x32x256xf32> to vector<32x256xf32>
    %c0_11 = arith.constant 0 : index
    %c0_12 = arith.constant 0 : index
    %12 = vector.load %arg6[%c0_11, %c0_12] : memref<32x32xf32, #tpu.memory_space<vmem>>, vector<32x32xf32>
    %13 = arith.truncf %12 : vector<32x32xf32> to vector<32x32xbf16>
    %14 = arith.truncf %11 : vector<32x256xf32> to vector<32x256xbf16>
    %cst_13 = arith.constant dense<0.000000e+00> : vector<32x256xf32>
    %15 = tpu.matmul %13, %14, %cst_13 {dimension_numbers = #tpu.dot_dimension_numbers<[1], [0], [0], [1], [0, 0, 1, 1], [], []>} : vector<32x32xbf16>, vector<32x256xbf16>, vector<32x256xf32> -> vector<32x256xf32>
    %c0_14 = arith.constant 0 : index
    %c0_15 = arith.constant 0 : index
    %16 = vector.load %arg7[%c0_14, %c0_15] : memref<32x1xf32, #tpu.memory_space<vmem>>, vector<32x1xf32>
    %17 = vector.broadcast %16 : vector<32x1xf32> to vector<32x256xf32>
    %18 = arith.addf %15, %17 : vector<32x256xf32>
    %19 = tpu.concatenate %9, %18 in 0 : vector<64x256xf32>, vector<32x256xf32> -> vector<96x256xf32>
    %c0_16 = arith.constant 0 : index
    %c0_17 = arith.constant 0 : index
    %20 = vector.load %arg8[%c0_16, %c0_17] : memref<96x9xf32, #tpu.memory_space<vmem>>, vector<96x9xf32>
    %cst_18 = arith.constant 0.000000e+00 : f32
    %21 = vector.broadcast %cst_18 : f32 to vector<96x256xf32>
    %c17_i32 = arith.constant 17 : i32
    %22 = tpu.dynamic_rotate %19 by %c17_i32 dim 1 : vector<96x256xf32>, i32 -> vector<96x256xf32>
    %23 = vector.extract_strided_slice %0 {offsets = [0, 0], sizes = [1, 256], strides = [1, 1]} : vector<9x256xf32> to vector<1x256xf32>
    %24 = vector.broadcast %23 : vector<1x256xf32> to vector<96x256xf32>
    %25 = arith.mulf %22, %24 : vector<96x256xf32>
    %26 = vector.extract_strided_slice %20 {offsets = [0, 0], sizes = [96, 1], strides = [1, 1]} : vector<96x9xf32> to vector<96x1xf32>
    %27 = vector.broadcast %26 : vector<96x1xf32> to vector<96x256xf32>
    %28 = arith.mulf %27, %25 : vector<96x256xf32>
    %29 = arith.addf %21, %28 : vector<96x256xf32>
    %c16_i32 = arith.constant 16 : i32
    %30 = tpu.dynamic_rotate %19 by %c16_i32 dim 1 : vector<96x256xf32>, i32 -> vector<96x256xf32>
    %31 = vector.extract_strided_slice %0 {offsets = [1, 0], sizes = [1, 256], strides = [1, 1]} : vector<9x256xf32> to vector<1x256xf32>
    %32 = vector.broadcast %31 : vector<1x256xf32> to vector<96x256xf32>
    %33 = arith.mulf %30, %32 : vector<96x256xf32>
    %34 = vector.extract_strided_slice %20 {offsets = [0, 1], sizes = [96, 1], strides = [1, 1]} : vector<96x9xf32> to vector<96x1xf32>
    %35 = vector.broadcast %34 : vector<96x1xf32> to vector<96x256xf32>
    %36 = arith.mulf %35, %33 : vector<96x256xf32>
    %37 = arith.addf %29, %36 : vector<96x256xf32>
    %c15_i32 = arith.constant 15 : i32
    %38 = tpu.dynamic_rotate %19 by %c15_i32 dim 1 : vector<96x256xf32>, i32 -> vector<96x256xf32>
    %39 = vector.extract_strided_slice %0 {offsets = [2, 0], sizes = [1, 256], strides = [1, 1]} : vector<9x256xf32> to vector<1x256xf32>
    %40 = vector.broadcast %39 : vector<1x256xf32> to vector<96x256xf32>
    %41 = arith.mulf %38, %40 : vector<96x256xf32>
    %42 = vector.extract_strided_slice %20 {offsets = [0, 2], sizes = [96, 1], strides = [1, 1]} : vector<96x9xf32> to vector<96x1xf32>
    %43 = vector.broadcast %42 : vector<96x1xf32> to vector<96x256xf32>
    %44 = arith.mulf %43, %41 : vector<96x256xf32>
    %45 = arith.addf %37, %44 : vector<96x256xf32>
    %c1_i32 = arith.constant 1 : i32
    %46 = tpu.dynamic_rotate %19 by %c1_i32 dim 1 : vector<96x256xf32>, i32 -> vector<96x256xf32>
    %47 = vector.extract_strided_slice %0 {offsets = [3, 0], sizes = [1, 256], strides = [1, 1]} : vector<9x256xf32> to vector<1x256xf32>
    %48 = vector.broadcast %47 : vector<1x256xf32> to vector<96x256xf32>
    %49 = arith.mulf %46, %48 : vector<96x256xf32>
    %50 = vector.extract_strided_slice %20 {offsets = [0, 3], sizes = [96, 1], strides = [1, 1]} : vector<96x9xf32> to vector<96x1xf32>
    %51 = vector.broadcast %50 : vector<96x1xf32> to vector<96x256xf32>
    %52 = arith.mulf %51, %49 : vector<96x256xf32>
    %53 = arith.addf %45, %52 : vector<96x256xf32>
    %54 = vector.extract_strided_slice %20 {offsets = [0, 4], sizes = [96, 1], strides = [1, 1]} : vector<96x9xf32> to vector<96x1xf32>
    %55 = vector.broadcast %54 : vector<96x1xf32> to vector<96x256xf32>
    %56 = arith.mulf %55, %19 : vector<96x256xf32>
    %57 = arith.addf %53, %56 : vector<96x256xf32>
    %c255_i32 = arith.constant 255 : i32
    %58 = tpu.dynamic_rotate %19 by %c255_i32 dim 1 : vector<96x256xf32>, i32 -> vector<96x256xf32>
    %59 = vector.extract_strided_slice %0 {offsets = [5, 0], sizes = [1, 256], strides = [1, 1]} : vector<9x256xf32> to vector<1x256xf32>
    %60 = vector.broadcast %59 : vector<1x256xf32> to vector<96x256xf32>
    %61 = arith.mulf %58, %60 : vector<96x256xf32>
    %62 = vector.extract_strided_slice %20 {offsets = [0, 5], sizes = [96, 1], strides = [1, 1]} : vector<96x9xf32> to vector<96x1xf32>
    %63 = vector.broadcast %62 : vector<96x1xf32> to vector<96x256xf32>
    %64 = arith.mulf %63, %61 : vector<96x256xf32>
    %65 = arith.addf %57, %64 : vector<96x256xf32>
    %c241_i32 = arith.constant 241 : i32
    %66 = tpu.dynamic_rotate %19 by %c241_i32 dim 1 : vector<96x256xf32>, i32 -> vector<96x256xf32>
    %67 = vector.extract_strided_slice %0 {offsets = [6, 0], sizes = [1, 256], strides = [1, 1]} : vector<9x256xf32> to vector<1x256xf32>
    %68 = vector.broadcast %67 : vector<1x256xf32> to vector<96x256xf32>
    %69 = arith.mulf %66, %68 : vector<96x256xf32>
    %70 = vector.extract_strided_slice %20 {offsets = [0, 6], sizes = [96, 1], strides = [1, 1]} : vector<96x9xf32> to vector<96x1xf32>
    %71 = vector.broadcast %70 : vector<96x1xf32> to vector<96x256xf32>
    %72 = arith.mulf %71, %69 : vector<96x256xf32>
    %73 = arith.addf %65, %72 : vector<96x256xf32>
    %c240_i32 = arith.constant 240 : i32
    %74 = tpu.dynamic_rotate %19 by %c240_i32 dim 1 : vector<96x256xf32>, i32 -> vector<96x256xf32>
    %75 = vector.extract_strided_slice %0 {offsets = [7, 0], sizes = [1, 256], strides = [1, 1]} : vector<9x256xf32> to vector<1x256xf32>
    %76 = vector.broadcast %75 : vector<1x256xf32> to vector<96x256xf32>
    %77 = arith.mulf %74, %76 : vector<96x256xf32>
    %78 = vector.extract_strided_slice %20 {offsets = [0, 7], sizes = [96, 1], strides = [1, 1]} : vector<96x9xf32> to vector<96x1xf32>
    %79 = vector.broadcast %78 : vector<96x1xf32> to vector<96x256xf32>
    %80 = arith.mulf %79, %77 : vector<96x256xf32>
    %81 = arith.addf %73, %80 : vector<96x256xf32>
    %c239_i32 = arith.constant 239 : i32
    %82 = tpu.dynamic_rotate %19 by %c239_i32 dim 1 : vector<96x256xf32>, i32 -> vector<96x256xf32>
    %83 = vector.extract_strided_slice %0 {offsets = [8, 0], sizes = [1, 256], strides = [1, 1]} : vector<9x256xf32> to vector<1x256xf32>
    %84 = vector.broadcast %83 : vector<1x256xf32> to vector<96x256xf32>
    %85 = arith.mulf %82, %84 : vector<96x256xf32>
    %86 = vector.extract_strided_slice %20 {offsets = [0, 8], sizes = [96, 1], strides = [1, 1]} : vector<96x9xf32> to vector<96x1xf32>
    %87 = vector.broadcast %86 : vector<96x1xf32> to vector<96x256xf32>
    %88 = arith.mulf %87, %85 : vector<96x256xf32>
    %89 = arith.addf %81, %88 : vector<96x256xf32>
    %c0_19 = arith.constant 0 : index
    %c0_20 = arith.constant 0 : index
    %90 = vector.load %arg9[%c0_19, %c0_20] : memref<96x1xf32, #tpu.memory_space<vmem>>, vector<96x1xf32>
    %91 = vector.broadcast %90 : vector<96x1xf32> to vector<96x256xf32>
    %92 = arith.addf %89, %91 : vector<96x256xf32>
    %93 = vector.extract_strided_slice %92 {offsets = [0, 0], sizes = [32, 256], strides = [1, 1]} : vector<96x256xf32> to vector<32x256xf32>
    %94 = vector.extract_strided_slice %92 {offsets = [32, 0], sizes = [32, 256], strides = [1, 1]} : vector<96x256xf32> to vector<32x256xf32>
    %95 = vector.extract_strided_slice %92 {offsets = [64, 0], sizes = [32, 256], strides = [1, 1]} : vector<96x256xf32> to vector<32x256xf32>
    %96 = arith.mulf %95, %95 : vector<32x256xf32>
    %cst_21 = arith.constant dense<0.000000e+00> : vector<32xf32>
    %97 = vector.multi_reduction <add>, %96, %cst_21 [1] : vector<32x256xf32> to vector<32xf32>
    %98 = vector.shape_cast %97 : vector<32xf32> to vector<32x1xf32>
    %cst_22 = arith.constant 1.000000e-24 : f32
    %99 = vector.broadcast %cst_22 : f32 to vector<32x1xf32>
    %100 = arith.maximumf %98, %99 : vector<32x1xf32>
    %101 = math.rsqrt %100 : vector<32x1xf32>
    %102 = vector.broadcast %101 : vector<32x1xf32> to vector<32x256xf32>
    %103 = arith.mulf %95, %102 : vector<32x256xf32>
    %104 = arith.mulf %93, %93 : vector<32x256xf32>
    %cst_23 = arith.constant dense<0.000000e+00> : vector<32xf32>
    %105 = vector.multi_reduction <add>, %104, %cst_23 [1] : vector<32x256xf32> to vector<32xf32>
    %106 = vector.shape_cast %105 : vector<32xf32> to vector<32x1xf32>
    %cst_24 = arith.constant 1.000000e-24 : f32
    %107 = vector.broadcast %cst_24 : f32 to vector<32x1xf32>
    %108 = arith.maximumf %106, %107 : vector<32x1xf32>
    %109 = math.rsqrt %108 : vector<32x1xf32>
    %110 = vector.broadcast %109 : vector<32x1xf32> to vector<32x256xf32>
    %111 = arith.mulf %93, %110 : vector<32x256xf32>
    %c0_25 = arith.constant 0 : index
    %c0_26 = arith.constant 0 : index
    %112 = vector.load %arg12[%c0_25, %c0_26] : memref<32x1xf32, #tpu.memory_space<vmem>>, vector<32x1xf32>
    %113 = vector.broadcast %112 : vector<32x1xf32> to vector<32x256xf32>
    %114 = arith.mulf %103, %113 : vector<32x256xf32>
    %115 = vector.shape_cast %114 : vector<32x256xf32> to vector<4x8x256xf32>
    %116 = arith.truncf %115 : vector<4x8x256xf32> to vector<4x8x256xbf16>
    %117 = vector.shape_cast %111 : vector<32x256xf32> to vector<4x8x256xf32>
    %118 = arith.truncf %117 : vector<4x8x256xf32> to vector<4x8x256xbf16>
    %119 = vector.shape_cast %94 : vector<32x256xf32> to vector<4x8x256xf32>
    %120 = arith.truncf %119 : vector<4x8x256xf32> to vector<4x8x256xbf16>
    %cst_27 = arith.constant dense<0.000000e+00> : vector<4x8x8xf32>
    %121 = tpu.matmul %116, %118, %cst_27 {dimension_numbers = #tpu.dot_dimension_numbers<[2], [2], [1], [1], [0, 0, 0, 1, 1, 1], [0], [0]>} : vector<4x8x256xbf16>, vector<4x8x256xbf16>, vector<4x8x8xf32> -> vector<4x8x8xf32>
    %cst_28 = arith.constant dense<0xFF800000> : vector<4x8xf32>
    %122 = vector.multi_reduction <maximumf>, %121, %cst_28 [2] : vector<4x8x8xf32> to vector<4x8xf32>
    %123 = vector.shape_cast %122 : vector<4x8xf32> to vector<4x8x1xf32>
    %124 = vector.broadcast %123 : vector<4x8x1xf32> to vector<4x8x8xf32>
    %125 = arith.subf %121, %124 : vector<4x8x8xf32>
    %126 = math.exp %125 : vector<4x8x8xf32>
    %cst_29 = arith.constant dense<0.000000e+00> : vector<4x8xf32>
    %127 = vector.multi_reduction <add>, %126, %cst_29 [2] : vector<4x8x8xf32> to vector<4x8xf32>
    %128 = vector.shape_cast %127 : vector<4x8xf32> to vector<4x8x1xf32>
    %129 = tpu.reciprocal %128 {approx = true} : vector<4x8x1xf32> -> vector<4x8x1xf32>
    %130 = vector.broadcast %129 : vector<4x8x1xf32> to vector<4x8x8xf32>
    %131 = arith.mulf %126, %130 : vector<4x8x8xf32>
    %132 = arith.truncf %131 : vector<4x8x8xf32> to vector<4x8x8xbf16>
    %cst_30 = arith.constant dense<0.000000e+00> : vector<4x8x256xf32>
    %133 = tpu.matmul %132, %120, %cst_30 {dimension_numbers = #tpu.dot_dimension_numbers<[2], [1], [1], [2], [0, 0, 0, 1, 1, 2], [0], [0]>} : vector<4x8x8xbf16>, vector<4x8x256xbf16>, vector<4x8x256xf32> -> vector<4x8x256xf32>
    %134 = vector.shape_cast %133 : vector<4x8x256xf32> to vector<32x256xf32>
    %c0_31 = arith.constant 0 : index
    %c0_32 = arith.constant 0 : index
    %135 = vector.load %arg10[%c0_31, %c0_32] : memref<32x32xf32, #tpu.memory_space<vmem>>, vector<32x32xf32>
    %136 = arith.truncf %135 : vector<32x32xf32> to vector<32x32xbf16>
    %137 = arith.truncf %134 : vector<32x256xf32> to vector<32x256xbf16>
    %cst_33 = arith.constant dense<0.000000e+00> : vector<32x256xf32>
    %138 = tpu.matmul %136, %137, %cst_33 {dimension_numbers = #tpu.dot_dimension_numbers<[1], [0], [0], [1], [0, 0, 1, 1], [], []>} : vector<32x32xbf16>, vector<32x256xbf16>, vector<32x256xf32> -> vector<32x256xf32>
    %c0_34 = arith.constant 0 : index
    %c0_35 = arith.constant 0 : index
    %139 = vector.load %arg11[%c0_34, %c0_35] : memref<32x1xf32, #tpu.memory_space<vmem>>, vector<32x1xf32>
    %140 = vector.broadcast %139 : vector<32x1xf32> to vector<32x256xf32>
    %141 = arith.addf %138, %140 : vector<32x256xf32>
    %c0_36 = arith.constant 0 : index
    %c0_37 = arith.constant 0 : index
    %c0_38 = arith.constant 0 : index
    %142 = vector.load %arg13[%c0_36, %c0_37, %c0_38] : memref<1x32x256xf32, #tpu.memory_space<vmem>>, vector<1x32x256xf32>
    %143 = vector.shape_cast %142 : vector<1x32x256xf32> to vector<32x256xf32>
    %144 = vector.shape_cast %141 : vector<32x256xf32> to vector<1x32x256xf32>
    tpu.vector_store %arg13[%c0_36, %c0_37, %c0_38], %144 {strides = array<i32>} : memref<1x32x256xf32, #tpu.memory_space<vmem>>, vector<1x32x256xf32>,
    return
  }
  func.func @transform_0(%arg0: i32) -> (i32, i32, i32) {
    %c0_i32 = arith.constant 0 : i32
    %c0_i32_0 = arith.constant 0 : i32
    %c0_i32_1 = arith.constant 0 : i32
    return %arg0, %c0_i32, %c0_i32_0 : i32, i32, i32
  }
  func.func @transform_1(%arg0: i32) -> (i32, i32, i32) {
    %c0_i32 = arith.constant 0 : i32
    %c0_i32_0 = arith.constant 0 : i32
    %c0_i32_1 = arith.constant 0 : i32
    return %arg0, %c0_i32, %c0_i32_0 : i32, i32, i32
  }
  func.func @transform_2(%arg0: i32) -> (i32, i32) {
    %c0_i32 = arith.constant 0 : i32
    %c0_i32_0 = arith.constant 0 : i32
    %c0_i32_1 = arith.constant 0 : i32
    return %c0_i32, %c0_i32_0 : i32, i32
  }
  func.func @transform_3(%arg0: i32) -> (i32, i32) {
    %c0_i32 = arith.constant 0 : i32
    %c0_i32_0 = arith.constant 0 : i32
    %c0_i32_1 = arith.constant 0 : i32
    return %c0_i32, %c0_i32_0 : i32, i32
  }
  func.func @transform_4(%arg0: i32) -> (i32, i32) {
    %c0_i32 = arith.constant 0 : i32
    %c0_i32_0 = arith.constant 0 : i32
    %c0_i32_1 = arith.constant 0 : i32
    return %c0_i32, %c0_i32_0 : i32, i32
  }
  func.func @transform_5(%arg0: i32) -> (i32, i32) {
    %c0_i32 = arith.constant 0 : i32
    %c0_i32_0 = arith.constant 0 : i32
    %c0_i32_1 = arith.constant 0 : i32
    return %c0_i32, %c0_i32_0 : i32, i32
  }
  func.func @transform_6(%arg0: i32) -> (i32, i32) {
    %c0_i32 = arith.constant 0 : i32
    %c0_i32_0 = arith.constant 0 : i32
    %c0_i32_1 = arith.constant 0 : i32
    return %c0_i32, %c0_i32_0 : i32, i32
  }
  func.func @transform_7(%arg0: i32) -> (i32, i32) {
    %c0_i32 = arith.constant 0 : i32
    %c0_i32_0 = arith.constant 0 : i32
    %c0_i32_1 = arith.constant 0 : i32
    return %c0_i32, %c0_i32_0 : i32, i32
  }
  func.func @transform_8(%arg0: i32) -> (i32, i32) {
    %c0_i32 = arith.constant 0 : i32
    %c0_i32_0 = arith.constant 0 : i32
    %c0_i32_1 = arith.constant 0 : i32
    return %c0_i32, %c0_i32_0 : i32, i32
  }
  func.func @transform_9(%arg0: i32) -> (i32, i32) {
    %c0_i32 = arith.constant 0 : i32
    %c0_i32_0 = arith.constant 0 : i32
    %c0_i32_1 = arith.constant 0 : i32
    return %c0_i32, %c0_i32_0 : i32, i32
  }
  func.func @transform_10(%arg0: i32) -> (i32, i32) {
    %c0_i32 = arith.constant 0 : i32
    %c0_i32_0 = arith.constant 0 : i32
    %c0_i32_1 = arith.constant 0 : i32
    return %c0_i32, %c0_i32_0 : i32, i32
  }
  func.func @transform_11(%arg0: i32) -> (i32, i32) {
    %c0_i32 = arith.constant 0 : i32
    %c0_i32_0 = arith.constant 0 : i32
    %c0_i32_1 = arith.constant 0 : i32
    return %c0_i32, %c0_i32_0 : i32, i32
  }
  func.func @transform_12(%arg0: i32) -> (i32, i32, i32) {
    %c0_i32 = arith.constant 0 : i32
    %c0_i32_0 = arith.constant 0 : i32
    %c0_i32_1 = arith.constant 0 : i32
    return %arg0, %c0_i32, %c0_i32_0 : i32, i32, i32
  }
}

</mosaic_0001>

<bundles_post_ra>
// kernel: tpu_custom_call.1
= control target key start
LH: loop header
LB: loop body
LE: loop exit
PB: predicated region body
PF: predicated region fallthrough
CT: control target
= control target key end

     0   :  { %17 = vsyncpa [#allocation3], 0  ;;  %s6380_s0 = inlined_call_operand.vmem [shape: f32[2,32,256], index: 0, kind: input, shape index: {}]   ;;  %s6381_s1 = inlined_call_operand.vmem [shape: f32[2,32,256], index: 1, kind: input, shape index: {}]   ;;  %s6382_s2 = inlined_call_operand.vmem [shape: f32[9,256], index: 2, kind: input, shape index: {}]   ;;  %s6383_s3 = inlined_call_operand.vmem [shape: f32[64,32], index: 3, kind: input, shape index: {}]   ;;  %s6384_s4 = inlined_call_operand.vmem [shape: f32[64,1], index: 4, kind: input, shape index: {}]   ;;  %s6385_s5 = inlined_call_operand.vmem [shape: f32[32,32], index: 5, kind: input, shape index: {}]   ;;  %s6386_s6 = inlined_call_operand.vmem [shape: f32[32,1], index: 6, kind: input, shape index: {}]   ;;  %s6387_s7 = inlined_call_operand.vmem [shape: f32[96,9], index: 7, kind: input, shape index: {}]   ;;  %s6388_s8 = inlined_call_operand.vmem [shape: f32[96,1], index: 8, kind: input, shape index: {}]   ;;  %s6389_s9 = inlined_call_operand.vmem [shape: f32[32,32], index: 9, kind: input, shape index: {}]   ;;  %s6390_s10 = inlined_call_operand.vmem [shape: f32[32,1], index: 10, kind: input, shape index: {}]   ;;  %s6391_s11 = inlined_call_operand.vmem [shape: f32[32,1], index: 11, kind: input, shape index: {}]   ;;  %s6392_s12 = inlined_call_operand.hbm [shape: f32[2,32,256], index: 12, kind: output, shape index: {}]  }
   0x1   :  { %19 = vsyncpa [#allocation3 + $0x1], 0  ;;  %s3604_s21 = smov 0   ;;  %s3606_s22 = smov 0  }
   0x2   :  { %s3608_s23 = smov 0   ;;  %s3610_s24 = smov 0  }
   0x3 LB: > { %6588 = sst [smem:[#allocation5_spill]] %s3506_s21  ;;  %s3625_s25 = sadd.s32 4294967295, %s3518_s24   ;;  %s3518_s24 = sphi %s3610_s24, %s6939_s24   ;;  %s3514_s23 = sphi %s3608_s23, %s6941_s23   ;;  %s3510_s22 = sphi %s3606_s22, %s6943_s22   ;;  %s3506_s21 = sphi %s3604_s21, %s6942_s21  }
   0x4   : > { %6589 = sst [smem:[#allocation6_spill]] %s3514_s23  ;;  %s3249_s26 = sadd.s32 4294967294, %s3518_s24  }
   0x5   : > { %s3629_s27 = sadd.s32 1, %s3518_s24   ;;  %s294_s28 = sadd.s32 1, %s3514_s23 }
   0x6   : > { %6590 = sst [smem:[#allocation7_spill]] %s3629_s27  ;;  %s291_s29 = ssub.s32 %s3518_s24, %s3629_s27 }
   0x7   : > { %p304_p0 = scmp.ne.s32.totalorder %s3514_s23, %s3510_s22  ;;  %p292_p1 = scmp.eq.s32.totalorder %s291_s29, 0 }
   0x8   : > { %p305_p2 = scmp.eq.s32.totalorder %s3625_s25, 1  ;;  %p310_p3 = scmp.ne.s32.totalorder %s3510_s22, %s3506_s21 }
   0x9   : > { %p311_p4 = scmp.eq.s32.totalorder %s3249_s26, 1  ;;  %p3252_p7 = scmp.ge.s32.totalorder %s3518_s24, 1 }
   0xa   : > { %s3640_s30 = scalar_select %p292_p1, %s3514_s23, %s294_s28  }
   0xb   : > { %p3642_p5 = por %p305_p2, %p304_p0  ;;  %p3646_p6 = por %p311_p4, %p310_p3 }
   0xc   : > { %6591 = sst [smem:[#allocation8_spill]] %s3640_s30  ;;  %p375_p8 = scmp.lt.s32.totalorder %s3518_s24, 3 }
   0xd   : > { %s6593_s14 = scalar_select %p3646_p6, 1, 0 }
   0xe   : > { %p376_p9 = pnand %p3252_p7, %p375_p8 }
   0xf   : > { %6594 = sst [smem:[#allocation9_spill]] %s6593_s14 }
  0x10   : > { %379 = sbr.rel (%p376_p9) target bundleno = 2067 (0x813), region = 68 }
  0x17   : > { %p422_p10 = scmp.lt.s32.totalorder %s3625_s25, 1  ;;  %v6398_v0 = vmov 0   ;;  %v461_v1 = vld [vmem:[%s6384_s4] sm:$0xff]  ;;  %v462_v2 = vld [vmem:[%s6384_s4 + $0x8] sm:$0xff]  ;;  %v463_v18 = vld [vmem:[%s6384_s4 + $0x10] sm:$0xff]  ;;  %vm509_vm0 = vcmask 261120  }
  0x18   : > { %554 = vmatprep.mubr.bf16.mxu0 %v6398_v0  ;;  %584 = vmatprep.mubr.bf16.mxu1 %v6398_v0  ;;  %v613_v3 = vld [vmem:[%s6386_s6] sm:$0xff]  ;;  %v614_v19 = vld [vmem:[%s6386_s6 + $0x8] sm:$0xff]  ;;  %v451_v22 = vld [vmem:[%s6383_s3 + $0x30] sm:$0xff]  ;;  %v6410_v44 = vmov 1   ;;  %v6404_v53 = vmov 2   ;;  %v6406_v54 = vmov 6  }
  0x19   : > { %s423_s15 = scalar_select %p422_p10, %s3625_s25, 1  ;;  %3345 = vset.pattern.permute.xlu0 %v6398_v0  ;;  %3346 = vset.pattern.permute.xlu1 %v6398_v0  ;;  %v445_v15 = vld [vmem:[%s6383_s3] sm:$0xff]  ;;  %v446_v21 = vld [vmem:[%s6383_s3 + $0x8] sm:$0xff]  ;;  %v452_v23 = vld [vmem:[%s6383_s3 + $0x38] sm:$0xff]  ;;  %v6400_v57 = vmov 3   ;;  %v6402_v58 = vmov 7  }
  0x1a   : > { %471 = vperm.xlu0 %3345, %v461_v1   ;;  %476 = vperm.xlu1 %3346, %v462_v2   ;;  %v453_v29 = vpack.c.bf16 %v446_v21, %v445_v15  ;;  %v456_v30 = vpack.c.bf16 %v452_v23, %v451_v22  ;;  %v615_v31 = vld [vmem:[%s6386_s6 + $0x10] sm:$0xff]  ;;  %v464_v32 = vld [vmem:[%s6384_s4 + $0x18] sm:$0xff]  ;;  %v603_v41 = vld [vmem:[%s6385_s5] sm:$0xff]  ;;  %s3526_s30 = smov 16   ;;  %s3527_s21 = smov 17   ;;  %vm2810_vm9 = vcmask 64512  }
  0x1b   : > { %s3281_s18 = sshll.u32 %s423_s15, 6  ;;  %v447_v37 = vld [vmem:[%s6383_s3 + $0x10] sm:$0xff]  ;;  %v616_v38 = vld [vmem:[%s6386_s6 + $0x18] sm:$0xff]  ;;  %v604_v42 = vld [vmem:[%s6385_s5 + $0x8] sm:$0xff]  ;;  %s3528_s14 = smov 15   ;;  %vm2862_vm10 = vcmask 1043456  }
  0x1c   : > { %s426_s29 = scalar_lea.vmem %s6380_s0, %s3281_s18  ;;  %s3670_s27 = scalar_lea.vmem %s6381_s1, %s3281_s18  ;;  %v448_v40 = vld [vmem:[%s6383_s3 + $0x18] sm:$0xff]  ;;  %v3729_v43 = vld [vmem:[%s6387_s7 + $0x8] sm:$0xff]  ;;  %v607_v46 = vpack.c.bf16 %v604_v42, %v603_v41  ;;  %v3736_v47 = vld [vmem:[%s6387_s7] sm:$0xff] }
  0x1d   : > { %v438_v4 = vld [vmem:[%s426_s29 + $0x8] sm:$0xff]  ;;  %v440_v5 = vld [vmem:[%s426_s29 + $0x18] sm:$0xff]  ;;  %v437_v6 = vld [vmem:[%s426_s29] sm:$0xff]  ;;  %v454_v45 = vpack.c.bf16 %v448_v40, %v447_v37  ;;  %s3529_s15 = smov 1   ;;  %s3530_s16 = smov 127  }
  0x1e   : > { %v458_v7 = vpack.c.bf16 %v440_v5, %v438_v4  ;;  %v439_v8 = vld [vmem:[%s426_s29 + $0x10] sm:$0xff]  ;;  %v442_v9 = vld [vmem:[%s426_s29 + $0x28] sm:$0xff]  ;;  %v444_v10 = vld [vmem:[%s426_s29 + $0x38] sm:$0xff]  ;;  %619 = vperm.xlu0 %3345, %v613_v3   ;;  %624 = vperm.xlu1 %3346, %v614_v19   ;;  %s3531_s17 = smov 113   ;;  %s6582_s18 = smov 112  }
  0x1f   : > { %v457_v11 = vpack.c.bf16 %v439_v8, %v437_v6  ;;  %v460_v12 = vpack.c.bf16 %v444_v10, %v442_v9  ;;  %v441_v13 = vld [vmem:[%s426_s29 + $0x20] sm:$0xff]  ;;  %v443_v14 = vld [vmem:[%s426_s29 + $0x30] sm:$0xff]  ;;  %v596_v16 = vld [vmem:[%s3670_s27 + $0x8] sm:$0xff]  ;;  %s3283_s29 = sshll.u32 %s3625_s25, 10 }
  0x20   : > { %522 = vmatprep.subr.bf16.mxu0 %v458_v7  ;;  %3284 = vmatprep.subr.bf16.mxu1 %v458_v7  ;;  %v598_v17 = vld [vmem:[%s3670_s27 + $0x18] sm:$0xff]  ;;  %v459_v20 = vpack.c.bf16 %v443_v14, %v441_v13  ;;  %v595_v25 = vld [vmem:[%s3670_s27] sm:$0xff]  ;;  %v597_v26 = vld [vmem:[%s3670_s27 + $0x10] sm:$0xff] }
  0x21   : > { %523 = vmatpush1.bf16.msra.mxu0 %v457_v11  ;;  %3286 = vmatpush1.bf16.msra.mxu1 %v457_v11  ;;  %v610_v24 = vpack.c.bf16 %v598_v17, %v596_v16  ;;  %v600_v27 = vld [vmem:[%s3670_s27 + $0x28] sm:$0xff]  ;;  %v602_v28 = vld [vmem:[%s3670_s27 + $0x38] sm:$0xff]  ;;  %v609_v33 = vpack.c.bf16 %v597_v26, %v595_v25  ;;  %v599_v35 = vld [vmem:[%s3670_s27 + $0x20] sm:$0xff] }
  0x22   : > { %524 = vmatprep.subr.bf16.mxu0 %v460_v12  ;;  %3285 = vmatprep.subr.bf16.mxu1 %v460_v12  ;;  %v612_v34 = vpack.c.bf16 %v602_v28, %v600_v27  ;;  %v601_v36 = vld [vmem:[%s3670_s27 + $0x30] sm:$0xff]  ;;  %v606_v49 = vld [vmem:[%s6385_s5 + $0x18] sm:$0xff]  ;;  %v3759_v51 = vld [vmem:[%s6387_s7 + $0x40] sm:$0xff]  ;;  %s6580_s27 = smov 111  }
  0x23   : > { %481 = vperm.xlu0 %3345, %v463_v18   ;;  %486 = vperm.xlu1 %3346, %v464_v32   ;;  %v611_v39 = vpack.c.bf16 %v601_v36, %v599_v35  ;;  %v605_v48 = vld [vmem:[%s6385_s5 + $0x10] sm:$0xff]  ;;  %v3752_v50 = vld [vmem:[%s6387_s7 + $0x18] sm:$0xff]  ;;  %v3777_v55 = vld [vmem:[%s6387_s7 + $0x48] sm:$0xff] }
  0x24   : > { %v608_v52 = vpack.c.bf16 %v606_v49, %v605_v48  ;;  %v3792_v56 = vld [vmem:[%s6387_s7 + $0x10] sm:$0xff]  ;;  %v3917_v37 = vld [vmem:[%s6387_s7 + $0x58] sm:$0xff] }
  0x25   : > { %525 = vmatpush1.bf16.msra.mxu0 %v459_v20  ;;  %3287 = vmatpush1.bf16.msra.mxu1 %v459_v20  ;;  %v3947_v41 = vld [vmem:[%s6387_s7 + $0x50] sm:$0xff] }
  0x26   : > { %643 = vmatprep.subr.bf16.mxu1 %v610_v24 }
  0x27   : > { %629 = vperm.xlu0 %3345, %v615_v31   ;;  %634 = vperm.xlu1 %3346, %v616_v38  }
  0x28   : > { %3258 = vmatmul.mubr.msk.bf16.vlgmr.msra.gmra.mrb[0].mxu0 %vm509_vm0, %v453_v29  ;;  %3261 = vmatmul.mubr.msk.bf16.vlgmr.msra.gmra.mrb[0].mxu1 %vm509_vm0, %v456_v30 }
  0x29   : > { %644 = vmatpush1.bf16.msra.mxu1 %v609_v33  ;;  %564 = vmatprep.mubr.bf16.mxu0 %v6398_v0 }
  0x2a   : > { %645 = vmatprep.subr.bf16.mxu1 %v612_v34  ;;  %675 = vmatprep.mubr.bf16.mxu1 %v6398_v0 }
  0x2b   : > { %3352 = vset.pattern.permute.xlu0 %v6410_v44  ;;  %3347 = vset.pattern.permute.xlu1 %v6410_v44 }
  0x2c   : > { %1033 = vperm.xlu0 %3352, %v3729_v43   ;;  %1029 = vperm.xlu1 %3347, %v3736_v47  }
  0x2d   : > { %646 = vmatpush1.bf16.msra.mxu1 %v611_v39 }
  0x30   : > { %3259 = vmatmul.mubr.msk.bf16.gmra.mrb[4].mxu0 %vm509_vm0, %v454_v45  ;;  %3262 = vmatmul.mubr.msk.bf16.vlgmr.msra.gmra.mrb[4].mxu1 %vm509_vm0, %v607_v46 }
  0x31   : > { %685 = vmatprep.mubr.bf16.mxu1 %v6398_v0  ;;  %1041 = vperm.xlu0 %3352, %v3752_v50  }
  0x32   : > { %574 = vmatprep.mubr.bf16.mxu0 %v6398_v0  ;;  %3348 = vset.pattern.permute.xlu1 %v6398_v0 }
  0x33   : > { %857 = vperm.xlu1 %3348, %v3759_v51  }
  0x37   : > { %3349 = vset.pattern.permute.xlu1 %v6410_v44 }
  0x38   : > { %3263 = vmatmul.mubr.msk.bf16.gmra.mrb[8].mxu1 %vm509_vm0, %v608_v52  ;;  %1061 = vperm.xlu1 %3349, %v3759_v51  }
  0x3c   : > { %3350 = vset.pattern.permute.xlu1 %v6404_v53 }
  0x3d   : > { %1262 = vperm.xlu1 %3350, %v3759_v51  }
  0x41   : > { %3351 = vset.pattern.permute.xlu1 %v6398_v0 }
  0x42   : > { %822 = vperm.xlu1 %3351, %v3729_v43  }
  0x46   : > { %3353 = vset.pattern.permute.xlu1 %v6404_v53 }
  0x47   : > { %1234 = vperm.xlu1 %3353, %v3729_v43  }
  0x4b   : > { %3354 = vset.pattern.permute.xlu1 %v6406_v54 }
  0x4c   : > { %1929 = vperm.xlu1 %3354, %v3736_v47  }
  0x50   : > { %3355 = vset.pattern.permute.xlu1 %v6398_v0 }
  0x51   : > { %862 = vperm.xlu1 %3355, %v3777_v55  }
  0x55   : > { %3356 = vset.pattern.permute.xlu1 %v6410_v44 }
  0x56   : > { %1065 = vperm.xlu1 %3356, %v3777_v55  }
  0x5a   : > { %3357 = vset.pattern.permute.xlu1 %v6404_v53 }
  0x5b   : > { %1266 = vperm.xlu1 %3357, %v3777_v55  }
  0x5f   : > { %3358 = vset.pattern.permute.xlu1 %v6406_v54 }
  0x60   : > { %1961 = vperm.xlu1 %3358, %v3759_v51  }
  0x64   : > { %3359 = vset.pattern.permute.xlu1 %v6398_v0 }
  0x65   : > { %832 = vperm.xlu1 %3359, %v3752_v50  }
  0x69   : > { %3360 = vset.pattern.permute.xlu1 %v6410_v44 }
  0x6a   : > { %1037 = vperm.xlu1 %3360, %v3792_v56  }
  0x6e   : > { %3361 = vset.pattern.permute.xlu1 %v6404_v53 }
  0x6f   : > { %1238 = vperm.xlu1 %3361, %v3792_v56  }
  0x73   : > { %1242 = vperm.xlu1 %3361, %v3752_v50  }
  0x77   : > { %3362 = vset.pattern.permute.xlu1 %v6400_v57 }
  0x78   : > { %1443 = vperm.xlu1 %3362, %v3752_v50  }
  0x7c   : > { %3363 = vset.pattern.permute.xlu1 %v6402_v58 }
  0x7d   : > { %2134 = vperm.xlu1 %3363, %v3729_v43  }
  0x81   : > { %3364 = vset.pattern.permute.xlu1 %v6398_v0 }
  0x99   : > { %v477_v59 = vpop.permute.xlu1 %476  ;;  %v472_v61 = vpop.permute.xlu0 %471 }
  0x9d   : > { %v3804_v60 = vpop.permute.xlu1 %624  ;;  %v3850_v21 = vpop.permute.xlu0 %619 }
  0xa2   : > { %v3806_v62 = vpop.permute.xlu1 %486  ;;  %v482_v30 = vpop.permute.xlu0 %481 }
  0xa6   : > { %v3826_v9 = vpop.permute.xlu1 %634 }
  0xab   : > { %v3848_v20 = vpop.permute.xlu1 %1029 }
  0xb2   : > { %v3867_v27 = vpop.permute.xlu1 %857 }
  0xb7   : > { %v3879_v29 = vpop.permute.xlu1 %1061 }
  0xbc   : > { %v3889_v33 = vpop.permute.xlu1 %1262 }
  0xc1   : > { %v3899_v34 = vpop.permute.xlu1 %822 }
  0xc2   : > { %6605 = vst [vmem:[#allocation20_spill] sm:$0xff] %v3899_v34  ;;  %v6657_v34 = vmov 2  }
  0xc6   : > { %v3908_v36 = vpop.permute.xlu1 %1234 }
  0xc7   : > { %6607 = vst [vmem:[#allocation22_spill] sm:$0xff] %v3908_v36  ;;  %v6656_v36 = vmov 6  }
  0xcb   : > { %v3922_v38 = vpop.permute.xlu1 %1929 }
  0xcc   : > { %6608 = vst [vmem:[#allocation23_spill] sm:$0xff] %v3922_v38 }
  0xd0   : > { %v3928_v39 = vpop.permute.xlu1 %862 }
  0xd1   : > { %6609 = vst [vmem:[#allocation24_spill] sm:$0xff] %v3928_v39 }
  0xd5   : > { %v3936_v40 = vpop.permute.xlu1 %1065 }
  0xd6   : > { %6610 = vst [vmem:[#allocation25_spill] sm:$0xff] %v3936_v40 }
  0xda   : > { %v3949_v42 = vpop.permute.xlu1 %1266 }
  0xdb   : > { %6611 = vst [vmem:[#allocation26_spill] sm:$0xff] %v3949_v42  ;;  %v6636_v42 = vmov 1  }
  0xdf   : > { %v3956_v45 = vpop.permute.xlu1 %1961 }
  0xe4   : > { %v3963_v46 = vpop.permute.xlu1 %832 }
  0xe5   : > { %6612 = vst [vmem:[#allocation27_spill] sm:$0xff] %v3963_v46 }
  0xe9   : > { %v3970_v48 = vpop.permute.xlu1 %1037 }
  0xea   : > { %6613 = vst [vmem:[#allocation28_spill] sm:$0xff] %v3970_v48 }
  0xee   : > { %v3976_v49 = vpop.permute.xlu1 %1238 }
  0xef   : > { %6614 = vst [vmem:[#allocation29_spill] sm:$0xff] %v3976_v49 }
  0xf2   : > { %v3984_v52 = vpop.permute.xlu1 %1242 }
  0xf3   : > { %6615 = vst [vmem:[#allocation30_spill] sm:$0xff] %v3984_v52 }
  0xfb   : > { %v556_v63 = vpop.f32.mrb[0].mxu0  ;;  %v3808_v1 = vpop.f32.mrb[0].mxu1 }
  0xfc   : > { %6595 = vst [vmem:[#allocation10_spill] sm:$0xff] %v3808_v1  ;;  %v3810_v2 = vadd.f32 %v556_v63, %v472_v61  ;;  %v558_v3 = vpop.f32.mrb[1].mxu0  ;;  %v3812_v4 = vpop.f32.mrb[1].mxu1 }
  0xfd   : > { %6597 = vst [vmem:[#allocation12_spill] sm:$0xff] %v3812_v4  ;;  %v560_v5 = vpop.f32.mrb[2].mxu0  ;;  %v3814_v6 = vpop.f32.mrb[2].mxu1  ;;  %v3873_v28 = vadd.f32 %v558_v3, %v472_v61 }
  0xfe   : > { %6596 = vst [vmem:[#allocation11_spill] sm:$0xff] %v3810_v2  ;;  %6598 = vst [vmem:[#allocation13_spill] sm:$0xff] %v3814_v6  ;;  %v562_v7 = vpop.f32.mrb[3].mxu0  ;;  %923 = vrot.lane.b32.xlu0 %v3810_v2, %s3526_s30  ;;  %708 = vrot.lane.b32.xlu1 %v3810_v2, %s3527_s21  ;;  %v3820_v8 = vpop.f32.mrb[3].mxu1  ;;  %v3828_v12 = vadd.f32 %v560_v5, %v477_v59 }
  0xff   : > { %6599 = vst [vmem:[#allocation14_spill] sm:$0xff] %v3820_v8  ;;  %v3842_v19 = vadd.f32 %v562_v7, %v477_v59  ;;  %6602 = vst [vmem:[#allocation17_spill] sm:$0xff] %v3873_v28  ;;  %v3986_v59 = vpop.permute.xlu0 %629  ;;  %v3998_v63 = vpop.permute.xlu1 %1443 }
 0x100   : > { %6600 = vst [vmem:[#allocation15_spill] sm:$0xff] %v3828_v12  ;;  %6616 = vst [vmem:[#allocation31_spill] sm:$0xff] %v3998_v63 }
 0x101   : > { %6601 = vst [vmem:[#allocation16_spill] sm:$0xff] %v3842_v19 }
 0x102   : > { %1124 = vrot.lane.b32.xlu0 %v3810_v2, %s3528_s14  ;;  %1325 = vrot.lane.b32.xlu1 %v3810_v2, %s3529_s15 }
 0x103   : > { %v566_v10 = vpop.f32.mrb[4].mxu0  ;;  %v677_v11 = vpop.f32.mrb[4].mxu1 }
 0x104   : > { %v568_v13 = vpop.f32.mrb[5].mxu0  ;;  %v3830_v14 = vpop.f32.mrb[5].mxu1  ;;  %v3855_v23 = vadd.f32 %v677_v11, %v3850_v21  ;;  %v3881_v31 = vadd.f32 %v566_v10, %v482_v30  ;;  %v6408_v10 = vmov 4  }
 0x105   : > { %v681_v15 = vpop.f32.mrb[6].mxu1  ;;  %v3832_v16 = vpop.f32.mrb[6].mxu0  ;;  %v3887_v32 = vadd.f32 %v568_v13, %v482_v30  ;;  %v3994_v61 = vadd.f32 %v3830_v14, %v3850_v21 }
 0x106   : > { %925 = vrot.lane.b32.xlu0 %v3828_v12, %s3526_s30  ;;  %1622 = vrot.lane.b32.xlu1 %v3810_v2, %s3530_s16  ;;  %v3838_v17 = vpop.f32.mrb[7].mxu1  ;;  %v3840_v18 = vpop.f32.mrb[7].mxu0  ;;  %6603 = vst [vmem:[#allocation18_spill] sm:$0xff] %v3881_v31  ;;  %v3902_v35 = vadd.f32 %v681_v15, %v3804_v60  ;;  %v4045_v58 = vadd.f32 %v3832_v16, %v3806_v62 }
 0x107   : > { %6604 = vst [vmem:[#allocation19_spill] sm:$0xff] %v3887_v32  ;;  %v4000_v3 = vpop.permute.xlu0 %1033  ;;  %v4007_v5 = vpop.permute.xlu1 %2134  ;;  %v4069_v16 = vadd.f32 %v3838_v17, %v3804_v60 }
 0x108   : > { %6606 = vst [vmem:[#allocation21_spill] sm:$0xff] %v3902_v35  ;;  %6617 = vst [vmem:[#allocation32_spill] sm:$0xff] %v4000_v3 }
 0x109   : > { %6618 = vst [vmem:[#allocation33_spill] sm:$0xff] %v4007_v5  ;;  %6623 = vst [vmem:[#allocation38_spill] sm:$0xff] %v4045_v58 }
 0x10a   : > { %1648 = vrot.lane.b32.xlu0 %v3842_v19, %s3530_s16  ;;  %1823 = vrot.lane.b32.xlu1 %v3810_v2, %s3531_s17  ;;  %6627 = vst [vmem:[#allocation42_spill] sm:$0xff] %v4069_v16 }
 0x10b   : > { %v3852_v22 = vpop.f32.mrb[8].mxu1  ;;  %v4009_v7 = vpop.permute.xlu0 %1041 }
 0x10c   : > { %v3857_v24 = vpop.f32.mrb[9].mxu1  ;;  %6619 = vst [vmem:[#allocation34_spill] sm:$0xff] %v4009_v7 }
 0x10d   : > { %v3859_v25 = vpop.f32.mrb[10].mxu1 }
 0x10e   : > { %939 = vrot.lane.b32.xlu0 %v3855_v23, %s3526_s30  ;;  %2024 = vrot.lane.b32.xlu1 %v3810_v2, %s6582_s18  ;;  %v3865_v26 = vpop.f32.mrb[11].mxu1 }
 0x10f   : > { %v4091_v60 = vadd.f32 %v3865_v26, %v3826_v9 }
 0x111   : > { %6629 = vst [vmem:[#allocation44_spill] sm:$0xff] %v4091_v60 }
 0x112   : > { %1140 = vrot.lane.b32.xlu0 %v3855_v23, %s3528_s14  ;;  %2225 = vrot.lane.b32.xlu1 %v3810_v2, %s6580_s27  ;;  %v6663_v2 = vmov 7  }
 0x116   : > { %1341 = vrot.lane.b32.xlu0 %v3855_v23, %s3529_s15  ;;  %732 = vrot.lane.b32.xlu1 %v3873_v28, %s3527_s21 }
 0x11a   : > { %927 = vrot.lane.b32.xlu0 %v3881_v31, %s3526_s30  ;;  %947 = vrot.lane.b32.xlu1 %v3873_v28, %s3526_s30 }
 0x11e   : > { %736 = vrot.lane.b32.xlu0 %v3887_v32, %s3527_s21  ;;  %1148 = vrot.lane.b32.xlu1 %v3873_v28, %s3528_s14 }
 0x122   : > { %951 = vrot.lane.b32.xlu0 %v3887_v32, %s3526_s30  ;;  %1349 = vrot.lane.b32.xlu1 %v3873_v28, %s3529_s15 }
 0x126   : > { %726 = vrot.lane.b32.xlu0 %v3902_v35, %s3527_s21  ;;  %1646 = vrot.lane.b32.xlu1 %v3873_v28, %s3530_s16 }
 0x12a   : > { %941 = vrot.lane.b32.xlu0 %v3902_v35, %s3526_s30  ;;  %1847 = vrot.lane.b32.xlu1 %v3873_v28, %s3531_s17 }
 0x12e   : > { %1073 = vperm.xlu0 %3352, %v3917_v37   ;;  %2048 = vrot.lane.b32.xlu1 %v3873_v28, %s6582_s18 }
 0x132   : > { %3366 = vset.pattern.permute.xlu0 %v6404_v53  ;;  %2249 = vrot.lane.b32.xlu1 %v3873_v28, %s6580_s27 }
 0x133   : > { %1230 = vperm.xlu0 %3366, %v3736_v47  }
 0x136   : > { %710 = vrot.lane.b32.xlu1 %v3828_v12, %s3527_s21 }
 0x137   : > { %1128 = vrot.lane.b32.xlu0 %v3881_v31, %s3528_s14 }
 0x13a   : > { %1126 = vrot.lane.b32.xlu1 %v3828_v12, %s3528_s14 }
 0x13b   : > { %1152 = vrot.lane.b32.xlu0 %v3887_v32, %s3528_s14 }
 0x13e   : > { %1327 = vrot.lane.b32.xlu1 %v3828_v12, %s3529_s15 }
 0x13f   : > { %1849 = vrot.lane.b32.xlu0 %v3842_v19, %s3531_s17 }
 0x142   : > { %1624 = vrot.lane.b32.xlu1 %v3828_v12, %s3530_s16 }
 0x143   : > { %1270 = vperm.xlu0 %3366, %v3947_v41  }
 0x146   : > { %734 = vrot.lane.b32.xlu1 %v3842_v19, %s3527_s21 }
 0x147   : > { %3369 = vset.pattern.permute.xlu0 %v6400_v57 }
 0x148   : > { %1431 = vperm.xlu0 %3369, %v3736_v47  }
 0x14a   : > { %949 = vrot.lane.b32.xlu1 %v3842_v19, %s3526_s30 }
 0x14c   : > { %1463 = vperm.xlu0 %3369, %v3759_v51  }
 0x14e   : > { %1150 = vrot.lane.b32.xlu1 %v3842_v19, %s3528_s14 }
 0x150   : > { %1435 = vperm.xlu0 %3369, %v3729_v43  }
 0x152   : > { %1351 = vrot.lane.b32.xlu1 %v3842_v19, %s3529_s15 }
 0x154   : > { %1467 = vperm.xlu0 %3369, %v3777_v55  }
 0x156   : > { %724 = vrot.lane.b32.xlu1 %v3855_v23, %s3527_s21 }
 0x158   : > { %1439 = vperm.xlu0 %3369, %v3792_v56  }
 0x15a   : > { %1638 = vrot.lane.b32.xlu1 %v3855_v23, %s3530_s16 }
 0x15c   : > { %2241 = vrot.lane.b32.xlu0 %v3855_v23, %s6580_s27 }
 0x15e   : > { %1839 = vrot.lane.b32.xlu1 %v3855_v23, %s3531_s17 }
 0x160   : > { %1353 = vrot.lane.b32.xlu0 %v3887_v32, %s3529_s15 }
 0x162   : > { %712 = vrot.lane.b32.xlu1 %v3881_v31, %s3527_s21 }
 0x164   : > { %2050 = vrot.lane.b32.xlu0 %v3842_v19, %s6582_s18 }
 0x166   : > { %748 = vrot.lane.b32.xlu1 %v3994_v61, %s3527_s21 }
 0x168   : > { %1475 = vperm.xlu0 %3369, %v3917_v37  }
 0x16a   : > { %963 = vrot.lane.b32.xlu1 %v3994_v61, %s3526_s30 }
 0x16c   : > { %3374 = vset.pattern.permute.xlu0 %v6408_v10  ;;  %v4057_v10 = vadd.f32 %v3859_v25, %v3826_v9  ;;  %v4079_v25 = vadd.f32 %v3857_v24, %v3986_v59  ;;  %v4103_v24 = vadd.f32 %v3840_v18, %v3806_v62  ;;  %v6419_v18 = vmov 5  }
 0x16d   : > { %1527 = vperm.xlu0 %3374, %v3736_v47  }
 0x16e   : > { %1164 = vrot.lane.b32.xlu1 %v3994_v61, %s3528_s14  ;;  %6625 = vst [vmem:[#allocation40_spill] sm:$0xff] %v4057_v10  ;;  %6628 = vst [vmem:[#allocation43_spill] sm:$0xff] %v4079_v25 }
 0x16f   : > { %6631 = vst [vmem:[#allocation46_spill] sm:$0xff] %v4103_v24 }
 0x170   : > { %v4015_v11 = vpop.permute.xlu0 %923  ;;  %v4017_v13 = vpop.permute.xlu1 %708 }
 0x171   : > { %1559 = vperm.xlu0 %3374, %v3759_v51  }
 0x172   : > { %1365 = vrot.lane.b32.xlu1 %v3994_v61, %s3529_s15 }
 0x174   : > { %v4022_v14 = vpop.permute.xlu0 %1124  ;;  %v4024_v15 = vpop.permute.xlu1 %1325 }
 0x175   : > { %1531 = vperm.xlu0 %3374, %v3729_v43  }
 0x176   : > { %1662 = vrot.lane.b32.xlu1 %v3994_v61, %s3530_s16 }
 0x178   : > { %v4029_v21 = vpop.permute.xlu0 %925  ;;  %v4031_v30 = vpop.permute.xlu1 %1622 }
 0x179   : > { %6620 = vst [vmem:[#allocation35_spill] sm:$0xff] %v4029_v21  ;;  %1563 = vperm.xlu0 %3374, %v3777_v55  }
 0x17a   : > { %1863 = vrot.lane.b32.xlu1 %v3994_v61, %s3531_s17 }
 0x17c   : > { %v4036_v0 = vpop.permute.xlu0 %1648  ;;  %v4038_v57 = vpop.permute.xlu1 %1823 }
 0x17d   : > { %6621 = vst [vmem:[#allocation36_spill] sm:$0xff] %v4036_v0  ;;  %6622 = vst [vmem:[#allocation37_spill] sm:$0xff] %v4038_v57  ;;  %1535 = vperm.xlu0 %3374, %v3792_v56  }
 0x17e   : > { %1142 = vrot.lane.b32.xlu1 %v3902_v35, %s3528_s14 }
 0x180   : > { %v4047_v53 = vpop.permute.xlu0 %939  ;;  %v4049_v54 = vpop.permute.xlu1 %2024 }
 0x181   : > { %6624 = vst [vmem:[#allocation39_spill] sm:$0xff] %v4049_v54  ;;  %2227 = vrot.lane.b32.xlu0 %v3828_v12, %s6580_s27 }
 0x182   : > { %714 = vrot.lane.b32.xlu1 %v4045_v58, %s3527_s21 }
 0x184   : > { %v4059_v44 = vpop.permute.xlu1 %2225  ;;  %v4061_v4 = vpop.permute.xlu0 %1140 }
 0x185   : > { %6626 = vst [vmem:[#allocation41_spill] sm:$0xff] %v4059_v44  ;;  %730 = vrot.lane.b32.xlu0 %v4057_v10, %s3527_s21  ;;  %v6442_v44 = vmov 8  }
 0x186   : > { %929 = vrot.lane.b32.xlu1 %v4045_v58, %s3526_s30 }
 0x188   : > { %v4071_v1 = vpop.permute.xlu1 %732  ;;  %v4081_v8 = vpop.permute.xlu0 %1341 }
 0x189   : > { %945 = vrot.lane.b32.xlu0 %v4057_v10, %s3526_s30 }
 0x18a   : > { %750 = vrot.lane.b32.xlu1 %v4069_v16, %s3527_s21 }
 0x18c   : > { %v4083_v6 = vpop.permute.xlu1 %947  ;;  %v4095_v63 = vpop.permute.xlu0 %927 }
 0x18d   : > { %1168 = vrot.lane.b32.xlu0 %v4079_v25, %s3528_s14  ;;  %6630 = vst [vmem:[#allocation45_spill] sm:$0xff] %v4095_v63 }
 0x18e   : > { %965 = vrot.lane.b32.xlu1 %v4069_v16, %s3526_s30 }
 0x190   : > { %v4093_v17 = vpop.permute.xlu1 %1148  ;;  %v4111_v9 = vpop.permute.xlu0 %736 }
 0x191   : > { %754 = vrot.lane.b32.xlu0 %v4091_v60, %s3527_s21  ;;  %6632 = vst [vmem:[#allocation47_spill] sm:$0xff] %v4111_v9  ;;  %v6640_v9 = vmov 4  }
 0x192   : > { %1166 = vrot.lane.b32.xlu1 %v4069_v16, %s3528_s14 }
 0x194   : > { %v4105_v52 = vpop.permute.xlu1 %1349  ;;  %v4120_v62 = vpop.permute.xlu0 %951 }
 0x195   : > { %969 = vrot.lane.b32.xlu0 %v4091_v60, %s3526_s30  ;;  %6634 = vst [vmem:[#allocation49_spill] sm:$0xff] %v4120_v62 }
 0x196   : > { %738 = vrot.lane.b32.xlu1 %v4103_v24, %s3527_s21 }
 0x198   : > { %v4113_v26 = vpop.permute.xlu1 %1646  ;;  %v4129_v49 = vpop.permute.xlu0 %726 }
 0x199   : > { %1567 = vperm.xlu0 %3374, %v3947_v41   ;;  %6637 = vst [vmem:[#allocation51_spill] sm:$0xff] %v4129_v49 }
 0x19a   : > { %953 = vrot.lane.b32.xlu1 %v4103_v24, %s3526_s30 }
 0x19c   : > { %v4118_v46 = vpop.permute.xlu1 %1847  ;;  %v4140_v48 = vpop.permute.xlu0 %941 }
 0x19d   : > { %6633 = vst [vmem:[#allocation48_spill] sm:$0xff] %v4118_v46  ;;  %3376 = vset.pattern.permute.xlu0 %v6419_v18  ;;  %6641 = vst [vmem:[#allocation54_spill] sm:$0xff] %v4140_v48 }
 0x19e   : > { %1728 = vperm.xlu0 %3376, %v3736_v47   ;;  %872 = vperm.xlu1 %3364, %v3917_v37  }
 0x1a0   : > { %v4125_v7 = vpop.permute.xlu1 %2048 }
 0x1a1   : > { %6635 = vst [vmem:[#allocation50_spill] sm:$0xff] %v4125_v7  ;;  %v6661_v7 = vmov 5  }
 0x1a2   : > { %1760 = vperm.xlu0 %3376, %v3759_v51   ;;  %3365 = vset.pattern.permute.xlu1 %v6636_v42 }
 0x1a3   : > { %1069 = vperm.xlu1 %3365, %v3947_v41  }
 0x1a4   : > { %v4132_v39 = vpop.permute.xlu1 %2249 }
 0x1a5   : > { %6638 = vst [vmem:[#allocation52_spill] sm:$0xff] %v4132_v39 }
 0x1a6   : > { %1732 = vperm.xlu0 %3376, %v3729_v43  }
 0x1a7   : > { %1343 = vrot.lane.b32.xlu1 %v3902_v35, %s3529_s15 }
 0x1a8   : > { %v4137_v18 = vpop.permute.xlu1 %710  ;;  %3367 = vset.pattern.permute.xlu1 %v6640_v9 }
 0x1a9   : > { %6639 = vst [vmem:[#allocation53_spill] sm:$0xff] %v4137_v18 }
 0x1aa   : > { %1764 = vperm.xlu0 %3376, %v3777_v55  }
 0x1ab   : > { %1367 = vrot.lane.b32.xlu1 %v4069_v16, %s3529_s15 }
 0x1ac   : > { %v4145_v42 = vpop.permute.xlu1 %1126 }
 0x1ad   : > { %6642 = vst [vmem:[#allocation55_spill] sm:$0xff] %v4145_v42  ;;  %v4147_v40 = vpop.permute.xlu0 %1073 }
 0x1ae   : > { %6643 = vst [vmem:[#allocation56_spill] sm:$0xff] %v4147_v40  ;;  %1736 = vperm.xlu0 %3376, %v3792_v56  }
 0x1af   : > { %2040 = vrot.lane.b32.xlu1 %v3855_v23, %s6582_s18 }
 0x1b0   : > { %v4152_v49 = vpop.permute.xlu1 %1327 }
 0x1b1   : > { %6644 = vst [vmem:[#allocation57_spill] sm:$0xff] %v4152_v49 }
 0x1b2   : > { %1865 = vrot.lane.b32.xlu0 %v4069_v16, %s3531_s17  ;;  %v4156_v63 = vpop.permute.xlu0 %1230 }
 0x1b3   : > { %6645 = vst [vmem:[#allocation58_spill] sm:$0xff] %v4156_v63  ;;  %2064 = vrot.lane.b32.xlu1 %v3994_v61, %s6582_s18 }
 0x1b4   : > { %v4160_v62 = vpop.permute.xlu1 %1624 }
 0x1b5   : > { %6646 = vst [vmem:[#allocation59_spill] sm:$0xff] %v4160_v62 }
 0x1b6   : > { %1626 = vrot.lane.b32.xlu0 %v3881_v31, %s3530_s16  ;;  %v4164_v40 = vpop.permute.xlu0 %1128 }
 0x1b7   : > { %6647 = vst [vmem:[#allocation60_spill] sm:$0xff] %v4164_v40  ;;  %1130 = vrot.lane.b32.xlu1 %v4045_v58, %s3528_s14 }
 0x1b8   : > { %v4168_v48 = vpop.permute.xlu1 %734 }
 0x1b9   : > { %6648 = vst [vmem:[#allocation61_spill] sm:$0xff] %v4168_v48 }
 0x1ba   : > { %1650 = vrot.lane.b32.xlu0 %v3887_v32, %s3530_s16  ;;  %v4172_v5 = vpop.permute.xlu0 %1152 }
 0x1bb   : > { %6649 = vst [vmem:[#allocation62_spill] sm:$0xff] %v4172_v5  ;;  %1154 = vrot.lane.b32.xlu1 %v4103_v24, %s3528_s14 }
 0x1bc   : > { %v4176_v38 = vpop.permute.xlu1 %949 }
 0x1bd   : > { %6650 = vst [vmem:[#allocation63_spill] sm:$0xff] %v4176_v38 }
 0x1be   : > { %1347 = vrot.lane.b32.xlu0 %v4057_v10, %s3529_s15  ;;  %v4180_v62 = vpop.permute.xlu0 %1849 }
 0x1bf   : > { %6651 = vst [vmem:[#allocation64_spill] sm:$0xff] %v4180_v62  ;;  %1539 = vperm.xlu1 %3367, %v3752_v50  }
 0x1c0   : > { %v4183_v40 = vpop.permute.xlu1 %1150 }
 0x1c1   : > { %6652 = vst [vmem:[#allocation65_spill] sm:$0xff] %v4183_v40  ;;  %v6667_v40 = vmov 3  }
 0x1c2   : > { %1371 = vrot.lane.b32.xlu0 %v4091_v60, %s3529_s15  ;;  %v4187_v0 = vpop.permute.xlu0 %1270 }
 0x1c3   : > { %6653 = vst [vmem:[#allocation66_spill] sm:$0xff] %v4187_v0  ;;  %1825 = vrot.lane.b32.xlu1 %v3828_v12, %s3531_s17 }
 0x1c4   : > { %v4191_v5 = vpop.permute.xlu1 %1351  ;;  %3368 = vset.pattern.permute.xlu1 %v6442_v44 }
 0x1c5   : > { %6654 = vst [vmem:[#allocation67_spill] sm:$0xff] %v4191_v5 }
 0x1c6   : > { %1772 = vperm.xlu0 %3376, %v3917_v37  }
 0x1c7   : > { %v4195_v62 = vpop.permute.xlu0 %1431  ;;  %2335 = vperm.xlu1 %3368, %v3729_v43  }
 0x1c8   : > { %6655 = vst [vmem:[#allocation68_spill] sm:$0xff] %v4195_v62  ;;  %v4198_v39 = vpop.permute.xlu1 %724 }
 0x1ca   : > { %3381 = vset.pattern.permute.xlu0 %v6656_v36 }
 0x1cb   : > { %1933 = vperm.xlu0 %3381, %v3729_v43   ;;  %v4202_v0 = vpop.permute.xlu0 %1463  ;;  %3370 = vset.pattern.permute.xlu1 %v6657_v34 }
 0x1cc   : > { %1274 = vperm.xlu1 %3370, %v3917_v37   ;;  %v4206_v3 = vpop.permute.xlu1 %1638 }
 0x1cf   : > { %1827 = vrot.lane.b32.xlu0 %v3881_v31, %s3531_s17  ;;  %v4210_v44 = vpop.permute.xlu0 %1435 }
 0x1d0   : > { %6658 = vst [vmem:[#allocation69_spill] sm:$0xff] %v4210_v44  ;;  %3371 = vset.pattern.permute.xlu1 %v6656_v36  ;;  %v4213_v54 = vpop.permute.xlu1 %1839 }
 0x1d1   : > { %1965 = vperm.xlu1 %3371, %v3777_v55  }
 0x1d3   : > { %1851 = vrot.lane.b32.xlu0 %v3887_v32, %s3531_s17  ;;  %v4218_v43 = vpop.permute.xlu0 %1467 }
 0x1d4   : > { %6659 = vst [vmem:[#allocation70_spill] sm:$0xff] %v4218_v43  ;;  %v4220_v34 = vpop.permute.xlu1 %712 }
 0x1d5   : > { %6660 = vst [vmem:[#allocation71_spill] sm:$0xff] %v4220_v34  ;;  %2265 = vrot.lane.b32.xlu1 %v3994_v61, %s6580_s27 }
 0x1d6   : > { %3372 = vset.pattern.permute.xlu1 %v6661_v7 }
 0x1d7   : > { %1973 = vperm.xlu0 %3381, %v3917_v37   ;;  %v4226_v44 = vpop.permute.xlu0 %1439 }
 0x1d8   : > { %6662 = vst [vmem:[#allocation72_spill] sm:$0xff] %v4226_v44  ;;  %v4228_v28 = vpop.permute.xlu1 %748 }
 0x1d9   : > { %1329 = vrot.lane.b32.xlu1 %v3881_v31, %s3529_s15 }
 0x1db   : > { %3384 = vset.pattern.permute.xlu0 %v6663_v2  ;;  %v4233_v49 = vpop.permute.xlu0 %2241 }
 0x1dc   : > { %2130 = vperm.xlu0 %3384, %v3736_v47   ;;  %v4236_v43 = vpop.permute.xlu1 %963 }
 0x1dd   : > { %1331 = vrot.lane.b32.xlu1 %v4045_v58, %s3529_s15 }
 0x1df   : > { %v4240_v34 = vpop.permute.xlu0 %1353 }
 0x1e0   : > { %6664 = vst [vmem:[#allocation73_spill] sm:$0xff] %v4240_v34  ;;  %2162 = vperm.xlu0 %3384, %v3759_v51   ;;  %v4243_v44 = vpop.permute.xlu1 %1164 }
 0x1e1   : > { %1355 = vrot.lane.b32.xlu1 %v4103_v24, %s3529_s15 }
 0x1e3   : > { %v4247_v5 = vpop.permute.xlu0 %2050 }
 0x1e4   : > { %6665 = vst [vmem:[#allocation74_spill] sm:$0xff] %v4247_v5  ;;  %2166 = vperm.xlu0 %3384, %v3777_v55   ;;  %v4250_v62 = vpop.permute.xlu1 %1365  ;;  %v4263_v5 = vadd.f32 %v3852_v22, %v3986_v59 }
 0x1e5   : > { %1740 = vperm.xlu1 %3372, %v3752_v50  }
 0x1e6   : > { %6668 = vst [vmem:[#allocation76_spill] sm:$0xff] %v4263_v5 }
 0x1e7   : > { %v4253_v42 = vpop.permute.xlu0 %1475 }
 0x1e8   : > { %6666 = vst [vmem:[#allocation75_spill] sm:$0xff] %v4253_v42  ;;  %2138 = vperm.xlu0 %3384, %v3792_v56   ;;  %v4256_v34 = vpop.permute.xlu1 %1662 }
 0x1e9   : > { %2026 = vrot.lane.b32.xlu1 %v3828_v12, %s6582_s18 }
 0x1ea   : > { %3373 = vset.pattern.permute.xlu1 %v6667_v40 }
 0x1ec   : > { %2052 = vrot.lane.b32.xlu0 %v3887_v32, %s6582_s18  ;;  %v4267_v21 = vpop.permute.xlu0 %1527  ;;  %v4269_v38 = vpop.permute.xlu1 %1863 }
 0x1ed   : > { %6669 = vst [vmem:[#allocation77_spill] sm:$0xff] %v4267_v21  ;;  %728 = vrot.lane.b32.xlu1 %v4263_v5, %s3527_s21  ;;  %v6675_v21 = vmov 8  }
 0x1f0   : > { %1642 = vrot.lane.b32.xlu0 %v4263_v5, %s3530_s16  ;;  %v4275_v42 = vpop.permute.xlu0 %1559  ;;  %v4277_v40 = vpop.permute.xlu1 %1142 }
 0x1f1   : > { %6670 = vst [vmem:[#allocation78_spill] sm:$0xff] %v4277_v40  ;;  %752 = vrot.lane.b32.xlu1 %v4079_v25, %s3527_s21 }
 0x1f4   : > { %1666 = vrot.lane.b32.xlu0 %v4079_v25, %s3530_s16  ;;  %v4283_v22 = vpop.permute.xlu0 %1531  ;;  %v4285_v59 = vpop.permute.xlu1 %714 }
 0x1f5   : > { %6671 = vst [vmem:[#allocation79_spill] sm:$0xff] %v4283_v22  ;;  %6672 = vst [vmem:[#allocation80_spill] sm:$0xff] %v4285_v59  ;;  %943 = vrot.lane.b32.xlu1 %v4263_v5, %s3526_s30 }
 0x1f8   : > { %2170 = vperm.xlu0 %3384, %v3947_v41   ;;  %v4290_v12 = vpop.permute.xlu0 %1563  ;;  %v4294_v40 = vpop.permute.xlu1 %929 }
 0x1f9   : > { %6673 = vst [vmem:[#allocation81_spill] sm:$0xff] %v4290_v12  ;;  %967 = vrot.lane.b32.xlu1 %v4079_v25, %s3526_s30  ;;  %6674 = vst [vmem:[#allocation82_spill] sm:$0xff] %v4294_v40 }
 0x1fc   : > { %3385 = vset.pattern.permute.xlu0 %v6675_v21  ;;  %v4297_v18 = vpop.permute.xlu0 %1535  ;;  %v4303_v22 = vpop.permute.xlu1 %750 }
 0x1fd   : > { %6676 = vst [vmem:[#allocation83_spill] sm:$0xff] %v4297_v18  ;;  %2331 = vperm.xlu0 %3385, %v3736_v47   ;;  %1471 = vperm.xlu1 %3373, %v3947_v41   ;;  %6678 = vst [vmem:[#allocation85_spill] sm:$0xff] %v4303_v22 }
 0x200   : > { %v4301_v59 = vpop.permute.xlu0 %2227  ;;  %v4314_v18 = vpop.permute.xlu1 %965 }
 0x201   : > { %6677 = vst [vmem:[#allocation84_spill] sm:$0xff] %v4301_v59  ;;  %2363 = vperm.xlu0 %3385, %v3759_v51   ;;  %1640 = vrot.lane.b32.xlu1 %v3902_v35, %s3530_s16  ;;  %6680 = vst [vmem:[#allocation87_spill] sm:$0xff] %v4314_v18  ;;  %v6689_v18 = vmov 0  }
 0x202   : > { %3375 = vset.pattern.permute.xlu1 %v6656_v36 }
 0x204   : > { %v4309_v12 = vpop.permute.xlu0 %730  ;;  %v4323_v22 = vpop.permute.xlu1 %1166 }
 0x205   : > { %6679 = vst [vmem:[#allocation86_spill] sm:$0xff] %v4309_v12  ;;  %2339 = vperm.xlu0 %3385, %v3792_v56   ;;  %1664 = vrot.lane.b32.xlu1 %v4069_v16, %s3530_s16  ;;  %6683 = vst [vmem:[#allocation90_spill] sm:$0xff] %v4323_v22 }
 0x208   : > { %v4316_v40 = vpop.permute.xlu0 %945 }
 0x209   : > { %6681 = vst [vmem:[#allocation88_spill] sm:$0xff] %v4316_v40  ;;  %2231 = vrot.lane.b32.xlu0 %v4045_v58, %s6580_s27  ;;  %1937 = vperm.xlu1 %3375, %v3792_v56   ;;  %v4334_v40 = vpop.permute.xlu1 %738 }
 0x20a   : > { %6685 = vst [vmem:[#allocation92_spill] sm:$0xff] %v4334_v40 }
 0x20c   : > { %v4321_v51 = vpop.permute.xlu0 %1168 }
 0x20d   : > { %6682 = vst [vmem:[#allocation89_spill] sm:$0xff] %v4321_v51  ;;  %2255 = vrot.lane.b32.xlu0 %v4103_v24, %s6580_s27  ;;  %1941 = vperm.xlu1 %3375, %v3752_v50  }
 0x210   : > { %v4328_v12 = vpop.permute.xlu0 %754 }
 0x211   : > { %6684 = vst [vmem:[#allocation91_spill] sm:$0xff] %v4328_v12  ;;  %1867 = vrot.lane.b32.xlu0 %v4079_v25, %s3531_s17  ;;  %2251 = vrot.lane.b32.xlu1 %v3842_v19, %s6580_s27  ;;  %v4344_v12 = vpop.permute.xlu1 %953 }
 0x212   : > { %3377 = vset.pattern.permute.xlu1 %v6640_v9  ;;  %6688 = vst [vmem:[#allocation95_spill] sm:$0xff] %v4344_v12 }
 0x214   : > { %v4337_v51 = vpop.permute.xlu0 %969 }
 0x215   : > { %6686 = vst [vmem:[#allocation93_spill] sm:$0xff] %v4337_v51  ;;  %2371 = vperm.xlu0 %3385, %v3947_v41   ;;  %1144 = vrot.lane.b32.xlu1 %v4263_v5, %s3528_s14 }
 0x218   : > { %v4342_v22 = vpop.permute.xlu0 %1567 }
 0x219   : > { %6687 = vst [vmem:[#allocation94_spill] sm:$0xff] %v4342_v22  ;;  %3388 = vset.pattern.permute.xlu0 %v6689_v18  ;;  %1146 = vrot.lane.b32.xlu1 %v4057_v10, %s3528_s14  ;;  %v2426_v22 = vld [vmem:[%s6388_s8] sm:$0xff] }
 0x21a   : > { %817 = vperm.xlu0 %3388, %v3736_v47  }
 0x21d   : > { %v4350_v40 = vpop.permute.xlu0 %1728  ;;  %v4352_v9 = vpop.permute.xlu1 %872  ;;  %1170 = vrot.lane.b32.xlu1 %v4091_v60, %s3528_s14 }
 0x21e   : > { %6690 = vst [vmem:[#allocation96_spill] sm:$0xff] %v4350_v40  ;;  %6691 = vst [vmem:[#allocation97_spill] sm:$0xff] %v4352_v9  ;;  %827 = vperm.xlu0 %3388, %v3792_v56   ;;  %v2434_v56 = vld [vmem:[%s6388_s8 + $0x40] sm:$0xff] }
 0x221   : > { %v4360_v51 = vpop.permute.xlu0 %1760  ;;  %1571 = vperm.xlu1 %3377, %v3917_v37  }
 0x222   : > { %v4363_v12 = vpop.permute.xlu1 %1069  ;;  %2440 = vperm.xlu0 %3388, %v2426_v22  }
 0x223   : > { %6692 = vst [vmem:[#allocation98_spill] sm:$0xff] %v4363_v12  ;;  %v2427_v12 = vld [vmem:[%s6388_s8 + $0x8] sm:$0xff] }
 0x225   : > { %v4365_v47 = vpop.permute.xlu0 %1732  ;;  %1841 = vrot.lane.b32.xlu1 %v3902_v35, %s3531_s17 }
 0x226   : > { %6693 = vst [vmem:[#allocation99_spill] sm:$0xff] %v4365_v47  ;;  %v4369_v9 = vpop.permute.xlu1 %1343  ;;  %867 = vperm.xlu0 %3388, %v3947_v41   ;;  %3378 = vset.pattern.permute.xlu1 %v6675_v21 }
 0x227   : > { %6694 = vst [vmem:[#allocation100_spill] sm:$0xff] %v4369_v9 }
 0x229   : > { %v4376_v59 = vpop.permute.xlu0 %1764  ;;  %2367 = vperm.xlu1 %3378, %v3777_v55   ;;  %v2435_v55 = vld [vmem:[%s6388_s8 + $0x48] sm:$0xff] }
 0x22a   : > { %6695 = vst [vmem:[#allocation101_spill] sm:$0xff] %v4376_v59  ;;  %v4379_v22 = vpop.permute.xlu1 %1367  ;;  %2480 = vperm.xlu0 %3388, %v2434_v56  }
 0x22b   : > { %6696 = vst [vmem:[#allocation102_spill] sm:$0xff] %v4379_v22 }
 0x22d   : > { %v4384_v9 = vpop.permute.xlu0 %1736  ;;  %1628 = vrot.lane.b32.xlu1 %v4045_v58, %s3530_s16 }
 0x22e   : > { %6697 = vst [vmem:[#allocation103_spill] sm:$0xff] %v4384_v9  ;;  %v4388_v47 = vpop.permute.xlu1 %2040  ;;  %2445 = vperm.xlu0 %3388, %v2427_v12   ;;  %3379 = vset.pattern.permute.xlu1 %v6663_v2  ;;  %v2429_v9 = vld [vmem:[%s6388_s8 + $0x18] sm:$0xff] }
 0x231   : > { %v4394_v59 = vpop.permute.xlu0 %1865  ;;  %1652 = vrot.lane.b32.xlu1 %v4103_v24, %s3530_s16 }
 0x232   : > { %6698 = vst [vmem:[#allocation104_spill] sm:$0xff] %v4394_v59  ;;  %v4398_v56 = vpop.permute.xlu1 %2064  ;;  %2485 = vperm.xlu0 %3388, %v2435_v55  }
 0x235   : > { %v4403_v22 = vpop.permute.xlu0 %1626  ;;  %2142 = vperm.xlu1 %3379, %v3752_v50  }
 0x236   : > { %6699 = vst [vmem:[#allocation105_spill] sm:$0xff] %v4403_v22  ;;  %v4406_v12 = vpop.permute.xlu1 %1130  ;;  %2455 = vperm.xlu0 %3388, %v2429_v9  }
 0x237   : > { %6700 = vst [vmem:[#allocation106_spill] sm:$0xff] %v4406_v12 }
 0x239   : > { %v4408_v19 = vpop.permute.xlu0 %1650  ;;  %1345 = vrot.lane.b32.xlu1 %v4263_v5, %s3529_s15 }
 0x23a   : > { %6701 = vst [vmem:[#allocation107_spill] sm:$0xff] %v4408_v19  ;;  %v4412_v59 = vpop.permute.xlu1 %1154  ;;  %2046 = vrot.lane.b32.xlu0 %v4057_v10, %s6582_s18  ;;  %3380 = vset.pattern.permute.xlu1 %v6661_v7 }
 0x23b   : > { %6702 = vst [vmem:[#allocation108_spill] sm:$0xff] %v4412_v59 }
 0x23d   : > { %v4417_v55 = vpop.permute.xlu0 %1347  ;;  %1369 = vrot.lane.b32.xlu1 %v4079_v25, %s3529_s15 }
 0x23e   : > { %6703 = vst [vmem:[#allocation109_spill] sm:$0xff] %v4417_v55  ;;  %v4421_v22 = vpop.permute.xlu1 %1539  ;;  %2070 = vrot.lane.b32.xlu0 %v4091_v60, %s6582_s18 }
 0x23f   : > { %6704 = vst [vmem:[#allocation110_spill] sm:$0xff] %v4421_v22 }
 0x241   : > { %v4425_v9 = vpop.permute.xlu0 %1371  ;;  %1768 = vperm.xlu1 %3380, %v3947_v41  }
 0x242   : > { %6705 = vst [vmem:[#allocation111_spill] sm:$0xff] %v4425_v9  ;;  %v4428_v19 = vpop.permute.xlu1 %1825  ;;  %2247 = vrot.lane.b32.xlu0 %v4057_v10, %s6580_s27  ;;  %v2437_v9 = vld [vmem:[%s6388_s8 + $0x58] sm:$0xff] }
 0x243   : > { %6706 = vst [vmem:[#allocation112_spill] sm:$0xff] %v4428_v19 }
 0x245   : > { %v4432_v7 = vpop.permute.xlu0 %1772  ;;  %2042 = vrot.lane.b32.xlu1 %v3902_v35, %s6582_s18 }
 0x246   : > { %6707 = vst [vmem:[#allocation113_spill] sm:$0xff] %v4432_v7  ;;  %v4436_v55 = vpop.permute.xlu1 %2335  ;;  %2271 = vrot.lane.b32.xlu0 %v4091_v60, %s6580_s27  ;;  %3382 = vset.pattern.permute.xlu1 %v6675_v21 }
 0x247   : > { %6708 = vst [vmem:[#allocation114_spill] sm:$0xff] %v4436_v55 }
 0x249   : > { %2066 = vrot.lane.b32.xlu1 %v4069_v16, %s6582_s18 }
 0x24a   : > { %v4446_v22 = vpop.permute.xlu0 %1933  ;;  %2495 = vperm.xlu0 %3388, %v2437_v9  }
 0x24b   : > { %6709 = vst [vmem:[#allocation115_spill] sm:$0xff] %v4446_v22  ;;  %v4448_v7 = vpop.permute.xlu1 %1274 }
 0x24c   : > { %6710 = vst [vmem:[#allocation116_spill] sm:$0xff] %v4448_v7 }
 0x24d   : > { %1829 = vrot.lane.b32.xlu1 %v4045_v58, %s3531_s17 }
 0x24e   : > { %v4452_v12 = vpop.permute.xlu0 %1827 }
 0x24f   : > { %6711 = vst [vmem:[#allocation117_spill] sm:$0xff] %v4452_v12 }
 0x250   : > { %v4454_v59 = vpop.permute.xlu1 %1965 }
 0x251   : > { %6712 = vst [vmem:[#allocation118_spill] sm:$0xff] %v4454_v59  ;;  %1853 = vrot.lane.b32.xlu1 %v4103_v24, %s3531_s17 }
 0x252   : > { %v4458_v55 = vpop.permute.xlu0 %1851 }
 0x253   : > { %6713 = vst [vmem:[#allocation119_spill] sm:$0xff] %v4458_v55 }
 0x254   : > { %v4460_v19 = vpop.permute.xlu1 %2265 }
 0x255   : > { %2343 = vperm.xlu1 %3382, %v3752_v50  }
 0x256   : > { %v4463_v22 = vpop.permute.xlu0 %1973 }
 0x257   : > { %6714 = vst [vmem:[#allocation120_spill] sm:$0xff] %v4463_v22  ;;  %v450_v22 = vld [vmem:[%s6383_s3 + $0x28] sm:$0xff] }
 0x258   : > { %v4465_v7 = vpop.permute.xlu1 %1329 }
 0x259   : > { %6715 = vst [vmem:[#allocation121_spill] sm:$0xff] %v4465_v7  ;;  %3383 = vset.pattern.permute.xlu1 %v6656_v36 }
 0x25a   : > { %1969 = vperm.xlu1 %3383, %v3947_v41   ;;  %v449_v41 = vld [vmem:[%s6383_s3 + $0x20] sm:$0xff] }
 0x25b   : > { %v4469_v9 = vpop.permute.xlu0 %2130 }
 0x25c   : > { %6716 = vst [vmem:[#allocation122_spill] sm:$0xff] %v4469_v9  ;;  %v4471_v12 = vpop.permute.xlu1 %1331 }
 0x25d   : > { %6717 = vst [vmem:[#allocation123_spill] sm:$0xff] %v4471_v12 }
 0x25e   : > { %2243 = vrot.lane.b32.xlu1 %v3902_v35, %s6580_s27 }
 0x25f   : > { %v4475_v55 = vpop.permute.xlu0 %2162  ;;  %3386 = vset.pattern.permute.xlu1 %v6663_v2  ;;  %v455_v2 = vpack.c.bf16 %v450_v22, %v449_v41 }
 0x260   : > { %6718 = vst [vmem:[#allocation124_spill] sm:$0xff] %v4475_v55  ;;  %v4477_v59 = vpop.permute.xlu1 %1355 }
 0x261   : > { %6719 = vst [vmem:[#allocation125_spill] sm:$0xff] %v4477_v59  ;;  %3260 = vmatmul.mubr.msk.bf16.gmra.mrb[8].mxu0 %vm509_vm0, %v455_v2 }
 0x262   : > { %2267 = vrot.lane.b32.xlu1 %v4069_v16, %s6580_s27 }
 0x263   : > { %v4482_v50 = vpop.permute.xlu0 %2166 }
 0x264   : > { %6720 = vst [vmem:[#allocation126_spill] sm:$0xff] %v4482_v50  ;;  %v4484_v36 = vpop.permute.xlu1 %1740 }
 0x265   : > { %6721 = vst [vmem:[#allocation127_spill] sm:$0xff] %v4484_v36 }
 0x266   : > { %2028 = vrot.lane.b32.xlu1 %v3881_v31, %s6582_s18 }
 0x267   : > { %v4494_v7 = vpop.permute.xlu0 %2138 }
 0x268   : > { %6722 = vst [vmem:[#allocation128_spill] sm:$0xff] %v4494_v7  ;;  %v4496_v12 = vpop.permute.xlu1 %2026 }
 0x269   : > { %6723 = vst [vmem:[#allocation129_spill] sm:$0xff] %v4496_v12 }
 0x26a   : > { %2030 = vrot.lane.b32.xlu1 %v4045_v58, %s6582_s18  ;;  %v4552_v58 = vld [vmem:[%s6382_s2] sm:$0xff] }
 0x26b   : > { %v4501_v36 = vpop.permute.xlu0 %2052 }
 0x26c   : > { %6724 = vst [vmem:[#allocation130_spill] sm:$0xff] %v4501_v36  ;;  %v4503_v50 = vpop.permute.xlu1 %728 }
 0x26d   : > { %6725 = vst [vmem:[#allocation131_spill] sm:$0xff] %v4503_v50 }
 0x26e   : > { %2054 = vrot.lane.b32.xlu1 %v4103_v24, %s6582_s18 }
 0x26f   : > { %v4507_v59 = vpop.permute.xlu0 %1642 }
 0x270   : > { %6726 = vst [vmem:[#allocation132_spill] sm:$0xff] %v4507_v59  ;;  %v4509_v16 = vpop.permute.xlu1 %752 }
 0x271   : > { %6727 = vst [vmem:[#allocation133_spill] sm:$0xff] %v4509_v16  ;;  %v756_v16 = vlaneseq }
 0x272   : > { %1644 = vrot.lane.b32.xlu1 %v4057_v10, %s3530_s16 }
 0x273   : > { %v4513_v22 = vpop.permute.xlu0 %1666  ;;  %v4535_v36 = vshrl.u32 %v756_v16, 7 }
 0x274   : > { %6728 = vst [vmem:[#allocation134_spill] sm:$0xff] %v4513_v22  ;;  %v4515_v2 = vpop.permute.xlu1 %943 }
 0x275   : > { %6729 = vst [vmem:[#allocation135_spill] sm:$0xff] %v4515_v2  ;;  %v785_v24 = vsub.s32 0, %v4535_v36  ;;  %v998_v35 = vsub.s32 1, %v4535_v36  ;;  %v1400_v9 = vsub.s32 3, %v4535_v36 }
 0x276   : > { %1668 = vrot.lane.b32.xlu1 %v4091_v60, %s3530_s16 }
 0x277   : > { %v4519_v41 = vpop.permute.xlu0 %2170 }
 0x278   : > { %6730 = vst [vmem:[#allocation136_spill] sm:$0xff] %v4519_v41  ;;  %v4521_v50 = vpop.permute.xlu1 %967 }
 0x279   : > { %6731 = vst [vmem:[#allocation137_spill] sm:$0xff] %v4521_v50 }
 0x27a   : > { %2174 = vperm.xlu1 %3386, %v3917_v37  }
 0x27c   : > { %v4524_v7 = vpop.permute.xlu0 %2331  ;;  %v4526_v59 = vpop.permute.xlu1 %1471 }
 0x27d   : > { %6732 = vst [vmem:[#allocation138_spill] sm:$0xff] %v4524_v7  ;;  %6733 = vst [vmem:[#allocation139_spill] sm:$0xff] %v4526_v59  ;;  %v2428_v59 = vld [vmem:[%s6388_s8 + $0x10] sm:$0xff] }
 0x27e   : > { %2229 = vrot.lane.b32.xlu1 %v3881_v31, %s6580_s27  ;;  %v4546_v31 = vand.u32 127, %v756_v16 }
 0x27f   : > { %3387 = vset.pattern.permute.xlu1 %v6689_v18 }
 0x280   : > { %v4530_v22 = vpop.permute.xlu0 %2363  ;;  %v4533_v2 = vpop.permute.xlu1 %1640  ;;  %vm758_vm1 = vcmp.lt.s32.totalorder %v4546_v31, 17  ;;  %vm971_vm2 = vcmp.lt.s32.totalorder %v4546_v31, 16  ;;  %vm1172_vm3 = vcmp.lt.s32.totalorder %v4546_v31, 15  ;;  %vm1373_vm4 = vcmp.lt.s32.totalorder %v4546_v31, 1 }
 0x281   : > { %6734 = vst [vmem:[#allocation140_spill] sm:$0xff] %v4530_v22  ;;  %6735 = vst [vmem:[#allocation141_spill] sm:$0xff] %v4533_v2  ;;  %v1199_v2 = vsub.s32 2, %v4535_v36  ;;  %v767_v48 = vsel %vm758_vm1, %v4198_v39, %v4228_v28  ;;  %v779_v63 = vsel %vm758_vm1, %v4228_v28, %v4198_v39  ;;  %v1898_v28 = vsub.s32 6, %v4535_v36 }
 0x282   : > { %2253 = vrot.lane.b32.xlu1 %v3887_v32, %s6580_s27  ;;  %vm1670_vm5 = vcmp.lt.s32.totalorder %v4546_v31, 127  ;;  %vm1871_vm6 = vcmp.lt.s32.totalorder %v4546_v31, 113  ;;  %vm2072_vm7 = vcmp.lt.s32.totalorder %v4546_v31, 112  ;;  %vm2273_vm8 = vcmp.lt.s32.totalorder %v4546_v31, 111 }
 0x283   : > { %v4591_v40 = vrot.slane %v4552_v58, %v1199_v2 }
 0x284   : > { %v4539_v41 = vpop.permute.xlu0 %2339  ;;  %v4544_v50 = vpop.permute.xlu1 %1664 }
 0x285   : > { %6736 = vst [vmem:[#allocation142_spill] sm:$0xff] %v4539_v41  ;;  %6737 = vst [vmem:[#allocation143_spill] sm:$0xff] %v4544_v50  ;;  %v434_v41 = vld [vmem:[%s6382_s2 + $0x8] sm:$0xff]  ;;  %v4565_v50 = vrot.slane %v4552_v58, %v785_v24 }
 0x286   : > { %2450 = vperm.xlu1 %3387, %v2428_v59   ;;  %v4567_v7 = vrot.slane %v434_v41, %v785_v24  ;;  %v4571_v59 = vrot.slane %v4552_v58, %v998_v35  ;;  %v980_v24 = vsel %vm971_vm2, %v4047_v53, %v4236_v43  ;;  %v4623_v57 = vrot.slane %v434_v41, %v1400_v9 }
 0x287   : > { %6740 = vst [vmem:[#allocation146_spill] sm:$0xff] %v4565_v50  ;;  %v807_v46 = vmul.f32 %v4565_v50, %v779_v63 }
 0x288   : > { %v4558_v32 = vpop.permute.xlu0 %2231  ;;  %v4561_v16 = vpop.permute.xlu1 %1937 }
 0x289   : > { %6738 = vst [vmem:[#allocation144_spill] sm:$0xff] %v4558_v32  ;;  %6739 = vst [vmem:[#allocation145_spill] sm:$0xff] %v4561_v16  ;;  %v4576_v32 = vrot.slane %v434_v41, %v998_v35  ;;  %v992_v16 = vsel %vm971_vm2, %v4236_v43, %v4047_v53  ;;  %v4593_v35 = vrot.slane %v434_v41, %v1199_v2  ;;  %v1697_v43 = vsub.s32 5, %v4535_v36 }
 0x28a   : > { %1843 = vrot.lane.b32.xlu1 %v4263_v5, %s3531_s17  ;;  %v1181_v2 = vsel %vm1172_vm3, %v4061_v4, %v4243_v44  ;;  %v1020_v39 = vmul.f32 %v4571_v59, %v992_v16  ;;  %v1382_v16 = vsel %vm1373_vm4, %v4081_v8, %v4250_v62 }
 0x28b   : > { %6741 = vst [vmem:[#allocation147_spill] sm:$0xff] %v4576_v32  ;;  %3389 = vset.pattern.permute.xlu1 %v6675_v21  ;;  %6743 = vst [vmem:[#allocation149_spill] sm:$0xff] %v4593_v35  ;;  %v1193_v21 = vsel %vm1172_vm3, %v4243_v44, %v4061_v4  ;;  %v808_v44 = vmul.f32 %v4567_v7, %v767_v48  ;;  %v1222_v55 = vmul.f32 %v4593_v35, %v1181_v2 }
 0x28c   : > { %v4587_v12 = vpop.permute.xlu0 %2255  ;;  %v4603_v53 = vpop.permute.xlu1 %1941  ;;  %v1221_v22 = vmul.f32 %v4591_v40, %v1193_v21  ;;  %v4643_v48 = vrot.slane %v4552_v58, %v1697_v43  ;;  %v4645_v63 = vrot.slane %v434_v41, %v1697_v43  ;;  %v2099_v21 = vsub.s32 7, %v4535_v36 }
 0x28d   : > { %6742 = vst [vmem:[#allocation148_spill] sm:$0xff] %v4587_v12  ;;  %6744 = vst [vmem:[#allocation150_spill] sm:$0xff] %v4603_v53  ;;  %v4616_v12 = vrot.slane %v4552_v58, %v1400_v9  ;;  %v1021_v53 = vmul.f32 %v4576_v32, %v980_v24  ;;  %v1394_v9 = vsel %vm1373_vm4, %v4250_v62, %v4081_v8 }
 0x28e   : > { %1845 = vrot.lane.b32.xlu1 %v4057_v10, %s3531_s17  ;;  %v4650_v2 = vrot.slane %v4552_v58, %v1898_v28  ;;  %v1092_v10 = vmul.f32 %v3879_v29, %v1020_v39  ;;  %v972_v62 = vsel %vm971_vm2, %v4015_v11, %v4083_v6  ;;  %v984_v36 = vsel %vm971_vm2, %v4083_v6, %v4015_v11 }
 0x28f   : > { %v1093_v8 = vmul.f32 %v3879_v29, %v1021_v53  ;;  %v1422_v43 = vmul.f32 %v4616_v12, %v1394_v9  ;;  %v891_v29 = vmul.f32 %v3867_v27, %v807_v46  ;;  %v892_v53 = vmul.f32 %v3867_v27, %v808_v44 }
 0x290   : > { %v4628_v4 = vpop.permute.xlu0 %1867  ;;  %v4640_v24 = vpop.permute.xlu1 %2251  ;;  %v4678_v6 = vrot.slane %v4552_v58, %v2099_v21  ;;  %v4680_v11 = vrot.slane %v434_v41, %v2099_v21  ;;  %v1691_v27 = vsel %vm1670_vm5, %v4256_v34, %v4206_v3  ;;  %v771_v58 = vsel %vm758_vm1, %v4071_v1, %v4017_v13 }
 0x291   : > { %6745 = vst [vmem:[#allocation151_spill] sm:$0xff] %v4628_v4  ;;  %6746 = vst [vmem:[#allocation152_spill] sm:$0xff] %v4640_v24  ;;  %v4652_v4 = vrot.slane %v434_v41, %v1898_v28  ;;  %v1423_v28 = vmul.f32 %v4623_v57, %v1382_v16  ;;  %v1294_v24 = vmul.f32 %v3889_v33, %v1222_v55 }
 0x292   : > { %1869 = vrot.lane.b32.xlu1 %v4091_v60, %s3531_s17  ;;  %v1293_v60 = vmul.f32 %v3889_v33, %v1221_v22  ;;  %6749 = vst [vmem:[#allocation155_spill] sm:$0xff] %v4678_v6  ;;  %6750 = vst [vmem:[#allocation156_spill] sm:$0xff] %v4680_v11  ;;  %v1679_v16 = vsel %vm1670_vm5, %v4206_v3, %v4256_v34  ;;  %v759_v33 = vsel %vm758_vm1, %v4017_v13, %v4071_v1 }
 0x293   : > { %v1116_v46 = vadd.f32 %v1092_v10, %v891_v29  ;;  %v1117_v55 = vadd.f32 %v1093_v8, %v892_v53  ;;  %v1004_v22 = vmul.f32 %v4571_v59, %v984_v36  ;;  %v1005_v41 = vmul.f32 %v4576_v32, %v972_v62 }
 0x294   : > { %v4668_v39 = vpop.permute.xlu0 %2371  ;;  %v4675_v35 = vpop.permute.xlu1 %1144  ;;  %v1494_v34 = vmul.f32 %v4202_v0, %v1422_v43  ;;  %v1495_v3 = vmul.f32 %v4202_v0, %v1423_v28  ;;  %v1719_v21 = vmul.f32 %v4643_v48, %v1679_v16  ;;  %v1892_v10 = vsel %vm1871_vm6, %v4269_v38, %v4213_v54 }
 0x295   : > { %6747 = vst [vmem:[#allocation153_spill] sm:$0xff] %v4668_v39  ;;  %6748 = vst [vmem:[#allocation154_spill] sm:$0xff] %v4675_v35  ;;  %v1317_v44 = vadd.f32 %v1293_v60, %v1116_v46  ;;  %v1318_v9 = vadd.f32 %v1294_v24, %v1117_v55  ;;  %v1720_v39 = vmul.f32 %v4645_v63, %v1691_v27 }
 0x296   : > { %2375 = vperm.xlu1 %3389, %v3917_v37   ;;  %v1880_v37 = vsel %vm1871_vm6, %v4213_v54, %v4269_v38  ;;  %v1590_v0 = vmul.f32 %v4275_v42, %v3855_v23  ;;  %v1591_v13 = vmul.f32 %v4275_v42, %v3994_v61  ;;  %v791_v60 = vmul.f32 %v4565_v50, %v771_v58 }
 0x297   : > { %v792_v24 = vmul.f32 %v4567_v7, %v759_v33  ;;  %v1185_v8 = vsel %vm1172_vm3, %v4093_v17, %v4022_v14  ;;  %v1518_v54 = vadd.f32 %v1494_v34, %v1317_v44  ;;  %v1519_v38 = vadd.f32 %v1495_v3, %v1318_v9 }
 0x298   : > { %v4705_v35 = vpop.permute.xlu1 %1146  ;;  %v1791_v23 = vmul.f32 %v4360_v51, %v1719_v21  ;;  %v1792_v42 = vmul.f32 %v4360_v51, %v1720_v39  ;;  %v1076_v61 = vmul.f32 %v3848_v20, %v1004_v22  ;;  %v1077_v62 = vmul.f32 %v3848_v20, %v1005_v41 }
 0x299   : > { %6751 = vst [vmem:[#allocation157_spill] sm:$0xff] %v4705_v35  ;;  %v818_v1 = vpop.permute.xlu0 %817  ;;  %v1920_v36 = vmul.f32 %v4650_v2, %v1880_v37  ;;  %v1921_v43 = vmul.f32 %v4652_v4, %v1892_v10  ;;  %v1614_v29 = vadd.f32 %v1590_v0, %v1518_v54  ;;  %v1615_v53 = vadd.f32 %v1591_v13, %v1519_v38  ;;  %v6755_v10 = vld [vmem:[#allocation149_spill] sm:$0xff] }
 0x29a   : > { %2044 = vrot.lane.b32.xlu1 %v4263_v5, %s6582_s18  ;;  %v2081_v16 = vsel %vm2072_vm7, %v4388_v47, %v4398_v56  ;;  %v2093_v51 = vsel %vm2072_vm7, %v4398_v56, %v4388_v47  ;;  %v1173_v20 = vsel %vm1172_vm3, %v4022_v14, %v4093_v17  ;;  %v1205_v27 = vmul.f32 %v4591_v40, %v1185_v8 }
 0x29b   : > { %3390 = vset.pattern.permute.xlu1 %v6689_v18  ;;  %v1374_v33 = vsel %vm1373_vm4, %v4024_v15, %v4105_v52  ;;  %v1386_v58 = vsel %vm1373_vm4, %v4105_v52, %v4024_v15  ;;  %v1815_v47 = vadd.f32 %v1791_v23, %v1614_v29  ;;  %v1816_v56 = vadd.f32 %v1792_v42, %v1615_v53  ;;  %v6757_v53 = vld [vmem:[#allocation48_spill] sm:$0xff] }
 0x29c   : > { %v4735_v28 = vpop.permute.xlu1 %1170  ;;  %v2282_v14 = vsel %vm2273_vm8, %v4233_v49, %v4460_v19  ;;  %v2294_v17 = vsel %vm2273_vm8, %v4460_v19, %v4233_v49  ;;  %v2121_v46 = vmul.f32 %v4678_v6, %v2081_v16  ;;  %v2122_v55 = vmul.f32 %v4680_v11, %v2093_v51  ;;  %v4785_v19 = vld [vmem:[%s6382_s2 + $0x10] ss:$0 sm:$0xff]  ;;  %v4790_v49 = vld [vmem:[%s6382_s2 + $0x18] ss:$0 sm:$0xff] }
 0x29d   : > { %6752 = vst [vmem:[#allocation158_spill] sm:$0xff] %v4735_v28  ;;  %v4745_v39 = vpop.permute.xlu0 %827  ;;  %v875_v52 = vmul.f32 %v818_v1, %v791_v60  ;;  %v876_v15 = vmul.f32 %v818_v1, %v792_v24  ;;  %v1671_v41 = vsel %vm1670_vm5, %v4031_v30, %v4113_v26  ;;  %v1683_v34 = vsel %vm1670_vm5, %v4113_v26, %v4031_v30  ;;  %v6754_v26 = vld [vmem:[#allocation124_spill] sm:$0xff]  ;;  %v6758_v16 = vld [vmem:[#allocation37_spill] sm:$0xff] }
 0x29e   : > { %2068 = vrot.lane.b32.xlu1 %v4079_v25, %s6582_s18  ;;  %v1992_v3 = vmul.f32 %v3956_v45, %v1920_v36  ;;  %v1993_v44 = vmul.f32 %v3956_v45, %v1921_v43  ;;  %v2322_v21 = vmul.f32 %v4785_v19, %v2282_v14  ;;  %v2323_v30 = vmul.f32 %v4790_v49, %v2294_v17  ;;  %v6756_v45 = vld [vmem:[#allocation140_spill] sm:$0xff]  ;;  %v6762_v14 = vld [vmem:[#allocation53_spill] sm:$0xff]  ;;  %s6934_s18 = smov 111  }
 0x29f   : > { %v2193_v1 = vmul.f32 %v6754_v26, %v2121_v46  ;;  %v2194_v37 = vmul.f32 %v6754_v26, %v2122_v55  ;;  %v1206_v0 = vmul.f32 %v6755_v10, %v1173_v20  ;;  %v1406_v13 = vmul.f32 %v4616_v12, %v1386_v58  ;;  %v6760_v58 = vld [vmem:[#allocation58_spill] sm:$0xff]  ;;  %v6763_v55 = vld [vmem:[#allocation63_spill] sm:$0xff] }
 0x2a0   : > { %v4772_v22 = vpop.permute.xlu1 %1571  ;;  %v2016_v60 = vadd.f32 %v1992_v3, %v1815_v47  ;;  %v2017_v24 = vadd.f32 %v1993_v44, %v1816_v56  ;;  %v2394_v8 = vmul.f32 %v6756_v45, %v2322_v21  ;;  %v2395_v54 = vmul.f32 %v6756_v45, %v2323_v30 }
 0x2a1   : > { %6753 = vst [vmem:[#allocation159_spill] sm:$0xff] %v4772_v22  ;;  %v4794_v9 = vpop.permute.xlu0 %2440  ;;  %v1100_v38 = vadd.f32 %v1076_v61, %v875_v52  ;;  %v1101_v23 = vadd.f32 %v1077_v62, %v876_v15  ;;  %v1407_v36 = vmul.f32 %v4623_v57, %v1374_v33  ;;  %v4810_v43 = vmul.f32 %v4643_v48, %v1671_v41  ;;  %v6761_v33 = vld [vmem:[#allocation61_spill] sm:$0xff]  ;;  %v6764_v52 = vld [vmem:[#allocation35_spill] sm:$0xff]  ;;  %v2436_v41 = vld [vmem:[%s6388_s8 + $0x50] sm:$0xff] }
 0x2a2   : > { %2245 = vrot.lane.b32.xlu1 %v4263_v5, %s6580_s27  ;;  %v1704_v29 = vmul.f32 %v4645_v63, %v1683_v34  ;;  %v1872_v51 = vsel %vm1871_vm6, %v6758_v16, %v6757_v53  ;;  %v1277_v47 = vmul.f32 %v6760_v58, %v1205_v27  ;;  %v1278_v61 = vmul.f32 %v6760_v58, %v1206_v0  ;;  %v6766_v0 = vld [vmem:[#allocation55_spill] sm:$0xff]  ;;  %v6838_v5 = vld [vmem:[#allocation104_spill] sm:$0xff] }
 0x2a3   : > { %v2217_v62 = vadd.f32 %v2193_v1, %v2016_v60  ;;  %v2218_v56 = vadd.f32 %v2194_v37, %v2017_v24  ;;  %v760_v17 = vsel %vm758_vm1, %v6762_v14, %v6761_v33  ;;  %v772_v46 = vsel %vm758_vm1, %v6761_v33, %v6762_v14  ;;  %v6765_v37 = vld [vmem:[#allocation65_spill] sm:$0xff] }
 0x2a4   : > { %v4806_v42 = vpop.permute.xlu1 %1841  ;;  %v973_v27 = vsel %vm971_vm2, %v6764_v52, %v6763_v55  ;;  %v985_v15 = vsel %vm971_vm2, %v6763_v55, %v6764_v52  ;;  %v1301_v34 = vadd.f32 %v1277_v47, %v1100_v38  ;;  %v1302_v3 = vadd.f32 %v1278_v61, %v1101_v23  ;;  %v6771_v55 = vld [vmem:[#allocation57_spill] sm:$0xff] }
 0x2a5   : > { %v4817_v20 = vpop.permute.xlu0 %867  ;;  %v2418_v21 = vadd.f32 %v2394_v8, %v2217_v62  ;;  %v2419_v30 = vadd.f32 %v2395_v54, %v2218_v56  ;;  %v1884_v26 = vsel %vm1871_vm6, %v6757_v53, %v6758_v16  ;;  %v1904_v1 = vmul.f32 %v4650_v2, %v1872_v51  ;;  %v6767_v8 = vld [vmem:[#allocation68_spill] sm:$0xff] }
 0x2a6   : > { %6759 = vst [vmem:[#allocation124_spill] sm:$0xff] %v4817_v20  ;;  %2269 = vrot.lane.b32.xlu1 %v4079_v25, %s6580_s27  ;;  %v1174_v60 = vsel %vm1172_vm3, %v6766_v0, %v6765_v37  ;;  %v1186_v24 = vsel %vm1172_vm3, %v6765_v37, %v6766_v0  ;;  %v1478_v54 = vmul.f32 %v6767_v8, %v1406_v13  ;;  %v6776_v37 = vld [vmem:[#allocation39_spill] sm:$0xff]  ;;  %v6837_v25 = vld [vmem:[#allocation42_spill] sm:$0xff] }
 0x2a7   : > { %v1479_v38 = vmul.f32 %v6767_v8, %v1407_v36  ;;  %v793_v16 = vmul.f32 %v4565_v50, %v772_v46  ;;  %v794_v51 = vmul.f32 %v4567_v7, %v760_v17  ;;  %v1006_v58 = vmul.f32 %v4571_v59, %v985_v15  ;;  %v6770_v46 = vld [vmem:[#allocation67_spill] sm:$0xff] }
 0x2a8   : > { %v4842_v44 = vpop.permute.xlu1 %2367  ;;  %v1007_v47 = vmul.f32 %v4576_v32, %v973_v27  ;;  %v1502_v61 = vadd.f32 %v1478_v54, %v1301_v34  ;;  %v1905_v33 = vmul.f32 %v4652_v4, %v1884_v26  ;;  %v1207_v14 = vmul.f32 %v4591_v40, %v1186_v24  ;;  %v6772_v15 = vld [vmem:[#allocation11_spill] sm:$0xff]  ;;  %v6775_v26 = vld [vmem:[#allocation50_spill] sm:$0xff]  ;;  %v6777_v24 = vld [vmem:[#allocation32_spill] sm:$0xff] }
 0x2a9   : > { %v2481_v45 = vpop.permute.xlu0 %2480  ;;  %v1503_v62 = vadd.f32 %v1479_v38, %v1302_v3  ;;  %v1208_v17 = vmul.f32 %v6755_v10, %v1174_v60  ;;  %v1375_v52 = vsel %vm1373_vm4, %v6771_v55, %v6770_v46  ;;  %v1387_v27 = vsel %vm1373_vm4, %v6770_v46, %v6771_v55  ;;  %v6774_v3 = vld [vmem:[#allocation17_spill] sm:$0xff]  ;;  %v6778_v54 = vld [vmem:[#allocation20_spill] sm:$0xff] }
 0x2aa   : > { %v4859_v23 = vadd.f32 %v2481_v45, %v2418_v21  ;;  %v4861_v53 = vadd.f32 %v2481_v45, %v2419_v30  ;;  %2490 = vperm.xlu1 %3390, %v2436_v41   ;;  %v6773_v41 = vld [vmem:[#allocation77_spill] sm:$0xff]  ;;  %v2073_v0 = vsel %vm2072_vm7, %v6776_v37, %v6775_v26  ;;  %v2085_v60 = vsel %vm2072_vm7, %v6775_v26, %v6776_v37 }
 0x2ab   : > { %v1574_v34 = vmul.f32 %v6773_v41, %v6772_v15  ;;  %v1575_v21 = vmul.f32 %v6773_v41, %v6774_v3  ;;  %v1078_v45 = vmul.f32 %v6777_v24, %v1006_v58  ;;  %v1079_v8 = vmul.f32 %v6777_v24, %v1007_v47  ;;  %v6779_v15 = vld [vmem:[#allocation22_spill] sm:$0xff]  ;;  %v6780_v58 = vld [vmem:[#allocation52_spill] sm:$0xff]  ;;  %v6781_v37 = vld [vmem:[#allocation41_spill] sm:$0xff] }
 0x2ac   : > { %6768 = vst [vmem:[#allocation149_spill] sm:$0xff] %v4859_v23  ;;  %6769 = vst [vmem:[#allocation140_spill] sm:$0xff] %v4861_v53  ;;  %v2522_v13 = vmul.f32 %v4859_v23, %v4859_v23  ;;  %v2523_v36 = vmul.f32 %v4861_v53, %v4861_v53  ;;  %v4871_v56 = vpop.permute.xlu1 %1628  ;;  %v877_v38 = vmul.f32 %v6778_v54, %v793_v16  ;;  %v6782_v47 = vld [vmem:[#allocation96_spill] sm:$0xff] }
 0x2ad   : > { %v878_v46 = vmul.f32 %v6778_v54, %v794_v51  ;;  %v1598_v55 = vadd.f32 %v1574_v34, %v1502_v61  ;;  %v1279_v41 = vmul.f32 %v6779_v15, %v1207_v14  ;;  %v1280_v3 = vmul.f32 %v6779_v15, %v1208_v17 }
 0x2ae   : > { %v2530_v30 = vadd.f32 %v2523_v36, %v2522_v13  ;;  %v1599_v13 = vadd.f32 %v1575_v21, %v1503_v62  ;;  %v1408_v18 = vmul.f32 %v4616_v12, %v1387_v27  ;;  %v1409_v26 = vmul.f32 %v4623_v57, %v1375_v52  ;;  %v6783_v27 = vld [vmem:[#allocation69_spill] sm:$0xff]  ;;  %v6784_v21 = vld [vmem:[#allocation36_spill] sm:$0xff] }
 0x2af   : > { %v2274_v16 = vsel %vm2273_vm8, %v6781_v37, %v6780_v58  ;;  %v2286_v51 = vsel %vm2273_vm8, %v6780_v58, %v6781_v37  ;;  %v1775_v61 = vmul.f32 %v6782_v47, %v4810_v43  ;;  %v1776_v62 = vmul.f32 %v6782_v47, %v1704_v29  ;;  %v6786_v29 = vld [vmem:[#allocation23_spill] sm:$0xff] }
 0x2b0   : > { %2531 = vadd.xlane.f32.xlu0 %v2530_v30  ;;  %v4900_v36 = vpop.permute.xlu1 %1652  ;;  %v1102_v14 = vadd.f32 %v1078_v45, %v877_v38  ;;  %v1103_v17 = vadd.f32 %v1079_v8, %v878_v46  ;;  %v1480_v34 = vmul.f32 %v6783_v27, %v1408_v18  ;;  %v1481_v52 = vmul.f32 %v6783_v27, %v1409_v26  ;;  %v6785_v30 = vld [vmem:[#allocation59_spill] sm:$0xff] }
 0x2b1   : > { %v1672_v24 = vsel %vm1670_vm5, %v6785_v30, %v6784_v21  ;;  %v1684_v54 = vsel %vm1670_vm5, %v6784_v21, %v6785_v30  ;;  %v1799_v15 = vadd.f32 %v1775_v61, %v1598_v55  ;;  %v1800_v43 = vadd.f32 %v1776_v62, %v1599_v13  ;;  %v6787_v62 = vld [vmem:[#allocation64_spill] sm:$0xff]  ;;  %v6794_v21 = vld [vmem:[#allocation129_spill] sm:$0xff] }
 0x2b2   : > { %v1976_v45 = vmul.f32 %v6786_v29, %v1904_v1  ;;  %v1977_v18 = vmul.f32 %v6786_v29, %v1905_v33  ;;  %v1303_v8 = vadd.f32 %v1279_v41, %v1102_v14  ;;  %v1304_v38 = vadd.f32 %v1280_v3, %v1103_v17  ;;  %v6788_v1 = vld [vmem:[#allocation112_spill] sm:$0xff]  ;;  %v6796_v29 = vld [vmem:[#allocation122_spill] sm:$0xff] }
 0x2b3   : > { %v2105_v46 = vmul.f32 %v4678_v6, %v2073_v0  ;;  %v2106_v26 = vmul.f32 %v4680_v11, %v2085_v60  ;;  %v2306_v37 = vmul.f32 %v4785_v19, %v2274_v16  ;;  %v2307_v47 = vmul.f32 %v4790_v49, %v2286_v51  ;;  %v6790_v16 = vld [vmem:[#allocation15_spill] sm:$0xff]  ;;  %v6792_v17 = vld [vmem:[#allocation16_spill] sm:$0xff] }
 0x2b4   : > { %v4927_v58 = vpop.permute.xlu1 %2142  ;;  %v1705_v27 = vmul.f32 %v4643_v48, %v1672_v24  ;;  %v1706_v55 = vmul.f32 %v4645_v63, %v1684_v54  ;;  %v1504_v13 = vadd.f32 %v1480_v34, %v1303_v8  ;;  %v1505_v61 = vadd.f32 %v1481_v52, %v1304_v38  ;;  %v6791_v51 = vld [vmem:[#allocation79_spill] sm:$0xff]  ;;  %v6793_v52 = vld [vmem:[#allocation74_spill] sm:$0xff] }
 0x2b5   : > { %v1873_v33 = vsel %vm1871_vm6, %v6788_v1, %v6787_v62  ;;  %v1885_v0 = vsel %vm1871_vm6, %v6787_v62, %v6788_v1  ;;  %v2000_v60 = vadd.f32 %v1976_v45, %v1799_v15  ;;  %v2001_v41 = vadd.f32 %v1977_v18, %v1800_v43  ;;  %v6795_v54 = vld [vmem:[#allocation99_spill] sm:$0xff]  ;;  %v6797_v62 = vld [vmem:[#allocation152_spill] sm:$0xff] }
 0x2b6   : > { %v1576_v14 = vmul.f32 %v6791_v51, %v6790_v16  ;;  %v1577_v34 = vmul.f32 %v6791_v51, %v6792_v17  ;;  %v2074_v30 = vsel %vm2072_vm7, %v6794_v21, %v6793_v52  ;;  %v2086_v24 = vsel %vm2072_vm7, %v6793_v52, %v6794_v21  ;;  %v6798_v1 = vld [vmem:[#allocation84_spill] sm:$0xff]  ;;  %v6800_v52 = vld [vmem:[#allocation115_spill] sm:$0xff] }
 0x2b7   : > { %v1777_v15 = vmul.f32 %v6795_v54, %v1705_v27  ;;  %v1778_v43 = vmul.f32 %v6795_v54, %v1706_v55  ;;  %v2177_v45 = vmul.f32 %v6796_v29, %v2105_v46  ;;  %v2178_v18 = vmul.f32 %v6796_v29, %v2106_v26  ;;  %v6801_v29 = vld [vmem:[#allocation138_spill] sm:$0xff] }
 0x2b8   : > { %v4945_v3 = vpop.permute.xlu1 %1345  ;;  %v1906_v8 = vmul.f32 %v4650_v2, %v1873_v33  ;;  %v1907_v38 = vmul.f32 %v4652_v4, %v1885_v0  ;;  %v2275_v16 = vsel %vm2273_vm8, %v6798_v1, %v6797_v62  ;;  %v2287_v27 = vsel %vm2273_vm8, %v6797_v62, %v6798_v1 }
 0x2b9   : > { %6789 = vst [vmem:[#allocation48_spill] sm:$0xff] %v4945_v3  ;;  %v2107_v55 = vmul.f32 %v4678_v6, %v2074_v30  ;;  %v2108_v46 = vmul.f32 %v4680_v11, %v2086_v24  ;;  %v2201_v51 = vadd.f32 %v2177_v45, %v2000_v60  ;;  %v2202_v26 = vadd.f32 %v2178_v18, %v2001_v41  ;;  %v6802_v60 = vld [vmem:[#allocation33_spill] sm:$0xff] }
 0x2ba   : > { %v1600_v33 = vadd.f32 %v1576_v14, %v1504_v13  ;;  %v1601_v0 = vadd.f32 %v1577_v34, %v1505_v61  ;;  %v1978_v21 = vmul.f32 %v6800_v52, %v1906_v8  ;;  %v1979_v54 = vmul.f32 %v6800_v52, %v1907_v38  ;;  %v6804_v8 = vld [vmem:[#allocation114_spill] sm:$0xff] }
 0x2bb   : > { %v2378_v53 = vmul.f32 %v6801_v29, %v2306_v37  ;;  %v2379_v23 = vmul.f32 %v6801_v29, %v2307_v47  ;;  %v2308_v62 = vmul.f32 %v4785_v19, %v2275_v16  ;;  %v2309_v30 = vmul.f32 %v4790_v49, %v2287_v27  ;;  %v6811_v29 = vld [vmem:[#allocation49_spill] sm:$0xff] }
 0x2bc   : > { %v4975_v17 = vpop.permute.xlu1 %1369  ;;  %v1801_v1 = vadd.f32 %v1777_v15, %v1600_v33  ;;  %v1802_v24 = vadd.f32 %v1778_v43, %v1601_v0  ;;  %v2179_v41 = vmul.f32 %v6802_v60, %v2107_v55  ;;  %v2180_v45 = vmul.f32 %v6802_v60, %v2108_v46  ;;  %v6807_v46 = vld [vmem:[#allocation87_spill] sm:$0xff]  ;;  %v6814_v60 = vld [vmem:[#allocation60_spill] sm:$0xff] }
 0x2bd   : > { %6799 = vst [vmem:[#allocation37_spill] sm:$0xff] %v4975_v17  ;;  %v2402_v13 = vadd.f32 %v2378_v53, %v2201_v51  ;;  %v2403_v61 = vadd.f32 %v2379_v23, %v2202_v26  ;;  %v2380_v37 = vmul.f32 %v6804_v8, %v2308_v62  ;;  %v2381_v47 = vmul.f32 %v6804_v8, %v2309_v30  ;;  %v2446_v53 = vpop.permute.xlu0 %2445  ;;  %v6808_v51 = vld [vmem:[#allocation54_spill] sm:$0xff]  ;;  %v6812_v62 = vld [vmem:[#allocation45_spill] sm:$0xff] }
 0x2be   : > { %v2002_v34 = vadd.f32 %v1978_v21, %v1801_v1  ;;  %v2003_v18 = vadd.f32 %v1979_v54, %v1802_v24  ;;  %v981_v26 = vsel %vm971_vm2, %v6808_v51, %v6807_v46  ;;  %v993_v33 = vsel %vm971_vm2, %v6807_v46, %v6808_v51  ;;  %v6813_v24 = vld [vmem:[#allocation62_spill] sm:$0xff] }
 0x2bf   : > { %v4990_v38 = vadd.f32 %v4794_v9, %v2402_v13  ;;  %v4993_v15 = vadd.f32 %v4794_v9, %v2403_v61  ;;  %v974_v30 = vsel %vm971_vm2, %v6812_v62, %v6811_v29  ;;  %v986_v1 = vsel %vm971_vm2, %v6811_v29, %v6812_v62  ;;  %v6815_v13 = vld [vmem:[#allocation85_spill] sm:$0xff]  ;;  %v6816_v61 = vld [vmem:[#allocation51_spill] sm:$0xff] }
 0x2c0   : > { %v4985_v14 = vpop.permute.xlu1 %1768  ;;  %v2203_v43 = vadd.f32 %v2179_v41, %v2002_v34  ;;  %v2204_v16 = vadd.f32 %v2180_v45, %v2003_v18  ;;  %v1175_v41 = vsel %vm1172_vm3, %v6814_v60, %v6813_v24  ;;  %v1187_v45 = vsel %vm1172_vm3, %v6813_v24, %v6814_v60 }
 0x2c1   : > { %6803 = vst [vmem:[#allocation58_spill] sm:$0xff] %v4985_v14  ;;  %6805 = vst [vmem:[#allocation61_spill] sm:$0xff] %v4990_v38  ;;  %v2558_v9 = vmul.f32 %v4990_v38, %v4990_v38  ;;  %v2559_v0 = vmul.f32 %v4993_v15, %v4993_v15  ;;  %v768_v34 = vsel %vm758_vm1, %v6816_v61, %v6815_v13  ;;  %v6825_v38 = vld [vmem:[#allocation24_spill] sm:$0xff] }
 0x2c2   : > { %6806 = vst [vmem:[#allocation53_spill] sm:$0xff] %v4993_v15  ;;  %v2404_v23 = vadd.f32 %v2380_v37, %v2203_v43  ;;  %v2405_v55 = vadd.f32 %v2381_v47, %v2204_v16  ;;  %v780_v18 = vsel %vm758_vm1, %v6815_v13, %v6816_v61  ;;  %v1022_v8 = vmul.f32 %v4571_v59, %v993_v33  ;;  %v6817_v47 = vld [vmem:[#allocation90_spill] sm:$0xff]  ;;  %v6836_v15 = vld [vmem:[#allocation81_spill] sm:$0xff] }
 0x2c3   : > { %v1023_v37 = vmul.f32 %v4576_v32, %v981_v26  ;;  %v6818_v43 = vld [vmem:[#allocation78_spill] sm:$0xff]  ;;  %v2566_v51 = vadd.f32 %v2559_v0, %v2558_v9  ;;  %v1008_v26 = vmul.f32 %v4571_v59, %v986_v1  ;;  %v1009_v33 = vmul.f32 %v4576_v32, %v974_v30  ;;  %v6821_v30 = vld [vmem:[#allocation25_spill] sm:$0xff] }
 0x2c4   : > { %v4995_v27 = vpop.permute.xlu1 %2042  ;;  %v5009_v52 = vadd.f32 %v2446_v53, %v2404_v23  ;;  %v5011_v21 = vadd.f32 %v2446_v53, %v2405_v55  ;;  %v1182_v16 = vsel %vm1172_vm3, %v6818_v43, %v6817_v47  ;;  %v1194_v53 = vsel %vm1172_vm3, %v6817_v47, %v6818_v43  ;;  %v6819_v47 = vld [vmem:[#allocation102_spill] sm:$0xff]  ;;  %v6820_v43 = vld [vmem:[#allocation100_spill] sm:$0xff] }
 0x2c5   : > { %v1209_v29 = vmul.f32 %v4591_v40, %v1187_v45  ;;  %v1210_v62 = vmul.f32 %v6755_v10, %v1175_v41  ;;  %v809_v24 = vmul.f32 %v4565_v50, %v780_v18  ;;  %v810_v60 = vmul.f32 %v4567_v7, %v768_v34  ;;  %v6822_v18 = vld [vmem:[#allocation28_spill] sm:$0xff] }
 0x2c6   : > { %6809 = vst [vmem:[#allocation63_spill] sm:$0xff] %v5009_v52  ;;  %6810 = vst [vmem:[#allocation35_spill] sm:$0xff] %v5011_v21  ;;  %v2560_v23 = vmul.f32 %v5009_v52, %v5009_v52  ;;  %v2561_v55 = vmul.f32 %v5011_v21, %v5011_v21  ;;  %v1223_v13 = vmul.f32 %v4591_v40, %v1194_v53  ;;  %v6824_v52 = vld [vmem:[#allocation47_spill] sm:$0xff] }
 0x2c7   : > { %v1224_v61 = vmul.f32 %v6755_v10, %v1182_v16  ;;  %v1383_v9 = vsel %vm1373_vm4, %v6820_v43, %v6819_v47  ;;  %v1395_v0 = vsel %vm1373_vm4, %v6819_v47, %v6820_v43  ;;  %v1094_v1 = vmul.f32 %v6821_v30, %v1022_v8 }
 0x2c8   : > { %v5013_v54 = vpop.permute.xlu1 %2066  ;;  %v1095_v41 = vmul.f32 %v6821_v30, %v1023_v37  ;;  %v2569_v34 = vadd.f32 %v2561_v55, %v2560_v23  ;;  %v5076_v53 = vmul.f32 %v6822_v18, %v1008_v26  ;;  %v5079_v16 = vmul.f32 %v6822_v18, %v1009_v33  ;;  %v6826_v23 = vld [vmem:[#allocation29_spill] sm:$0xff]  ;;  %v6827_v33 = vld [vmem:[#allocation26_spill] sm:$0xff] }
 0x2c9   : > { %v893_v47 = vmul.f32 %v6825_v38, %v809_v24  ;;  %v894_v8 = vmul.f32 %v6825_v38, %v810_v60  ;;  %v1424_v37 = vmul.f32 %v4616_v12, %v1395_v0  ;;  %v1425_v43 = vmul.f32 %v4623_v57, %v1383_v9  ;;  %v6828_v0 = vld [vmem:[#allocation92_spill] sm:$0xff] }
 0x2ca   : > { %v5090_v55 = vmul.f32 %v6826_v23, %v1209_v29  ;;  %v5093_v26 = vmul.f32 %v6826_v23, %v1210_v62  ;;  %v1295_v30 = vmul.f32 %v6827_v33, %v1223_v13  ;;  %v1296_v18 = vmul.f32 %v6827_v33, %v1224_v61  ;;  %v6829_v62 = vld [vmem:[#allocation80_spill] sm:$0xff]  ;;  %v6834_v23 = vld [vmem:[#allocation141_spill] sm:$0xff] }
 0x2cb   : > { %v1118_v60 = vadd.f32 %v1094_v1, %v893_v47  ;;  %v1119_v9 = vadd.f32 %v1095_v41, %v894_v8  ;;  %v762_v13 = vsel %vm758_vm1, %v6829_v62, %v6828_v0  ;;  %v774_v61 = vsel %vm758_vm1, %v6828_v0, %v6829_v62  ;;  %v6832_v41 = vld [vmem:[#allocation70_spill] sm:$0xff]  ;;  %v6833_v8 = vld [vmem:[#allocation143_spill] sm:$0xff]  ;;  %v6835_v62 = vld [vmem:[#allocation21_spill] sm:$0xff] }
 0x2cc   : > { %v5053_v46 = vpop.permute.xlu1 %1829  ;;  %v1497_v47 = vmul.f32 %v6832_v41, %v1425_v43  ;;  %v1680_v33 = vsel %vm1670_vm5, %v6834_v23, %v6833_v8  ;;  %v1692_v0 = vsel %vm1670_vm5, %v6833_v8, %v6834_v23  ;;  %v1592_v14 = vmul.f32 %v6836_v15, %v6835_v62 }
 0x2cd   : > { %v1881_v20 = vsel %vm1871_vm6, %v4806_v42, %v6838_v5  ;;  %v1893_v8 = vsel %vm1871_vm6, %v6838_v5, %v4806_v42  ;;  %v797_v23 = vmul.f32 %v4565_v50, %v774_v61  ;;  %v2094_v5 = vsel %vm2072_vm7, %v5013_v54, %v4995_v27  ;;  %v6840_v42 = vld [vmem:[#allocation108_spill] sm:$0xff] }
 0x2ce   : > { %2567 = vadd.xlane.f32.xlu1 %v2566_v51  ;;  %v6823_v51 = vld [vmem:[#allocation71_spill] sm:$0xff] }
 0x2cf   : > { %v773_v21 = vsel %vm758_vm1, %v6824_v52, %v6823_v51  ;;  %v5101_v38 = vsel %vm758_vm1, %v6823_v51, %v6824_v52  ;;  %v6831_v52 = vld [vmem:[#allocation82_spill] sm:$0xff]  ;;  %v1496_v51 = vmul.f32 %v6832_v41, %v1424_v37  ;;  %v1320_v37 = vadd.f32 %v1296_v18, %v1119_v9 }
 0x2d0   : > { %v5073_v45 = vpop.permute.xlu1 %1853  ;;  %v5104_v24 = vmul.f32 %v4565_v50, %v773_v21 }
 0x2d1   : > { %v1521_v9 = vadd.f32 %v1497_v47, %v1320_v37  ;;  %v1923_v47 = vmul.f32 %v4652_v4, %v1893_v8 }
 0x2d2   : > { %2570 = vadd.xlane.f32.xlu1 %v2569_v34  ;;  %v6830_v34 = vld [vmem:[#allocation95_spill] sm:$0xff] }
 0x2d3   : > { %v975_v21 = vsel %vm971_vm2, %v6831_v52, %v6830_v34  ;;  %v987_v1 = vsel %vm971_vm2, %v6830_v34, %v6831_v52  ;;  %v1593_v34 = vmul.f32 %v6836_v15, %v6837_v25  ;;  %v1319_v52 = vadd.f32 %v1295_v30, %v1118_v60 }
 0x2d4   : > { %v5106_v29 = vpop.permute.xlu1 %2343  ;;  %v1010_v43 = vmul.f32 %v4571_v59, %v987_v1  ;;  %v1011_v41 = vmul.f32 %v4576_v32, %v975_v21  ;;  %v798_v25 = vmul.f32 %v4567_v7, %v762_v13  ;;  %v1721_v15 = vmul.f32 %v4643_v48, %v1680_v33  ;;  %v6841_v13 = vld [vmem:[#allocation106_spill] sm:$0xff] }
 0x2d5   : > { %v1722_v30 = vmul.f32 %v4645_v63, %v1692_v0  ;;  %v1520_v60 = vadd.f32 %v1496_v51, %v1319_v52  ;;  %v2082_v21 = vsel %vm2072_vm7, %v4995_v27, %v5013_v54  ;;  %v1176_v61 = vsel %vm1172_vm3, %v6841_v13, %v6840_v42  ;;  %v6842_v33 = vld [vmem:[#allocation34_spill] sm:$0xff]  ;;  %v6843_v52 = vld [vmem:[#allocation125_spill] sm:$0xff]  ;;  %v6844_v27 = vld [vmem:[#allocation123_spill] sm:$0xff] }
 0x2d6   : > { %v1188_v1 = vsel %vm1172_vm3, %v6840_v42, %v6841_v13  ;;  %v1922_v51 = vmul.f32 %v4650_v2, %v1881_v20  ;;  %v1082_v0 = vmul.f32 %v6842_v33, %v1010_v43  ;;  %v1083_v62 = vmul.f32 %v6842_v33, %v1011_v41  ;;  %v6846_v41 = vld [vmem:[#allocation27_spill] sm:$0xff]  ;;  %v6848_v32 = vld [vmem:[#allocation126_spill] sm:$0xff] }
 0x2d7   : > { %v1377_v54 = vsel %vm1373_vm4, %v6844_v27, %v6843_v52  ;;  %v1389_v37 = vsel %vm1373_vm4, %v6843_v52, %v6844_v27  ;;  %v2123_v8 = vmul.f32 %v4678_v6, %v2082_v21  ;;  %v2124_v43 = vmul.f32 %v4680_v11, %v2094_v5  ;;  %v6847_v52 = vld [vmem:[#allocation118_spill] sm:$0xff] }
 0x2d8   : > { %v881_v33 = vmul.f32 %v6846_v41, %v797_v23  ;;  %v882_v3 = vmul.f32 %v6846_v41, %v798_v25  ;;  %v1211_v17 = vmul.f32 %v4591_v40, %v1188_v1  ;;  %v1212_v22 = vmul.f32 %v6755_v10, %v1176_v61  ;;  %v6849_v61 = vld [vmem:[#allocation30_spill] sm:$0xff] }
 0x2d9   : > { %v5152_v18 = vpop.permute.xlu1 %1969  ;;  %v1616_v50 = vadd.f32 %v1592_v14, %v1520_v60  ;;  %v1617_v35 = vadd.f32 %v1593_v34, %v1521_v9  ;;  %v1994_v27 = vmul.f32 %v6847_v52, %v1922_v51  ;;  %v1412_v21 = vmul.f32 %v4616_v12, %v1389_v37 }
 0x2da   : > { %6839 = vst [vmem:[#allocation65_spill] sm:$0xff] %v5152_v18  ;;  %v6845_v18 = vld [vmem:[#allocation101_spill] sm:$0xff]  ;;  %v1413_v5 = vmul.f32 %v4623_v57, %v1377_v54  ;;  %v2195_v25 = vmul.f32 %v6848_v32, %v2123_v8  ;;  %v2196_v1 = vmul.f32 %v6848_v32, %v2124_v43  ;;  %v1283_v14 = vmul.f32 %v6849_v61, %v1211_v17 }
 0x2db   : > { %v1793_v42 = vmul.f32 %v6845_v18, %v1721_v15  ;;  %v1794_v20 = vmul.f32 %v6845_v18, %v1722_v30  ;;  %v1995_v15 = vmul.f32 %v6847_v52, %v1923_v47  ;;  %v1106_v30 = vadd.f32 %v1082_v0, %v881_v33  ;;  %v6850_v47 = vld [vmem:[#allocation31_spill] sm:$0xff] }
 0x2dc   : > { %v1107_v18 = vadd.f32 %v1083_v62, %v882_v3  ;;  %v1284_v34 = vmul.f32 %v6849_v61, %v1212_v22  ;;  %v1484_v0 = vmul.f32 %v6850_v47, %v1412_v21  ;;  %v1485_v32 = vmul.f32 %v6850_v47, %v1413_v5  ;;  %v2486_v5 = vpop.permute.xlu0 %2485 }
 0x2dd   : > { %v2244_v13 = vpop.permute.xlu1 %2243  ;;  %v1817_v28 = vadd.f32 %v1793_v42, %v1616_v50  ;;  %v1818_v23 = vadd.f32 %v1794_v20, %v1617_v35  ;;  %v1674_v22 = vsel %vm1670_vm5, %v4871_v56, %v4900_v36  ;;  %v1686_v17 = vsel %vm1670_vm5, %v4900_v36, %v4871_v56 }
 0x2de   : > { %v1307_v20 = vadd.f32 %v1283_v14, %v1106_v30  ;;  %v1308_v8 = vadd.f32 %v1284_v34, %v1107_v18  ;;  %v1875_v43 = vsel %vm1871_vm6, %v5053_v46, %v5073_v45  ;;  %v1887_v56 = vsel %vm1871_vm6, %v5073_v45, %v5053_v46  ;;  %v6854_v14 = vld [vmem:[#allocation73_spill] sm:$0xff] }
 0x2df   : > { %v2018_v9 = vadd.f32 %v1994_v27, %v1817_v28  ;;  %v2019_v51 = vadd.f32 %v1995_v15, %v1818_v23  ;;  %v1709_v36 = vmul.f32 %v4643_v48, %v1674_v22  ;;  %v796_v52 = vmul.f32 %v4567_v7, %v5101_v38  ;;  %v6851_v27 = vld [vmem:[#allocation38_spill] sm:$0xff]  ;;  %v6855_v38 = vld [vmem:[#allocation121_spill] sm:$0xff]  ;;  %v6858_v22 = vld [vmem:[#allocation144_spill] sm:$0xff] }
 0x2e0   : > { %v6852_v15 = vld [vmem:[#allocation110_spill] sm:$0xff]  ;;  %v1508_v18 = vadd.f32 %v1484_v0, %v1307_v20  ;;  %v1509_v21 = vadd.f32 %v1485_v32, %v1308_v8  ;;  %v1910_v23 = vmul.f32 %v4650_v2, %v1875_v43  ;;  %v1376_v34 = vsel %vm1373_vm4, %v6855_v38, %v6854_v14  ;;  %v6857_v32 = vld [vmem:[#allocation148_spill] sm:$0xff] }
 0x2e1   : > { %v2268_v41 = vpop.permute.xlu1 %2267  ;;  %v2219_v28 = vadd.f32 %v2195_v25, %v2018_v9  ;;  %v2220_v62 = vadd.f32 %v2196_v1, %v2019_v51  ;;  %v1580_v30 = vmul.f32 %v6852_v15, %v6851_v27  ;;  %v1911_v25 = vmul.f32 %v4652_v4, %v1887_v56  ;;  %v6856_v9 = vld [vmem:[#allocation127_spill] sm:$0xff] }
 0x2e2   : > { %v2283_v60 = vsel %vm2273_vm8, %v2244_v13, %v2268_v41  ;;  %v2295_v3 = vsel %vm2273_vm8, %v2268_v41, %v2244_v13  ;;  %v1710_v13 = vmul.f32 %v4645_v63, %v1686_v17  ;;  %v6853_v41 = vld [vmem:[#allocation46_spill] sm:$0xff]  ;;  %v1781_v51 = vmul.f32 %v6856_v9, %v1709_v36 }
 0x2e3   : > { %v2324_v50 = vmul.f32 %v4785_v19, %v2283_v60  ;;  %v2325_v35 = vmul.f32 %v4790_v49, %v2295_v3  ;;  %v1581_v61 = vmul.f32 %v6852_v15, %v6853_v41  ;;  %v879_v60 = vmul.f32 %v4745_v39, %v5104_v24 }
 0x2e4   : > { %v880_v3 = vmul.f32 %v4745_v39, %v796_v52  ;;  %v1388_v0 = vsel %vm1373_vm4, %v6854_v14, %v6855_v38  ;;  %v2277_v39 = vsel %vm2273_vm8, %v6858_v22, %v6857_v32  ;;  %v1604_v24 = vadd.f32 %v1580_v30, %v1508_v18 }
 0x2e5   : > { %v2396_v54 = vmul.f32 %v4842_v44, %v2324_v50  ;;  %v2397_v37 = vmul.f32 %v4842_v44, %v2325_v35  ;;  %v5216_v42 = vpop.permute.xlu1 %2028  ;;  %v1782_v50 = vmul.f32 %v6856_v9, %v1710_v13  ;;  %v1605_v17 = vadd.f32 %v1581_v61, %v1509_v21 }
 0x2e6   : > { %v1104_v43 = vadd.f32 %v5076_v53, %v879_v60  ;;  %v1105_v56 = vadd.f32 %v5079_v16, %v880_v3  ;;  %v1410_v15 = vmul.f32 %v4616_v12, %v1388_v0  ;;  %v1411_v30 = vmul.f32 %v4623_v57, %v1376_v34  ;;  %v6860_v60 = vld [vmem:[#allocation107_spill] sm:$0xff]  ;;  %v6861_v3 = vld [vmem:[#allocation105_spill] sm:$0xff]  ;;  %v6864_v0 = vld [vmem:[#allocation88_spill] sm:$0xff] }
 0x2e7   : > { %v2420_v33 = vadd.f32 %v2396_v54, %v2219_v28  ;;  %v2421_v44 = vadd.f32 %v2397_v37, %v2220_v62  ;;  %v2289_v28 = vsel %vm2273_vm8, %v6857_v32, %v6858_v22  ;;  %v6859_v62 = vld [vmem:[#allocation150_spill] sm:$0xff]  ;;  %v2312_v53 = vmul.f32 %v4785_v19, %v2277_v39  ;;  %v2456_v39 = vpop.permute.xlu0 %2455 }
 0x2e8   : > { %v1982_v54 = vmul.f32 %v6859_v62, %v1910_v23  ;;  %v1983_v37 = vmul.f32 %v6859_v62, %v1911_v25  ;;  %v2313_v16 = vmul.f32 %v4790_v49, %v2289_v28  ;;  %v1306_v41 = vadd.f32 %v5093_v26, %v1105_v56  ;;  %v6867_v56 = vld [vmem:[#allocation19_spill] sm:$0xff] }
 0x2e9   : > { %v2031_v46 = vpop.permute.xlu1 %2030  ;;  %v5234_v45 = vadd.f32 %v2486_v5, %v2420_v33  ;;  %v5236_v1 = vadd.f32 %v2486_v5, %v2421_v44  ;;  %v1805_v33 = vadd.f32 %v1781_v51, %v1604_v24  ;;  %v1806_v44 = vadd.f32 %v1782_v50, %v1605_v17  ;;  %v6862_v51 = vld [vmem:[#allocation72_spill] sm:$0xff] }
 0x2ea   : > { %v2384_v61 = vmul.f32 %v5106_v29, %v2312_v53  ;;  %v2385_v14 = vmul.f32 %v5106_v29, %v2313_v16  ;;  %v1673_v9 = vsel %vm1670_vm5, %v6861_v3, %v6860_v60  ;;  %v1483_v26 = vmul.f32 %v6862_v51, %v1411_v30  ;;  %v6870_v53 = vld [vmem:[#allocation147_spill] sm:$0xff] }
 0x2eb   : > { %v2524_v35 = vmul.f32 %v5234_v45, %v5234_v45  ;;  %v2525_v47 = vmul.f32 %v5236_v1, %v5236_v1  ;;  %v2006_v18 = vadd.f32 %v1982_v54, %v1805_v33  ;;  %v2007_v21 = vadd.f32 %v1983_v37, %v1806_v44  ;;  %v6865_v54 = vld [vmem:[#allocation18_spill] sm:$0xff]  ;;  %v6866_v37 = vld [vmem:[#allocation83_spill] sm:$0xff] }
 0x2ec   : > { %v1507_v17 = vadd.f32 %v1483_v26, %v1306_v41  ;;  %v6869_v33 = vld [vmem:[#allocation86_spill] sm:$0xff] }
 0x2ed   : > { %v2055_v20 = vpop.permute.xlu1 %2054  ;;  %v2533_v8 = vadd.f32 %v2525_v47, %v2524_v35  ;;  %v6863_v47 = vld [vmem:[#allocation93_spill] sm:$0xff] }
 0x2ee   : > { %v2076_v36 = vsel %vm2072_vm7, %v2031_v46, %v2055_v20  ;;  %v2088_v13 = vsel %vm2072_vm7, %v2055_v20, %v2031_v46  ;;  %v1305_v46 = vadd.f32 %v5090_v55, %v1104_v43  ;;  %v1482_v55 = vmul.f32 %v6862_v51, %v1410_v15  ;;  %v6876_v51 = vld [vmem:[#allocation157_spill] sm:$0xff] }
 0x2ef   : > { %v2111_v52 = vmul.f32 %v4678_v6, %v2076_v36  ;;  %v2112_v27 = vmul.f32 %v4680_v11, %v2088_v13  ;;  %2534 = vadd.xlane.f32.xlu0 %v2533_v8  ;;  %v983_v32 = vsel %vm971_vm2, %v6864_v0, %v6863_v47  ;;  %v995_v22 = vsel %vm971_vm2, %v6863_v47, %v6864_v0  ;;  %v6868_v13 = vld [vmem:[#allocation91_spill] sm:$0xff]  ;;  %v6877_v0 = vld [vmem:[#allocation146_spill] sm:$0xff] }
 0x2f0   : > { %v1506_v24 = vadd.f32 %v1482_v55, %v1305_v46  ;;  %v1578_v20 = vmul.f32 %v6866_v37, %v6865_v54  ;;  %v1707_v8 = vmul.f32 %v4643_v48, %v1673_v9  ;;  %v1579_v36 = vmul.f32 %v6866_v37, %v6867_v56  ;;  %v5365_v54 = vpop.permute.xlu0 %2046  ;;  %v6879_v56 = vld [vmem:[#allocation111_spill] sm:$0xff] }
 0x2f1   : > { %v2183_v5 = vmul.f32 %v4927_v58, %v2111_v52  ;;  %v2184_v23 = vmul.f32 %v4927_v58, %v2112_v27  ;;  %v5281_v25 = vpop.permute.xlu1 %1644  ;;  %v1685_v58 = vsel %vm1670_vm5, %v6860_v60, %v6861_v3  ;;  %v770_v44 = vsel %vm758_vm1, %v6869_v33, %v6868_v13  ;;  %v6873_v60 = vld [vmem:[#allocation119_spill] sm:$0xff]  ;;  %v6874_v3 = vld [vmem:[#allocation117_spill] sm:$0xff] }
 0x2f2   : > { %v1708_v43 = vmul.f32 %v4645_v63, %v1685_v58  ;;  %v1026_v30 = vmul.f32 %v4571_v59, %v995_v22  ;;  %v1027_v16 = vmul.f32 %v6870_v53, %v983_v32  ;;  %v1602_v46 = vadd.f32 %v1578_v20, %v1506_v24  ;;  %v6875_v58 = vld [vmem:[#allocation158_spill] sm:$0xff] }
 0x2f3   : > { %v2207_v38 = vadd.f32 %v2183_v5, %v2006_v18  ;;  %v2208_v34 = vadd.f32 %v2184_v23, %v2007_v21  ;;  %v6871_v18 = vld [vmem:[#allocation130_spill] sm:$0xff]  ;;  %v782_v23 = vsel %vm758_vm1, %v6868_v13, %v6869_v33  ;;  %v1603_v41 = vadd.f32 %v1579_v36, %v1507_v17  ;;  %v6880_v36 = vld [vmem:[#allocation109_spill] sm:$0xff] }
 0x2f4   : > { %v2075_v21 = vsel %vm2072_vm7, %v5216_v42, %v6871_v18  ;;  %v2087_v5 = vsel %vm2072_vm7, %v6871_v18, %v5216_v42  ;;  %v1874_v9 = vsel %vm1871_vm6, %v6874_v3, %v6873_v60  ;;  %v1886_v42 = vsel %vm1871_vm6, %v6873_v60, %v6874_v3  ;;  %v6882_v18 = vld [vmem:[#allocation128_spill] sm:$0xff] }
 0x2f5   : > { %v5297_v50 = vpop.permute.xlu1 %1668  ;;  %v2408_v35 = vadd.f32 %v2384_v61, %v2207_v38  ;;  %v2409_v29 = vadd.f32 %v2385_v14, %v2208_v34  ;;  %v6872_v14 = vld [vmem:[#allocation103_spill] sm:$0xff]  ;;  %v1184_v55 = vsel %vm1172_vm3, %v6876_v51, %v6875_v58  ;;  %v1196_v26 = vsel %vm1172_vm3, %v6875_v58, %v6876_v51  ;;  %v6884_v51 = vld [vmem:[#allocation116_spill] sm:$0xff] }
 0x2f6   : > { %v1779_v38 = vmul.f32 %v6872_v14, %v1707_v8  ;;  %v1780_v34 = vmul.f32 %v6872_v14, %v1708_v43  ;;  %v813_v32 = vmul.f32 %v6877_v0, %v782_v23  ;;  %v814_v22 = vmul.f32 %v4567_v7, %v770_v44 }
 0x2f7   : > { %v5307_v28 = vadd.f32 %v2456_v39, %v2408_v35  ;;  %v5309_v62 = vadd.f32 %v2456_v39, %v2409_v29  ;;  %v2109_v35 = vmul.f32 %v4678_v6, %v2075_v21  ;;  %v2110_v29 = vmul.f32 %v4680_v11, %v2087_v5  ;;  %v6878_v39 = vld [vmem:[#allocation56_spill] sm:$0xff] }
 0x2f8   : > { %v1098_v24 = vmul.f32 %v6878_v39, %v1026_v30  ;;  %v1099_v17 = vmul.f32 %v6878_v39, %v1027_v16  ;;  %v1908_v37 = vmul.f32 %v4650_v2, %v1874_v9  ;;  %v1909_v20 = vmul.f32 %v4652_v4, %v1886_v42 }
 0x2f9   : > { %v5321_v52 = vpop.permute.xlu1 %2174  ;;  %v2564_v27 = vmul.f32 %v5307_v28, %v5307_v28  ;;  %v2565_v15 = vmul.f32 %v5309_v62, %v5309_v62  ;;  %v1803_v8 = vadd.f32 %v1779_v38, %v1602_v46  ;;  %v1804_v43 = vadd.f32 %v1780_v34, %v1603_v41  ;;  %v6883_v46 = vld [vmem:[#allocation97_spill] sm:$0xff] }
 0x2fa   : > { %v1385_v13 = vsel %vm1373_vm4, %v6880_v36, %v6879_v56  ;;  %v1397_v33 = vsel %vm1373_vm4, %v6879_v56, %v6880_v36  ;;  %v1227_v44 = vmul.f32 %v4591_v40, %v1196_v26  ;;  %v2181_v21 = vmul.f32 %v6882_v18, %v2109_v35  ;;  %v2071_v35 = vpop.permute.xlu0 %2070  ;;  %v6886_v36 = vld [vmem:[#allocation137_spill] sm:$0xff] }
 0x2fb   : > { %v2575_v61 = vadd.f32 %v2565_v15, %v2564_v27  ;;  %v1228_v27 = vmul.f32 %v6755_v10, %v1184_v55  ;;  %v6881_v15 = vld [vmem:[#allocation145_spill] sm:$0xff]  ;;  %v2182_v5 = vmul.f32 %v6882_v18, %v2110_v29  ;;  %v897_v41 = vmul.f32 %v6883_v46, %v813_v32  ;;  %v6885_v29 = vld [vmem:[#allocation142_spill] sm:$0xff] }
 0x2fc   : > { %v1980_v30 = vmul.f32 %v6881_v15, %v1908_v37  ;;  %v1981_v16 = vmul.f32 %v6881_v15, %v1909_v20  ;;  %v1428_v42 = vmul.f32 %v4616_v12, %v1397_v33  ;;  %v1429_v58 = vmul.f32 %v4623_v57, %v1385_v13  ;;  %v6887_v33 = vld [vmem:[#allocation135_spill] sm:$0xff] }
 0x2fd   : > { %2576 = vadd.xlane.f32.xlu0 %v2575_v61  ;;  %v2230_v47 = vpop.permute.xlu1 %2229  ;;  %v898_v61 = vmul.f32 %v6883_v46, %v814_v22  ;;  %v1299_v55 = vmul.f32 %v6884_v51, %v1227_v44  ;;  %v1300_v26 = vmul.f32 %v6884_v51, %v1228_v27  ;;  %v1122_v20 = vadd.f32 %v1098_v24, %v897_v41 }
 0x2fe   : > { %v2004_v3 = vadd.f32 %v1980_v30, %v1803_v8  ;;  %v2005_v9 = vadd.f32 %v1981_v16, %v1804_v43  ;;  %v982_v13 = vsel %vm971_vm2, %v6887_v33, %v6886_v36  ;;  %v994_v44 = vsel %vm971_vm2, %v6886_v36, %v6887_v33  ;;  %v6888_v30 = vld [vmem:[#allocation75_spill] sm:$0xff]  ;;  %v6896_v36 = vld [vmem:[#allocation98_spill] sm:$0xff] }
 0x2ff   : > { %v1123_v56 = vadd.f32 %v1099_v17, %v898_v61  ;;  %v1323_v27 = vadd.f32 %v1299_v55, %v1122_v20  ;;  %v1500_v16 = vmul.f32 %v6888_v30, %v1428_v42  ;;  %v1501_v18 = vmul.f32 %v6888_v30, %v1429_v58  ;;  %v2248_v61 = vpop.permute.xlu0 %2247  ;;  %v6891_v42 = vld [vmem:[#allocation89_spill] sm:$0xff]  ;;  %v6892_v58 = vld [vmem:[#allocation154_spill] sm:$0xff]  ;;  %v6894_v20 = vld [vmem:[#allocation159_spill] sm:$0xff] }
 0x300   : > { %v2206_v39 = vadd.f32 %v2182_v5, %v2005_v9  ;;  %v6889_v5 = vld [vmem:[#allocation133_spill] sm:$0xff]  ;;  %v1183_v51 = vsel %vm1172_vm3, %v6892_v58, %v6891_v42 }
 0x301   : > { %v2254_v23 = vpop.permute.xlu1 %2253  ;;  %v1324_v15 = vadd.f32 %v1300_v26, %v1123_v56 }
 0x302   : > { %v2276_v14 = vsel %vm2273_vm8, %v2230_v47, %v2254_v23  ;;  %v2288_v38 = vsel %vm2273_vm8, %v2254_v23, %v2230_v47  ;;  %v2205_v47 = vadd.f32 %v2181_v21, %v2004_v3  ;;  %v6890_v23 = vld [vmem:[#allocation131_spill] sm:$0xff] }
 0x303   : > { %v2310_v34 = vmul.f32 %v4785_v19, %v2276_v14  ;;  %v2311_v60 = vmul.f32 %v4790_v49, %v2288_v38  ;;  %v769_v46 = vsel %vm758_vm1, %v6890_v23, %v6889_v5  ;;  %v781_v41 = vsel %vm758_vm1, %v6889_v5, %v6890_v23 }
 0x304   : > { %v1682_v14 = vsel %vm1670_vm5, %v5281_v25, %v5297_v50  ;;  %v1694_v38 = vsel %vm1670_vm5, %v5297_v50, %v5281_v25  ;;  %v1195_v25 = vsel %vm1172_vm3, %v6891_v42, %v6892_v58  ;;  %v1524_v50 = vadd.f32 %v1500_v16, %v1323_v27  ;;  %v6897_v16 = vld [vmem:[#allocation37_spill] sm:$0xff] }
 0x305   : > { %v2382_v32 = vmul.f32 %v6885_v29, %v2310_v34  ;;  %v2383_v22 = vmul.f32 %v6885_v29, %v2311_v60  ;;  %v2451_v37 = vpop.permute.xlu1 %2450  ;;  %v1024_v34 = vmul.f32 %v4571_v59, %v994_v44  ;;  %v1025_v60 = vmul.f32 %v6870_v53, %v982_v13 }
 0x306   : > { %v1525_v55 = vadd.f32 %v1501_v18, %v1324_v15  ;;  %v1725_v26 = vmul.f32 %v4643_v48, %v1682_v14  ;;  %v1726_v29 = vmul.f32 %v4645_v63, %v1694_v38  ;;  %v1225_v44 = vmul.f32 %v4591_v40, %v1195_v25  ;;  %v6898_v18 = vld [vmem:[#allocation48_spill] sm:$0xff]  ;;  %v6899_v38 = vld [vmem:[#allocation113_spill] sm:$0xff] }
 0x307   : > { %v2406_v8 = vadd.f32 %v2382_v32, %v2205_v47  ;;  %v2407_v43 = vadd.f32 %v2383_v22, %v2206_v39  ;;  %v811_v47 = vmul.f32 %v6877_v0, %v781_v41  ;;  %v812_v39 = vmul.f32 %v4567_v7, %v769_v46  ;;  %v2272_v46 = vpop.permute.xlu0 %2271 }
 0x308   : > { %v1096_v33 = vmul.f32 %v6896_v36, %v1024_v34  ;;  %v1097_v13 = vmul.f32 %v6896_v36, %v1025_v60  ;;  %v1226_v27 = vmul.f32 %v6755_v10, %v1183_v51  ;;  %v1384_v5 = vsel %vm1373_vm4, %v6898_v18, %v6897_v16 }
 0x309   : > { %v5407_v24 = vadd.f32 %v2451_v37, %v2406_v8  ;;  %v5409_v17 = vadd.f32 %v2451_v37, %v2407_v43  ;;  %v5411_v21 = vpop.permute.xlu1 %1843  ;;  %v6893_v37 = vld [vmem:[#allocation40_spill] sm:$0xff]  ;;  %v1396_v23 = vsel %vm1373_vm4, %v6897_v16, %v6898_v18  ;;  %v2084_v41 = vsel %vm2072_vm7, %v5365_v54, %v2071_v35 }
 0x30a   : > { %v1596_v56 = vmul.f32 %v6894_v20, %v6893_v37  ;;  %v6895_v8 = vld [vmem:[#allocation44_spill] sm:$0xff]  ;;  %v2096_v14 = vsel %vm2072_vm7, %v2071_v35, %v5365_v54  ;;  %v1797_v34 = vmul.f32 %v6899_v38, %v1725_v26  ;;  %v1798_v60 = vmul.f32 %v6899_v38, %v1726_v29 }
 0x30b   : > { %v2562_v3 = vmul.f32 %v5407_v24, %v5407_v24  ;;  %v2563_v9 = vmul.f32 %v5409_v17, %v5409_v17  ;;  %v1597_v43 = vmul.f32 %v6894_v20, %v6895_v8  ;;  %v2297_v54 = vsel %vm2273_vm8, %v2272_v46, %v2248_v61  ;;  %v6901_v37 = vld [vmem:[#allocation120_spill] sm:$0xff] }
 0x30c   : > { %v1620_v15 = vadd.f32 %v1596_v56, %v1524_v50  ;;  %v2285_v50 = vsel %vm2273_vm8, %v2248_v61, %v2272_v46  ;;  %v1426_v26 = vmul.f32 %v4616_v12, %v1396_v23  ;;  %v1427_v29 = vmul.f32 %v4623_v57, %v1384_v5 }
 0x30d   : > { %v1846_v32 = vpop.permute.xlu1 %1845  ;;  %v2572_v22 = vadd.f32 %v2563_v9, %v2562_v3  ;;  %v1621_v30 = vadd.f32 %v1597_v43, %v1525_v55  ;;  %v6900_v9 = vld [vmem:[#allocation124_spill] sm:$0xff]  ;;  %v2328_v36 = vmul.f32 %v4785_v19, %v2285_v50  ;;  %v2329_v16 = vmul.f32 %v4790_v49, %v2297_v54  ;;  %v6906_v50 = vld [vmem:[#allocation151_spill] sm:$0xff] }
 0x30e   : > { %v895_v42 = vmul.f32 %v6900_v9, %v811_v47  ;;  %v896_v58 = vmul.f32 %v6900_v9, %v812_v39  ;;  %v2128_v47 = vmul.f32 %v4680_v11, %v2096_v14  ;;  %v1821_v39 = vadd.f32 %v1797_v34, %v1620_v15  ;;  %v6903_v14 = vld [vmem:[#allocation139_spill] sm:$0xff] }
 0x30f   : > { %2573 = vadd.xlane.f32.xlu1 %v2572_v22  ;;  %v2127_v22 = vmul.f32 %v4678_v6, %v2084_v41  ;;  %v6902_v41 = vld [vmem:[#allocation66_spill] sm:$0xff]  ;;  %v1498_v38 = vmul.f32 %v6903_v14, %v1426_v26  ;;  %v1499_v34 = vmul.f32 %v6903_v14, %v1427_v29  ;;  %v1882_v54 = vsel %vm1871_vm6, %v5411_v21, %v6906_v50 }
 0x310   : > { %v1120_v61 = vadd.f32 %v1096_v33, %v895_v42  ;;  %v1121_v43 = vadd.f32 %v1097_v13, %v896_v58  ;;  %v2200_v5 = vmul.f32 %v5321_v52, %v2128_v47  ;;  %v1297_v15 = vmul.f32 %v6902_v41, %v1225_v44 }
 0x311   : > { %v1870_v3 = vpop.permute.xlu1 %1869  ;;  %v2199_v18 = vmul.f32 %v5321_v52, %v2127_v22  ;;  %v6904_v52 = vld [vmem:[#allocation134_spill] sm:$0xff] }
 0x312   : > { %v1883_v51 = vsel %vm1871_vm6, %v1846_v32, %v1870_v3  ;;  %v1895_v25 = vsel %vm1871_vm6, %v1870_v3, %v1846_v32  ;;  %v1822_v32 = vadd.f32 %v1798_v60, %v1621_v30  ;;  %v1298_v30 = vmul.f32 %v6902_v41, %v1226_v27  ;;  %v2496_v27 = vpop.permute.xlu0 %2495 }
 0x313   : > { %v1926_v35 = vmul.f32 %v4650_v2, %v1883_v51  ;;  %v1927_v55 = vmul.f32 %v4652_v4, %v1895_v25  ;;  %v1321_v49 = vadd.f32 %v1297_v15, %v1120_v61  ;;  %v6905_v51 = vld [vmem:[#allocation132_spill] sm:$0xff]  ;;  %v1924_v61 = vmul.f32 %v4650_v2, %v1882_v54 }
 0x314   : > { %v1322_v9 = vadd.f32 %v1298_v30, %v1121_v43  ;;  %v1681_v44 = vsel %vm1670_vm5, %v6905_v51, %v6904_v52 }
 0x315   : > { %v1998_v20 = vmul.f32 %v6901_v37, %v1926_v35  ;;  %v1999_v56 = vmul.f32 %v6901_v37, %v1927_v55  ;;  %v2376_v8 = vpop.permute.xlu1 %2375  ;;  %v1522_v25 = vadd.f32 %v1498_v38, %v1321_v49  ;;  %v1894_v35 = vsel %vm1871_vm6, %v6906_v50, %v5411_v21  ;;  %v6910_v38 = vld [vmem:[#allocation58_spill] sm:$0xff]  ;;  %v3451_v50 = vld [vmem:[%s6382_s2 + $0x10] ss:$0 sm:$0xff] }
 0x316   : > { %v2400_v60 = vmul.f32 %v2376_v8, %v2328_v36  ;;  %v2401_v19 = vmul.f32 %v2376_v8, %v2329_v16  ;;  %v1693_v55 = vsel %vm1670_vm5, %v6904_v52, %v6905_v51  ;;  %v1523_v26 = vadd.f32 %v1499_v34, %v1322_v9  ;;  %v6912_v9 = vld [vmem:[#allocation136_spill] sm:$0xff] }
 0x317   : > { %v2022_v23 = vadd.f32 %v1998_v20, %v1821_v39  ;;  %v2023_v46 = vadd.f32 %v1999_v56, %v1822_v32  ;;  %v6907_v39 = vld [vmem:[#allocation76_spill] sm:$0xff]  ;;  %v6908_v32 = vld [vmem:[#allocation94_spill] sm:$0xff]  ;;  %v6909_v20 = vld [vmem:[#allocation43_spill] sm:$0xff]  ;;  %v1925_v43 = vmul.f32 %v4652_v4, %v1894_v35 }
 0x318   : > { %v1594_v37 = vmul.f32 %v6908_v32, %v6907_v39  ;;  %v1595_v56 = vmul.f32 %v6908_v32, %v6909_v20  ;;  %v3452_v35 = vld [vmem:[%s6382_s2 + $0x18] ss:$0 sm:$0xff] }
 0x319   : > { %v2223_v33 = vadd.f32 %v2199_v18, %v2022_v23  ;;  %v2224_v13 = vadd.f32 %v2200_v5, %v2023_v46  ;;  %v2045_v3 = vpop.permute.xlu1 %2044  ;;  %v1723_v18 = vmul.f32 %v4643_v48, %v1681_v44  ;;  %v1724_v5 = vmul.f32 %v4645_v63, %v1693_v55 }
 0x31a   : > { %v1618_v23 = vadd.f32 %v1594_v37, %v1522_v25  ;;  %v1619_v46 = vadd.f32 %v1595_v56, %v1523_v26  ;;  %v6913_v26 = vld [vmem:[#allocation153_spill] sm:$0xff] }
 0x31b   : > { %v2424_v42 = vadd.f32 %v2400_v60, %v2223_v33  ;;  %v2425_v58 = vadd.f32 %v2401_v19, %v2224_v13  ;;  %v1795_v34 = vmul.f32 %v6910_v38, %v1723_v18  ;;  %v1796_v33 = vmul.f32 %v6910_v38, %v1724_v5  ;;  %v6911_v13 = vld [vmem:[#allocation65_spill] sm:$0xff]  ;;  %v2595_v18 = vld [vmem:[%s6391_s11 + $0x8] sm:$0xff]  ;;  %v2596_v38 = vld [vmem:[%s6391_s11 + $0x10] sm:$0xff] }
 0x31c   : > { %v1996_v60 = vmul.f32 %v6911_v13, %v1924_v61  ;;  %v1997_v19 = vmul.f32 %v6911_v13, %v1925_v43  ;;  %v466_v5 = vld [vmem:[%s6384_s4 + $0x28] sm:$0xff]  ;;  %v2597_v13 = vld [vmem:[%s6391_s11 + $0x18] sm:$0xff] }
 0x31d   : > { %v5513_v29 = vadd.f32 %v2496_v27, %v2424_v42  ;;  %v5515_v22 = vadd.f32 %v2496_v27, %v2425_v58  ;;  %v2069_v47 = vpop.permute.xlu1 %2068  ;;  %v1820_v49 = vadd.f32 %v1796_v33, %v1619_v46  ;;  %v6914_v33 = vmov 2  }
 0x31e   : > { %v2083_v21 = vsel %vm2072_vm7, %v2045_v3, %v2069_v47  ;;  %v2095_v8 = vsel %vm2072_vm7, %v2069_v47, %v2045_v3  ;;  %v1819_v3 = vadd.f32 %v1795_v34, %v1618_v23  ;;  %v5590_v34 = vld [vmem:[%s6387_s7 + $0x28] sm:$0xff] }
 0x31f   : > { %v2528_v36 = vmul.f32 %v5513_v29, %v5513_v29  ;;  %v2529_v16 = vmul.f32 %v5515_v22, %v5515_v22  ;;  %v2125_v41 = vmul.f32 %v4678_v6, %v2083_v21  ;;  %v2126_v15 = vmul.f32 %v4680_v11, %v2095_v8 }
 0x320   : > { %v2020_v25 = vadd.f32 %v1996_v60, %v1819_v3  ;;  %v2021_v27 = vadd.f32 %v1997_v19, %v1820_v49  ;;  %v6915_v60 = vmov 1   ;;  %v465_v19 = vld [vmem:[%s6384_s4 + $0x20] sm:$0xff]  ;;  %v467_v3 = vld [vmem:[%s6384_s4 + $0x30] sm:$0xff]  ;;  %v468_v49 = vld [vmem:[%s6384_s4 + $0x38] sm:$0xff] }
 0x321   : > { %v2246_v30 = vpop.permute.xlu1 %2245  ;;  %v2539_v14 = vadd.f32 %v2529_v16, %v2528_v36  ;;  %v2197_v42 = vmul.f32 %v6912_v9, %v2125_v41  ;;  %v2198_v58 = vmul.f32 %v6912_v9, %v2126_v15  ;;  %v5576_v15 = vld [vmem:[%s6387_s7 + $0x20] sm:$0xff] }
 0x323   : > { %2540 = vadd.xlane.f32.xlu0 %v2539_v14  ;;  %v2221_v32 = vadd.f32 %v2197_v42, %v2020_v25  ;;  %v2222_v37 = vadd.f32 %v2198_v58, %v2021_v27  ;;  %v2594_v14 = vld [vmem:[%s6391_s11] sm:$0xff]  ;;  %v6917_v27 = vld [vmem:[#allocation61_spill] sm:$0xff] }
 0x325   : > { %v2270_v52 = vpop.permute.xlu1 %2269 }
 0x326   : > { %v2284_v51 = vsel %vm2273_vm8, %v2246_v30, %v2270_v52  ;;  %v2296_v44 = vsel %vm2273_vm8, %v2270_v52, %v2246_v30 }
 0x327   : > { %v2326_v54 = vmul.f32 %v3451_v50, %v2284_v51  ;;  %v2327_v55 = vmul.f32 %v3452_v35, %v2296_v44  ;;  %v6916_v44 = vld [vmem:[#allocation53_spill] sm:$0xff] }
 0x329   : > { %v2398_v47 = vmul.f32 %v6913_v26, %v2326_v54  ;;  %v2399_v39 = vmul.f32 %v6913_v26, %v2327_v55  ;;  %v2491_v20 = vpop.permute.xlu1 %2490  ;;  %v6918_v54 = vmov 3  }
 0x32b   : > { %v2422_v56 = vadd.f32 %v2398_v47, %v2221_v32  ;;  %v2423_v21 = vadd.f32 %v2399_v39, %v2222_v37  ;;  %v6919_v47 = vld [vmem:[#allocation35_spill] sm:$0xff] }
 0x32d   : > { %v5553_v8 = vadd.f32 %v2491_v20, %v2422_v56  ;;  %v5555_v61 = vadd.f32 %v2491_v20, %v2423_v21 }
 0x32f   : > { %v2526_v43 = vmul.f32 %v5553_v8, %v5553_v8  ;;  %v2527_v36 = vmul.f32 %v5555_v61, %v5555_v61 }
 0x331   : > { %v2536_v16 = vadd.f32 %v2527_v36, %v2526_v43 }
 0x333   : > { %2537 = vadd.xlane.f32.xlu1 %v2536_v16 }
 0x334   : > { %v5567_v23 = vpop.f32.mrb[8].mxu0 }
 0x335   : > { %v5569_v46 = vpop.f32.mrb[9].mxu0 }
 0x336   : > { %v5571_v41 = vpop.f32.mrb[10].mxu0 }
 0x337   : > { %v5578_v30 = vpop.f32.mrb[11].mxu0 }
 0x339   : > { %2605 = vperm.xlu0 %3388, %v2595_v18  }
 0x33d   : > { %496 = vperm.xlu0 %3388, %v466_v5   ;;  %v2532_v21 = vpop.xlane.xlu0 %2531 }
 0x341   : > { %837 = vperm.xlu0 %3388, %v5576_v15  }
 0x344   : > { %2600 = vperm.xlu1 %3390, %v2594_v14   ;;  %v2542_v14 = vmax.f32 %v2532_v21, 1e-24 }
 0x345   : > { %3393 = vset.pattern.permute.xlu0 %v6914_v33 }
 0x346   : > { %1250 = vperm.xlu0 %3393, %v5590_v34  }
 0x348   : > { %2610 = vperm.xlu1 %3390, %v2596_v38  }
 0x34a   : > { %3394 = vset.pattern.permute.xlu0 %v6915_v60 }
 0x34b   : > { %1045 = vperm.xlu0 %3394, %v5576_v15  }
 0x34c   : > { %2615 = vperm.xlu1 %3390, %v2597_v13  }
 0x350   : > { %491 = vperm.xlu1 %3390, %v465_v19  }
 0x354   : > { %501 = vperm.xlu1 %3390, %v467_v3  }
 0x358   : > { %506 = vperm.xlu1 %3390, %v468_v49  }
 0x35b   : > { %v2568_v9 = vpop.xlane.xlu1 %2567 }
 0x35c   : > { %v2578_v42 = vmax.f32 %v2568_v9, 1e-24  ;;  %842 = vperm.xlu1 %3390, %v5590_v34  }
 0x35e   : > { %3419 = vrsqrt.f32 %v2578_v42 }
 0x35f   : > { %v2571_v58 = vpop.xlane.xlu1 %2570 }
 0x360   : > { %v2579_v52 = vmax.f32 %v2571_v58, 1e-24  ;;  %3391 = vset.pattern.permute.xlu1 %v6915_v60 }
 0x361   : > { %1049 = vperm.xlu1 %3391, %v5590_v34  }
 0x362   : > { %3421 = vrsqrt.f32 %v2579_v52 }
 0x365   : > { %3392 = vset.pattern.permute.xlu1 %v6914_v33 }
 0x366   : > { %1246 = vperm.xlu1 %3392, %v5576_v15  }
 0x368   : > { %v3420_v51 = vpop.eup %3419 }
 0x369   : > { %v2587_v25 = vmul.f32 %v3420_v51, %v6916_v44  ;;  %v2586_v50 = vmul.f32 %v3420_v51, %v6917_v27  ;;  %v6920_v44 = vld [vmem:[#allocation149_spill] sm:$0xff]  ;;  %v6921_v27 = vld [vmem:[#allocation140_spill] sm:$0xff] }
 0x36a   : > { %3395 = vset.pattern.permute.xlu1 %v6918_v54 }
 0x36b   : > { %v2635_v35 = vpack.c.bf16 %v2587_v25, %v2587_v25  ;;  %v2634_v55 = vpack.c.bf16 %v2586_v50, %v2586_v50 }
 0x36c   : > { %v3422_v26 = vpop.eup %3421 }
 0x36d   : > { %2650 = vmatprep.subr.bf16.mxu1 %v2635_v35  ;;  %v2589_v39 = vmul.f32 %v3422_v26, %v6919_v47 }
 0x36e   : > { %2651 = vmatpush1.bf16.xpose.msra.mxu1 %v2634_v55 }
 0x36f   : > { %v2637_v32 = vpack.c.bf16 %v2589_v39, %v2589_v39 }
 0x371   : > { %2690 = vmatprep.subr.bf16.mxu1 %v2637_v32  ;;  %v6922_v32 = vld [vmem:[#allocation63_spill] sm:$0xff] }
 0x37c   : > { %v2535_v5 = vpop.xlane.xlu0 %2534 }
 0x37d   : > { %v2543_v38 = vmax.f32 %v2535_v5, 1e-24 }
 0x38a   : > { %v2577_v13 = vpop.xlane.xlu0 %2576 }
 0x38b   : > { %v2581_v19 = vmax.f32 %v2577_v13, 1e-24 }
 0x39c   : > { %v2574_v37 = vpop.xlane.xlu1 %2573 }
 0x39d   : > { %v2580_v20 = vmax.f32 %v2574_v37, 1e-24  ;;  %v2588_v37 = vmul.f32 %v3422_v26, %v6922_v32 }
 0x39f   : > { %3423 = vrsqrt.f32 %v2580_v20 }
 0x3a0   : > { %3425 = vrsqrt.f32 %v2542_v14 }
 0x3a1   : > { %3427 = vrsqrt.f32 %v2543_v38 }
 0x3a2   : > { %3429 = vrsqrt.f32 %v2581_v19 }
 0x3a9   : > { %v3424_v56 = vpop.eup %3423 }
 0x3aa   : > { %v2591_v43 = vmul.f32 %v3424_v56, %v5409_v17  ;;  %v2590_v36 = vmul.f32 %v3424_v56, %v5407_v24  ;;  %v3426_v9 = vpop.eup %3425 }
 0x3ab   : > { %v3428_v42 = vpop.eup %3427  ;;  %v2550_v25 = vmul.f32 %v3426_v9, %v6920_v44  ;;  %v2551_v50 = vmul.f32 %v3426_v9, %v6921_v27 }
 0x3ac   : > { %v2639_v16 = vpack.c.bf16 %v2591_v43, %v2591_v43  ;;  %v2638_v18 = vpack.c.bf16 %v2590_v36, %v2590_v36  ;;  %v3430_v52 = vpop.eup %3429  ;;  %v2553_v51 = vmul.f32 %v3428_v42, %v5236_v1 }
 0x3ad   : > { %v2593_v20 = vmul.f32 %v3430_v52, %v5309_v62  ;;  %v2592_v19 = vmul.f32 %v3430_v52, %v5307_v28 }
 0x3ae   : > { %2730 = vmatprep.subr.bf16.mxu0 %v2639_v16  ;;  %v2636_v16 = vpack.c.bf16 %v2588_v37, %v2588_v37  ;;  %v6927_v37 = vmov 5  }
 0x3af   : > { %2731 = vmatpush1.bf16.xpose.msra.mxu0 %v2638_v18  ;;  %v2552_v18 = vmul.f32 %v3428_v42, %v5234_v45  ;;  %v2641_v5 = vpack.c.bf16 %v2593_v20, %v2593_v20  ;;  %v6929_v20 = vld [vmem:[#allocation10_spill] sm:$0xff] }
 0x3b0   : > { %v2541_v3 = vpop.xlane.xlu0 %2540 }
 0x3b1   : > { %v2545_v49 = vmax.f32 %v2541_v3, 1e-24 }
 0x3b3   : > { %3431 = vrsqrt.f32 %v2545_v49 }
 0x3b8   : > { %v2606_v24 = vpop.permute.xlu0 %2605 }
 0x3b9   : > { %v2621_v55 = vmul.f32 %v2606_v24, %v2553_v51  ;;  %v2620_v38 = vmul.f32 %v2606_v24, %v2552_v18  ;;  %v2640_v24 = vpack.c.bf16 %v2592_v19, %v2592_v19 }
 0x3bb   : > { %v2629_v1 = vpack.c.bf16 %v2621_v55, %v2621_v55  ;;  %v2628_v9 = vpack.c.bf16 %v2620_v38, %v2620_v38 }
 0x3bd   : > { %v3432_v43 = vpop.eup %3431 }
 0x3be   : > { %v2557_v14 = vmul.f32 %v3432_v43, %v5515_v22 }
 0x3c0   : > { %v2538_v17 = vpop.xlane.xlu1 %2537 }
 0x3c1   : > { %v2544_v58 = vmax.f32 %v2538_v17, 1e-24 }
 0x3c3   : > { %3433 = vrsqrt.f32 %v2544_v58 }
 0x3c4   : > { %v2601_v35 = vpop.permute.xlu1 %2600 }
 0x3c5   : > { %v2618_v47 = vmul.f32 %v2601_v35, %v2550_v25  ;;  %v2619_v39 = vmul.f32 %v2601_v35, %v2551_v50  ;;  %v2556_v25 = vmul.f32 %v3432_v43, %v5513_v29  ;;  %v6925_v35 = vld [vmem:[#allocation13_spill] sm:$0xff] }
 0x3c7   : > { %v2626_v56 = vpack.c.bf16 %v2618_v47, %v2618_v47  ;;  %v2627_v21 = vpack.c.bf16 %v2619_v39, %v2619_v39  ;;  %v5693_v47 = vld [vmem:[%s6387_s7 + $0x38] sm:$0xff]  ;;  %v6926_v39 = vld [vmem:[#allocation14_spill] sm:$0xff] }
 0x3c8   : > { %v2611_v36 = vpop.permute.xlu1 %2610 }
 0x3c9   : > { %2682 = vmatprep.mubr.bf16.mxu1 %v2627_v21  ;;  %v6930_v21 = vld [vmem:[#allocation12_spill] sm:$0xff] }
 0x3ca   : > { %2683 = vmatmul.mubr.bf16.vlgmr.msra.gmra.mrb[12].mxu1 %v2626_v56 }
 0x3cb   : > { %2691 = vmatpush1.bf16.xpose.msra.mxu1 %v2636_v16  ;;  %2722 = vmatprep.mubr.bf16.mxu1 %v2629_v1 }
 0x3cc   : > { %2770 = vmatprep.subr.bf16.mxu1 %v2641_v5  ;;  %v2616_v26 = vpop.permute.xlu1 %2615 }
 0x3cd   : > { %v3434_v13 = vpop.eup %3433  ;;  %v2625_v62 = vmul.f32 %v2616_v26, %v2557_v14 }
 0x3ce   : > { %v2554_v3 = vmul.f32 %v3434_v13, %v5553_v8  ;;  %v2555_v49 = vmul.f32 %v3434_v13, %v5555_v61  ;;  %v497_v8 = vpop.permute.xlu0 %496  ;;  %v2624_v61 = vmul.f32 %v2616_v26, %v2556_v25 }
 0x3cf   : > { %v2633_v51 = vpack.c.bf16 %v2625_v62, %v2625_v62  ;;  %v5649_v52 = vadd.f32 %v5578_v30, %v497_v8  ;;  %v6924_v30 = vmov 4  }
 0x3d0   : > { %v2622_v17 = vmul.f32 %v2611_v36, %v2554_v3  ;;  %v2623_v45 = vmul.f32 %v2611_v36, %v2555_v49  ;;  %v492_v42 = vpop.permute.xlu1 %491  ;;  %v2632_v29 = vpack.c.bf16 %v2624_v61, %v2624_v61 }
 0x3d1   : > { %v5630_v58 = vadd.f32 %v5567_v23, %v492_v42  ;;  %v5633_v22 = vadd.f32 %v5569_v46, %v492_v42  ;;  %v5641_v23 = vadd.f32 %v5571_v41, %v497_v8  ;;  %v6923_v46 = vmov 0   ;;  %v5667_v41 = vld [vmem:[%s6387_s7 + $0x30] sm:$0xff] }
 0x3d2   : > { %v2630_v44 = vpack.c.bf16 %v2622_v17, %v2622_v17  ;;  %2723 = vmatmul.mubr.bf16.vlgmr.msra.gmra.mrb[16].mxu1 %v2628_v9  ;;  %v2631_v28 = vpack.c.bf16 %v2623_v45, %v2623_v45 }
 0x3d3   : > { %2771 = vmatpush1.bf16.xpose.msra.mxu1 %v2640_v24  ;;  %2802 = vmatprep.mubr.bf16.mxu1 %v2633_v51 }
 0x3d4   : > { %740 = vrot.lane.b32.xlu0 %v5633_v22, %s3527_s21  ;;  %716 = vrot.lane.b32.xlu1 %v5630_v58, %s3527_s21  ;;  %v502_v27 = vpop.permute.xlu1 %501 }
 0x3d5   : > { %2762 = vmatprep.mubr.bf16.mxu0 %v2631_v28  ;;  %v5722_v56 = vadd.f32 %v6929_v20, %v502_v27  ;;  %v5728_v43 = vadd.f32 %v6930_v21, %v502_v27 }
 0x3d6   : > { %2763 = vmatmul.mubr.bf16.vlgmr.msra.gmra.mrb[12].mxu0 %v2630_v44 }
 0x3d7   : > { %2901 = vmatprep.mubr.bf16.mxu0 %v6923_v46 }
 0x3d8   : > { %931 = vrot.lane.b32.xlu0 %v5630_v58, %s3526_s30  ;;  %718 = vrot.lane.b32.xlu1 %v5641_v23, %s3527_s21  ;;  %v507_v50 = vpop.permute.xlu1 %506 }
 0x3d9   : > { %v5684_v55 = vadd.f32 %v6925_v35, %v507_v50  ;;  %v5696_v32 = vadd.f32 %v6926_v39, %v507_v50 }
 0x3da   : > { %2803 = vmatmul.mubr.bf16.vlgmr.msra.gmra.mrb[20].mxu1 %v2632_v29 }
 0x3db   : > { %2951 = vmatprep.mubr.bf16.mxu1 %v6923_v46 }
 0x3dc   : > { %955 = vrot.lane.b32.xlu0 %v5633_v22, %s3526_s30  ;;  %742 = vrot.lane.b32.xlu1 %v5649_v52, %s3527_s21  ;;  %v843_v36 = vpop.permute.xlu1 %842 }
 0x3e0   : > { %1132 = vrot.lane.b32.xlu0 %v5630_v58, %s3528_s14  ;;  %933 = vrot.lane.b32.xlu1 %v5641_v23, %s3526_s30  ;;  %v1050_v1 = vpop.permute.xlu1 %1049 }
 0x3e4   : > { %1158 = vrot.lane.b32.xlu0 %v5649_v52, %s3528_s14  ;;  %957 = vrot.lane.b32.xlu1 %v5649_v52, %s3526_s30 }
 0x3e5   : > { %v1247_v5 = vpop.permute.xlu1 %1246 }
 0x3e8   : > { %1053 = vperm.xlu0 %3394, %v5667_v41   ;;  %1451 = vperm.xlu1 %3395, %v5590_v34  }
 0x3ec   : > { %3398 = vset.pattern.permute.xlu0 %v6918_v54  ;;  %1134 = vrot.lane.b32.xlu1 %v5641_v23, %s3528_s14 }
 0x3ed   : > { %1447 = vperm.xlu0 %3398, %v5576_v15   ;;  %3396 = vset.pattern.permute.xlu1 %v6924_v30 }
 0x3f0   : > { %1156 = vrot.lane.b32.xlu1 %v5633_v22, %s3528_s14 }
 0x3f1   : > { %1335 = vrot.lane.b32.xlu0 %v5641_v23, %s3529_s15 }
 0x3f4   : > { %1543 = vperm.xlu1 %3396, %v5576_v15  }
 0x3f5   : > { %1359 = vrot.lane.b32.xlu0 %v5649_v52, %s3529_s15 }
 0x3f8   : > { %3397 = vset.pattern.permute.xlu1 %v6923_v46 }
 0x3f9   : > { %847 = vperm.xlu1 %3397, %v5667_v41   ;;  %722 = vrot.lane.b32.xlu0 %v5684_v55, %s3527_s21 }
 0x3fd   : > { %852 = vperm.xlu1 %3397, %v5693_v47   ;;  %746 = vrot.lane.b32.xlu0 %v5696_v32, %s3527_s21 }
 0x401   : > { %3399 = vset.pattern.permute.xlu1 %v6915_v60  ;;  %937 = vrot.lane.b32.xlu0 %v5684_v55, %s3526_s30  ;;  %v6928_v60 = vmov 6  }
 0x402   : > { %1057 = vperm.xlu1 %3399, %v5693_v47  }
 0x405   : > { %961 = vrot.lane.b32.xlu0 %v5696_v32, %s3526_s30 }
 0x406   : > { %1333 = vrot.lane.b32.xlu1 %v5630_v58, %s3529_s15 }
 0x407   : > { %3400 = vset.pattern.permute.xlu1 %v6927_v37 }
 0x409   : > { %1459 = vperm.xlu0 %3398, %v5693_v47  }
 0x40a   : > { %1357 = vrot.lane.b32.xlu1 %v5633_v22, %s3529_s15 }
 0x40d   : > { %3404 = vset.pattern.permute.xlu0 %v6924_v30 }
 0x40e   : > { %1744 = vperm.xlu1 %3400, %v5576_v15   ;;  %1547 = vperm.xlu0 %3404, %v5590_v34  }
 0x412   : > { %3401 = vset.pattern.permute.xlu1 %v6914_v33  ;;  %v6931_v33 = vmov 7  }
 0x413   : > { %1254 = vperm.xlu1 %3401, %v5667_v41  }
 0x417   : > { %1258 = vperm.xlu1 %3401, %v5693_v47  }
 0x41b   : > { %3402 = vset.pattern.permute.xlu1 %v6928_v60 }
 0x41c   : > { %1949 = vperm.xlu1 %3402, %v5590_v34  }
 0x420   : > { %720 = vrot.lane.b32.xlu1 %v5722_v56, %s3527_s21 }
 0x421   : > { %3403 = vset.pattern.permute.xlu1 %v6918_v54  ;;  %v838_v54 = vpop.permute.xlu0 %837 }
 0x424   : > { %744 = vrot.lane.b32.xlu1 %v5728_v43, %s3527_s21  ;;  %s6933_s21 = smov 112  }
 0x425   : > { %v1251_v16 = vpop.permute.xlu0 %1250 }
 0x428   : > { %935 = vrot.lane.b32.xlu1 %v5722_v56, %s3526_s30 }
 0x429   : > { %v1046_v18 = vpop.permute.xlu0 %1045 }
 0x42c   : > { %959 = vrot.lane.b32.xlu1 %v5728_v43, %s3526_s30 }
 0x430   : > { %1455 = vperm.xlu1 %3403, %v5667_v41  }
 0x434   : > { %1630 = vrot.lane.b32.xlu1 %v5630_v58, %s3530_s16 }
 0x435   : > { %3405 = vset.pattern.permute.xlu1 %v6931_v33 }
 0x446   : > { %v741_v14 = vpop.permute.xlu0 %740  ;;  %v717_v38 = vpop.permute.xlu1 %716 }
 0x447   : > { %v763_v13 = vsel %vm758_vm1, %v717_v38, %v741_v14  ;;  %v775_v62 = vsel %vm758_vm1, %v741_v14, %v717_v38 }
 0x448   : > { %v799_v19 = vmul.f32 %v6877_v0, %v775_v62  ;;  %v800_v3 = vmul.f32 %v4567_v7, %v763_v13 }
 0x44a   : > { %v932_v26 = vpop.permute.xlu0 %931  ;;  %v719_v24 = vpop.permute.xlu1 %718  ;;  %v883_v51 = vmul.f32 %v838_v54, %v799_v19  ;;  %v884_v44 = vmul.f32 %v838_v54, %v800_v3 }
 0x44e   : > { %v956_v49 = vpop.permute.xlu0 %955  ;;  %v743_v29 = vpop.permute.xlu1 %742 }
 0x44f   : > { %v976_v9 = vsel %vm971_vm2, %v932_v26, %v956_v49  ;;  %v988_v17 = vsel %vm971_vm2, %v956_v49, %v932_v26  ;;  %v764_v54 = vsel %vm758_vm1, %v719_v24, %v743_v29 }
 0x450   : > { %v1012_v45 = vmul.f32 %v4571_v59, %v988_v17  ;;  %v1013_v42 = vmul.f32 %v6870_v53, %v976_v9  ;;  %v802_v17 = vmul.f32 %v4567_v7, %v764_v54 }
 0x452   : > { %v1084_v25 = vmul.f32 %v1046_v18, %v1012_v45  ;;  %v1085_v28 = vmul.f32 %v1046_v18, %v1013_v42  ;;  %v1133_v27 = vpop.permute.xlu0 %1132  ;;  %v934_v50 = vpop.permute.xlu1 %933  ;;  %v776_v18 = vsel %vm758_vm1, %v743_v29, %v719_v24 }
 0x453   : > { %v801_v9 = vmul.f32 %v6877_v0, %v776_v18 }
 0x454   : > { %v1108_v8 = vadd.f32 %v1084_v25, %v883_v51  ;;  %v1109_v61 = vadd.f32 %v1085_v28, %v884_v44 }
 0x456   : > { %v1159_v35 = vpop.permute.xlu0 %1158  ;;  %v958_v39 = vpop.permute.xlu1 %957 }
 0x457   : > { %v977_v14 = vsel %vm971_vm2, %v934_v50, %v958_v39  ;;  %v989_v38 = vsel %vm971_vm2, %v958_v39, %v934_v50 }
 0x458   : > { %v1014_v3 = vmul.f32 %v4571_v59, %v989_v38  ;;  %v1015_v49 = vmul.f32 %v6870_v53, %v977_v14  ;;  %v885_v38 = vmul.f32 %v843_v36, %v801_v9 }
 0x45a   : > { %v1086_v50 = vmul.f32 %v1050_v1, %v1014_v3 }
 0x467   : > { %v1452_v20 = vpop.permute.xlu1 %1451  ;;  %v5752_v21 = vpop.permute.xlu0 %1053 }
 0x46b   : > { %v1135_v26 = vpop.permute.xlu1 %1134 }
 0x46c   : > { %v5762_v13 = vpop.permute.xlu0 %1447  ;;  %v1178_v62 = vsel %vm1172_vm3, %v1135_v26, %v1159_v35  ;;  %v1190_v19 = vsel %vm1172_vm3, %v1159_v35, %v1135_v26  ;;  %v1087_v35 = vmul.f32 %v1050_v1, %v1015_v49  ;;  %v886_v26 = vmul.f32 %v843_v36, %v802_v17 }
 0x46d   : > { %v1215_v42 = vmul.f32 %v4591_v40, %v1190_v19  ;;  %v1216_v24 = vmul.f32 %v6755_v10, %v1178_v62 }
 0x46e   : > { %v1111_v3 = vadd.f32 %v1087_v35, %v886_v26 }
 0x46f   : > { %v1157_v45 = vpop.permute.xlu1 %1156  ;;  %v1287_v54 = vmul.f32 %v1251_v16, %v1215_v42  ;;  %v1288_v18 = vmul.f32 %v1251_v16, %v1216_v24 }
 0x470   : > { %v1177_v51 = vsel %vm1172_vm3, %v1133_v27, %v1157_v45  ;;  %v1189_v44 = vsel %vm1172_vm3, %v1157_v45, %v1133_v27  ;;  %v1336_v25 = vpop.permute.xlu0 %1335 }
 0x471   : > { %v1213_v28 = vmul.f32 %v4591_v40, %v1189_v44  ;;  %v1214_v29 = vmul.f32 %v6755_v10, %v1177_v51  ;;  %v1110_v51 = vadd.f32 %v1086_v50, %v885_v38 }
 0x473   : > { %v1285_v39 = vmul.f32 %v1247_v5, %v1213_v28  ;;  %v1286_v14 = vmul.f32 %v1247_v5, %v1214_v29  ;;  %v5780_v62 = vpop.permute.xlu1 %1543  ;;  %v1311_v17 = vadd.f32 %v1287_v54, %v1110_v51 }
 0x474   : > { %v1360_v19 = vpop.permute.xlu0 %1359 }
 0x475   : > { %v1309_v11 = vadd.f32 %v1285_v39, %v1108_v8  ;;  %v1310_v6 = vadd.f32 %v1286_v14, %v1109_v61  ;;  %v1379_v27 = vsel %vm1373_vm4, %v1336_v25, %v1360_v19  ;;  %v1391_v45 = vsel %vm1373_vm4, %v1360_v19, %v1336_v25 }
 0x476   : > { %v1416_v1 = vmul.f32 %v4616_v12, %v1391_v45  ;;  %v1417_v5 = vmul.f32 %v4623_v57, %v1379_v27  ;;  %v1312_v8 = vadd.f32 %v1288_v18, %v1111_v3 }
 0x478   : > { %v1488_v36 = vmul.f32 %v1452_v20, %v1416_v1  ;;  %v1489_v49 = vmul.f32 %v1452_v20, %v1417_v5  ;;  %v723_v16 = vpop.permute.xlu0 %722  ;;  %v5788_v9 = vpop.permute.xlu1 %847 }
 0x47a   : > { %v5790_v61 = vadd.f32 %v1488_v36, %v1311_v17  ;;  %v5792_v42 = vadd.f32 %v1489_v49, %v1312_v8 }
 0x47c   : > { %v747_v24 = vpop.permute.xlu0 %746  ;;  %v853_v44 = vpop.permute.xlu1 %852 }
 0x47d   : > { %v766_v25 = vsel %vm758_vm1, %v723_v16, %v747_v24  ;;  %v778_v28 = vsel %vm758_vm1, %v747_v24, %v723_v16 }
 0x47e   : > { %v805_v20 = vmul.f32 %v6877_v0, %v778_v28  ;;  %v806_v35 = vmul.f32 %v4567_v7, %v766_v25 }
 0x480   : > { %v938_v29 = vpop.permute.xlu0 %937  ;;  %v889_v19 = vmul.f32 %v853_v44, %v805_v20  ;;  %v890_v27 = vmul.f32 %v853_v44, %v806_v35 }
 0x481   : > { %v1058_v50 = vpop.permute.xlu1 %1057 }
 0x484   : > { %v962_v39 = vpop.permute.xlu0 %961 }
 0x485   : > { %v979_v14 = vsel %vm971_vm2, %v938_v29, %v962_v39  ;;  %v991_v38 = vsel %vm971_vm2, %v962_v39, %v938_v29  ;;  %v1334_v26 = vpop.permute.xlu1 %1333 }
 0x486   : > { %v1018_v54 = vmul.f32 %v4571_v59, %v991_v38  ;;  %v1019_v18 = vmul.f32 %v6870_v53, %v979_v14 }
 0x488   : > { %v1090_v45 = vmul.f32 %v1058_v50, %v1018_v54  ;;  %v1091_v51 = vmul.f32 %v1058_v50, %v1019_v18 }
 0x489   : > { %v1358_v3 = vpop.permute.xlu1 %1357 }
 0x48a   : > { %v5806_v1 = vadd.f32 %v1090_v45, %v889_v19  ;;  %v5808_v5 = vadd.f32 %v1091_v51, %v890_v27  ;;  %v1378_v36 = vsel %vm1373_vm4, %v1334_v26, %v1358_v3  ;;  %v1390_v49 = vsel %vm1373_vm4, %v1358_v3, %v1334_v26 }
 0x48b   : > { %v1414_v16 = vmul.f32 %v4616_v12, %v1390_v49  ;;  %v1415_v17 = vmul.f32 %v4623_v57, %v1378_v36 }
 0x48d   : > { %v1486_v8 = vmul.f32 %v5762_v13, %v1414_v16  ;;  %v1487_v24 = vmul.f32 %v5762_v13, %v1415_v17  ;;  %v5818_v44 = vpop.permute.xlu1 %1744 }
 0x48f   : > { %v5820_v25 = vadd.f32 %v1486_v8, %v1309_v11  ;;  %v5822_v28 = vadd.f32 %v1487_v24, %v1310_v6 }
 0x492   : > { %v5824_v29 = vpop.permute.xlu1 %1254 }
 0x496   : > { %v5826_v50 = vpop.permute.xlu1 %1258 }
 0x49b   : > { %v5828_v20 = vpop.permute.xlu1 %1949 }
 0x49d   : > { %v5830_v35 = vpop.f32.mrb[12].mxu1 }
 0x49e   : > { %v2686_v39 = vpop.f32.mrb[13].mxu1  ;;  %v2811_v14 = vsel %vm2810_vm9, %v5830_v35, -inf }
 0x49f   : > { %v721_v13 = vpop.permute.xlu1 %720  ;;  %v2687_v38 = vpop.f32.mrb[14].mxu1  ;;  %2812 = vmax.xlane.f32.xlu0 %v2811_v14 }
 0x4a0   : > { %v2688_v11 = vpop.f32.mrb[15].mxu1 }
 0x4a3   : > { %v745_v26 = vpop.permute.xlu1 %744 }
 0x4a4   : > { %v765_v6 = vsel %vm758_vm1, %v721_v13, %v745_v26  ;;  %v777_v54 = vsel %vm758_vm1, %v745_v26, %v721_v13 }
 0x4a5   : > { %v5838_v18 = vpop.f32.mrb[16].mxu1  ;;  %v803_v16 = vmul.f32 %v6877_v0, %v777_v54  ;;  %v804_v17 = vmul.f32 %v4567_v7, %v765_v6 }
 0x4a6   : > { %v2726_v19 = vpop.f32.mrb[17].mxu1  ;;  %v2814_v27 = vsel %vm2810_vm9, %v5838_v18, -inf }
 0x4a7   : > { %v936_v45 = vpop.permute.xlu1 %935  ;;  %v2727_v51 = vpop.f32.mrb[18].mxu1  ;;  %2815 = vmax.xlane.f32.xlu1 %v2814_v27  ;;  %v887_v0 = vmul.f32 %v5788_v9, %v803_v16  ;;  %v888_v7 = vmul.f32 %v5788_v9, %v804_v17 }
 0x4a8   : > { %v2728_v3 = vpop.f32.mrb[19].mxu1 }
 0x4a9   : > { %v5842_v36 = vpop.f32.mrb[12].mxu0 }
 0x4aa   : > { %v2766_v49 = vpop.f32.mrb[13].mxu0 }
 0x4ab   : > { %v2767_v8 = vpop.f32.mrb[14].mxu0  ;;  %v960_v24 = vpop.permute.xlu1 %959 }
 0x4ac   : > { %v978_v39 = vsel %vm971_vm2, %v936_v45, %v960_v24  ;;  %v990_v14 = vsel %vm971_vm2, %v960_v24, %v936_v45  ;;  %v2768_v13 = vpop.f32.mrb[15].mxu0  ;;  %v1582_v24 = vmul.f32 %v5780_v62, %v5630_v58 }
 0x4ad   : > { %v1016_v38 = vmul.f32 %v4571_v59, %v990_v14  ;;  %v1017_v11 = vmul.f32 %v6870_v53, %v978_v39  ;;  %v5852_v26 = vpop.f32.mrb[20].mxu1  ;;  %v6932_v59 = vmov 8   ;;  %v2817_v53 = vsel %vm2810_vm9, %v5842_v36, -inf }
 0x4ae   : > { %v2806_v19 = vpop.f32.mrb[21].mxu1  ;;  %v1583_v39 = vmul.f32 %v5780_v62, %v5633_v22 }
 0x4af   : > { %v1088_v6 = vmul.f32 %v5752_v21, %v1016_v38  ;;  %v1089_v54 = vmul.f32 %v5752_v21, %v1017_v11  ;;  %v2807_v27 = vpop.f32.mrb[22].mxu1  ;;  %v5931_v21 = vpop.permute.xlu1 %1455  ;;  %v1606_v19 = vadd.f32 %v1582_v24, %v5820_v25 }
 0x4b0   : > { %v2808_v51 = vpop.f32.mrb[23].mxu1 }
 0x4b1   : > { %v5858_v3 = vadd.f32 %v1088_v6, %v887_v0  ;;  %v5860_v45 = vadd.f32 %v1089_v54, %v888_v7  ;;  %v1607_v0 = vadd.f32 %v1583_v39, %v5822_v28 }
 0x4b3   : > { %v1631_v16 = vpop.permute.xlu1 %1630 }
 0x4b5   : > { %1654 = vrot.lane.b32.xlu0 %v5633_v22, %s3530_s16 }
 0x4b8   : > { %1632 = vrot.lane.b32.xlu1 %v5641_v23, %s3530_s16 }
 0x4bc   : > { %1656 = vrot.lane.b32.xlu1 %v5649_v52, %s3530_s16 }
 0x4c0   : > { %2150 = vperm.xlu1 %3405, %v5590_v34  }
 0x4c4   : > { %1138 = vrot.lane.b32.xlu1 %v5684_v55, %s3528_s14 }
 0x4c5   : > { %3406 = vset.pattern.permute.xlu1 %v6924_v30  ;;  %v2820_v30 = vsel %vm2810_vm9, %v5852_v26, -inf }
 0x4c8   : > { %1160 = vrot.lane.b32.xlu1 %v5728_v43, %s3528_s14 }
 0x4cc   : > { %1551 = vperm.xlu1 %3406, %v5667_v41  }
 0x4d0   : > { %1831 = vrot.lane.b32.xlu1 %v5630_v58, %s3531_s17 }
 0x4d1   : > { %3408 = vset.pattern.permute.xlu1 %v6932_v59 }
 0x4d4   : > { %1833 = vrot.lane.b32.xlu1 %v5641_v23, %s3531_s17  ;;  %2818 = vmax.xlane.f32.xlu0 %v2817_v53 }
 0x4d8   : > { %1857 = vrot.lane.b32.xlu1 %v5649_v52, %s3531_s17  ;;  %2821 = vmax.xlane.f32.xlu0 %v2820_v30 }
 0x4dc   : > { %2351 = vperm.xlu1 %3408, %v5590_v34  }
 0x4e0   : > { %1337 = vrot.lane.b32.xlu1 %v5722_v56, %s3529_s15 }
 0x4e1   : > { %3409 = vset.pattern.permute.xlu1 %v6927_v37 }
 0x4e4   : > { %1361 = vrot.lane.b32.xlu1 %v5728_v43, %s3529_s15 }
 0x4e8   : > { %1752 = vperm.xlu1 %3409, %v5667_v41  }
 0x4ec   : > { %2032 = vrot.lane.b32.xlu1 %v5630_v58, %s6933_s21 }
 0x4ed   : > { %3412 = vset.pattern.permute.xlu1 %v6928_v60 }
 0x4ee   : > { %1136 = vrot.lane.b32.xlu0 %v5722_v56, %s3528_s14 }
 0x4f0   : > { %2034 = vrot.lane.b32.xlu1 %v5641_v23, %s6933_s21 }
 0x4f2   : > { %1162 = vrot.lane.b32.xlu0 %v5696_v32, %s3528_s14 }
 0x4f4   : > { %2058 = vrot.lane.b32.xlu1 %v5649_v52, %s6933_s21 }
 0x4f6   : > { %1555 = vperm.xlu0 %3404, %v5693_v47  }
 0x4f8   : > { %1957 = vperm.xlu1 %3412, %v5693_v47  }
 0x4fa   : > { %3407 = vset.pattern.permute.xlu0 %v6927_v37 }
 0x4fb   : > { %1748 = vperm.xlu0 %3407, %v5590_v34   ;;  %v5927_v34 = vpop.permute.xlu0 %1459 }
 0x4fc   : > { %2233 = vrot.lane.b32.xlu1 %v5630_v58, %s6934_s18 }
 0x4fd   : > { %3413 = vset.pattern.permute.xlu1 %v6923_v46 }
 0x4ff   : > { %1855 = vrot.lane.b32.xlu0 %v5633_v22, %s3531_s17  ;;  %v5929_v37 = vpop.permute.xlu0 %1547 }
 0x503   : > { %1339 = vrot.lane.b32.xlu0 %v5684_v55, %s3529_s15 }
 0x507   : > { %1363 = vrot.lane.b32.xlu0 %v5696_v32, %s3529_s15  ;;  %s3537_s15 = smov [#allocation2]  }
 0x508   : > { %s3460_s27 = sshll.u32 %s3537_s15, 4  ;;  %s3461_s27 = int_to_ptr.vmem [resolvable:$false] %s3460_s27 }
 0x509   : > { %s3462_s26 = scalar_lea.vmem %s3461_s27, 2048 }
 0x50b   : > { %1756 = vperm.xlu0 %3407, %v5693_v47  }
 0x50f   : > { %3410 = vset.pattern.permute.xlu0 %v6928_v60 }
 0x510   : > { %1945 = vperm.xlu0 %3410, %v5576_v15  }
 0x514   : > { %2056 = vrot.lane.b32.xlu0 %v5633_v22, %s6933_s21 }
 0x518   : > { %1953 = vperm.xlu0 %3410, %v5667_v41  }
 0x51c   : > { %3411 = vset.pattern.permute.xlu0 %v6931_v33 }
 0x51d   : > { %2146 = vperm.xlu0 %3411, %v5576_v15  }
 0x521   : > { %2235 = vrot.lane.b32.xlu0 %v5641_v23, %s6934_s18 }
 0x52c   : > { %v2813_v60 = vpop.xlane.xlu0 %2812 }
 0x52d   : > { %v2823_v9 = vsub.f32 %v5830_v35, %v2813_v60 }
 0x52f   : > { %v2827_v49 = vmul.f32 1.442695, %v2823_v9 }
 0x530   : > { %v1655_v17 = vpop.permute.xlu0 %1654 }
 0x531   : > { %3435 = vpow2.f32 %v2827_v49  ;;  %v1675_v8 = vsel %vm1670_vm5, %v1631_v16, %v1655_v17  ;;  %v1687_v15 = vsel %vm1670_vm5, %v1655_v17, %v1631_v16 }
 0x532   : > { %v1711_v14 = vmul.f32 %v4643_v48, %v1675_v8  ;;  %v1712_v35 = vmul.f32 %v4645_v63, %v1687_v15 }
 0x534   : > { %v1783_v13 = vmul.f32 %v5818_v44, %v1711_v14  ;;  %v1784_v38 = vmul.f32 %v5818_v44, %v1712_v35  ;;  %v2816_v11 = vpop.xlane.xlu1 %2815 }
 0x535   : > { %v2824_v7 = vsub.f32 %v5838_v18, %v2816_v11 }
 0x536   : > { %v5949_v6 = vadd.f32 %v1783_v13, %v1606_v19  ;;  %v5951_v58 = vadd.f32 %v1784_v38, %v1607_v0 }
 0x537   : > { %v2829_v62 = vmul.f32 1.442695, %v2824_v7 }
 0x538   : > { %v1633_v54 = vpop.permute.xlu1 %1632 }
 0x539   : > { %3437 = vpow2.f32 %v2829_v62 }
 0x53b   : > { %v5953_v27 = vpop.eup %3435 }
 0x53c   : > { %v1657_v51 = vpop.permute.xlu1 %1656  ;;  %v2835_v44 = vsel %vm2810_vm9, %v5953_v27, 0.0 }
 0x53d   : > { %v5959_v25 = vsel %vm1670_vm5, %v1633_v54, %v1657_v51  ;;  %v5963_v28 = vsel %vm1670_vm5, %v1657_v51, %v1633_v54  ;;  %2836 = vadd.xlane.f32.xlu1 %v2835_v44 }
 0x540   : > { %v5965_v18 = vpop.permute.xlu1 %2150 }
 0x543   : > { %v5967_v53 = vpop.eup %3437 }
 0x544   : > { %v1139_v30 = vpop.permute.xlu1 %1138  ;;  %v2838_v60 = vsel %vm2810_vm9, %v5967_v53, 0.0 }
 0x545   : > { %2839 = vadd.xlane.f32.xlu0 %v2838_v60 }
 0x548   : > { %v1161_v9 = vpop.permute.xlu1 %1160 }
 0x54c   : > { %v1552_v49 = vpop.permute.xlu1 %1551 }
 0x550   : > { %v5971_v16 = vpop.permute.xlu1 %1831 }
 0x554   : > { %v1834_v17 = vpop.permute.xlu1 %1833 }
 0x558   : > { %v1858_v8 = vpop.permute.xlu1 %1857 }
 0x559   : > { %v1877_v15 = vsel %vm1871_vm6, %v1834_v17, %v1858_v8  ;;  %v1889_v24 = vsel %vm1871_vm6, %v1858_v8, %v1834_v17 }
 0x55b   : > { %2259 = vrot.lane.b32.xlu0 %v5649_v52, %s6934_s18 }
 0x55c   : > { %v5979_v39 = vpop.permute.xlu1 %2351 }
 0x55f   : > { %1658 = vrot.lane.b32.xlu0 %v5728_v43, %s3530_s16 }
 0x560   : > { %v1338_v14 = vpop.permute.xlu1 %1337 }
 0x561   : > { %v2819_v35 = vpop.xlane.xlu0 %2818 }
 0x562   : > { %v2825_v13 = vsub.f32 %v5842_v36, %v2819_v35 }
 0x564   : > { %v2831_v38 = vmul.f32 1.442695, %v2825_v13  ;;  %v1362_v11 = vpop.permute.xlu1 %1361 }
 0x565   : > { %v1380_v19 = vsel %vm1373_vm4, %v1338_v14, %v1362_v11  ;;  %v1392_v0 = vsel %vm1373_vm4, %v1362_v11, %v1338_v14  ;;  %v2822_v7 = vpop.xlane.xlu0 %2821 }
 0x566   : > { %3439 = vpow2.f32 %v2831_v38  ;;  %v2826_v62 = vsub.f32 %v5852_v26, %v2822_v7  ;;  %v1418_v44 = vmul.f32 %v4616_v12, %v1392_v0  ;;  %v1419_v60 = vmul.f32 %v4623_v57, %v1380_v19 }
 0x568   : > { %v5989_v54 = vpop.permute.xlu1 %1752  ;;  %v2833_v35 = vmul.f32 1.442695, %v2826_v62  ;;  %v1490_v19 = vmul.f32 %v5931_v21, %v1418_v44  ;;  %v1491_v0 = vmul.f32 %v5931_v21, %v1419_v60  ;;  %v1586_v44 = vmul.f32 %v1552_v49, %v5722_v56 }
 0x569   : > { %v1137_v51 = vpop.permute.xlu0 %1136  ;;  %v1587_v21 = vmul.f32 %v1552_v49, %v5728_v43 }
 0x56a   : > { %v1179_v36 = vsel %vm1172_vm3, %v1137_v51, %v1161_v9  ;;  %v1191_v17 = vsel %vm1172_vm3, %v1161_v9, %v1137_v51  ;;  %3441 = vpow2.f32 %v2833_v35 }
 0x56b   : > { %v1217_v8 = vmul.f32 %v4591_v40, %v1191_v17  ;;  %v1218_v14 = vmul.f32 %v6755_v10, %v1179_v36 }
 0x56c   : > { %v5999_v13 = vpop.permute.xlu1 %2032 }
 0x56d   : > { %v1289_v26 = vmul.f32 %v5824_v29, %v1217_v8  ;;  %v1290_v38 = vmul.f32 %v5824_v29, %v1218_v14  ;;  %v1163_v11 = vpop.permute.xlu0 %1162 }
 0x56e   : > { %v1180_v7 = vsel %vm1172_vm3, %v1139_v30, %v1163_v11  ;;  %v1192_v9 = vsel %vm1172_vm3, %v1163_v11, %v1139_v30  ;;  %v1584_v11 = vmul.f32 %v5929_v37, %v5641_v23 }
 0x56f   : > { %v1313_v51 = vadd.f32 %v1289_v26, %v5858_v3  ;;  %v1314_v62 = vadd.f32 %v1290_v38, %v5860_v45  ;;  %v1219_v36 = vmul.f32 %v4591_v40, %v1192_v9  ;;  %v1220_v17 = vmul.f32 %v6755_v10, %v1180_v7 }
 0x570   : > { %v6013_v29 = vpop.eup %3439  ;;  %v2035_v60 = vpop.permute.xlu1 %2034  ;;  %v1714_v7 = vmul.f32 %v4645_v63, %v5963_v28  ;;  %v1915_v9 = vmul.f32 %v4652_v4, %v1889_v24 }
 0x571   : > { %v1514_v8 = vadd.f32 %v1490_v19, %v1313_v51  ;;  %v1515_v14 = vadd.f32 %v1491_v0, %v1314_v62  ;;  %v1291_v30 = vmul.f32 %v5826_v50, %v1219_v36  ;;  %v1292_v3 = vmul.f32 %v5826_v50, %v1220_v17  ;;  %v6935_v51 = vld [vmem:[#allocation155_spill] sm:$0xff]  ;;  %v6936_v36 = vld [vmem:[#allocation156_spill] sm:$0xff] }
 0x572   : > { %v2841_v45 = vsel %vm2810_vm9, %v6013_v29, 0.0  ;;  %v1585_v50 = vmul.f32 %v5929_v37, %v5649_v52  ;;  %v1914_v19 = vmul.f32 %v4650_v2, %v1877_v15  ;;  %v1713_v0 = vmul.f32 %v4643_v48, %v5959_v25 }
 0x573   : > { %v1315_v40 = vadd.f32 %v1291_v30, %v5806_v1  ;;  %v1316_v10 = vadd.f32 %v1292_v3, %v5808_v5  ;;  %2842 = vadd.xlane.f32.xlu1 %v2841_v45  ;;  %v6023_v26 = vadd.f32 %v1586_v44, %v1514_v8  ;;  %v6025_v38 = vadd.f32 %v1587_v21, %v1515_v14 }
 0x574   : > { %v2059_v49 = vpop.permute.xlu1 %2058  ;;  %v6041_v23 = vpop.eup %3441  ;;  %v1608_v52 = vadd.f32 %v1584_v11, %v5790_v61  ;;  %v1609_v37 = vadd.f32 %v1585_v50, %v5792_v42  ;;  %v1986_v25 = vmul.f32 %v5828_v20, %v1914_v19 }
 0x575   : > { %v1556_v35 = vpop.permute.xlu0 %1555  ;;  %v2078_v1 = vsel %vm2072_vm7, %v2035_v60, %v2059_v49  ;;  %v2090_v5 = vsel %vm2072_vm7, %v2059_v49, %v2035_v60  ;;  %v1987_v60 = vmul.f32 %v5828_v20, %v1915_v9  ;;  %v2844_v24 = vsel %vm2810_vm9, %v6041_v23, 0.0  ;;  %v2430_v20 = vld [vmem:[%s6388_s8 + $0x20] sm:$0xff] }
 0x576   : > { %v2115_v62 = vmul.f32 %v6935_v51, %v2078_v1  ;;  %v2116_v17 = vmul.f32 %v6936_v36, %v2090_v5 }
 0x578   : > { %v2187_v61 = vmul.f32 %v5965_v18, %v2115_v62  ;;  %v2188_v42 = vmul.f32 %v5965_v18, %v2116_v17 }
 0x57a   : > { %v1749_v15 = vpop.permute.xlu0 %1748 }
 0x57b   : > { %v1785_v44 = vmul.f32 %v1749_v15, %v1713_v0  ;;  %v1786_v21 = vmul.f32 %v1749_v15, %v1714_v7 }
 0x57d   : > { %v1809_v28 = vadd.f32 %v1785_v44, %v1608_v52  ;;  %v1810_v8 = vadd.f32 %v1786_v21, %v1609_v37  ;;  %v1588_v37 = vmul.f32 %v1556_v35, %v5684_v55 }
 0x57e   : > { %v1856_v14 = vpop.permute.xlu0 %1855  ;;  %2845 = vadd.xlane.f32.xlu0 %v2844_v24 }
 0x57f   : > { %v2010_v30 = vadd.f32 %v1986_v25, %v1809_v28  ;;  %v2011_v3 = vadd.f32 %v1987_v60, %v1810_v8  ;;  %v1876_v9 = vsel %vm1871_vm6, %v5971_v16, %v1856_v14  ;;  %v1888_v52 = vsel %vm1871_vm6, %v1856_v14, %v5971_v16 }
 0x580   : > { %v1913_v62 = vmul.f32 %v4652_v4, %v1888_v52 }
 0x581   : > { %v6053_v45 = vadd.f32 %v2187_v61, %v2010_v30  ;;  %v6055_v49 = vadd.f32 %v2188_v42, %v2011_v3 }
 0x582   : > { %v1340_v11 = vpop.permute.xlu0 %1339 }
 0x584   : > { %2257 = vrot.lane.b32.xlu1 %v5633_v22, %s6934_s18 }
 0x586   : > { %v1364_v50 = vpop.permute.xlu0 %1363 }
 0x587   : > { %v1381_v19 = vsel %vm1373_vm4, %v1340_v11, %v1364_v50  ;;  %v1393_v18 = vsel %vm1373_vm4, %v1364_v50, %v1340_v11 }
 0x588   : > { %v1420_v1 = vmul.f32 %v4616_v12, %v1393_v18  ;;  %v1421_v5 = vmul.f32 %v4623_v57, %v1381_v19  ;;  %2460 = vperm.xlu1 %3413, %v2430_v20   ;;  %v1589_v12 = vmul.f32 %v1556_v35, %v5696_v32  ;;  %v6157_v35 = vpop.permute.xlu1 %1957 }
 0x58a   : > { %v1492_v0 = vmul.f32 %v5927_v34, %v1420_v1  ;;  %v1493_v22 = vmul.f32 %v5927_v34, %v1421_v5  ;;  %v6070_v7 = vpop.permute.xlu0 %1756  ;;  %v1912_v34 = vmul.f32 %v4650_v2, %v1876_v9 }
 0x58c   : > { %v1516_v57 = vadd.f32 %v1492_v0, %v1315_v40  ;;  %v1517_v15 = vadd.f32 %v1493_v22, %v1316_v10  ;;  %1634 = vrot.lane.b32.xlu1 %v5722_v56, %s3530_s16  ;;  %v2234_v28 = vpop.permute.xlu1 %2233 }
 0x58d   : > { %3415 = vset.pattern.permute.xlu1 %v6931_v33  ;;  %v3453_v33 = vld [vmem:[%s6387_s7 + $0x20] sm:$0xff] }
 0x58e   : > { %v6085_v17 = vadd.f32 %v1588_v37, %v1516_v57  ;;  %v6087_v44 = vadd.f32 %v1589_v12, %v1517_v15 }
 0x58f   : > { %v1946_v16 = vpop.permute.xlu0 %1945 }
 0x590   : > { %v1984_v21 = vmul.f32 %v1946_v16, %v1912_v34  ;;  %v1985_v25 = vmul.f32 %v1946_v16, %v1913_v62  ;;  %1636 = vrot.lane.b32.xlu1 %v5684_v55, %s3530_s16  ;;  %v6190_v34 = vld [vmem:[%s6382_s2 + $0x18] ss:$0 sm:$0xff] }
 0x592   : > { %v6092_v40 = vadd.f32 %v1984_v21, %v5949_v6  ;;  %v6095_v10 = vadd.f32 %v1985_v25, %v5951_v58  ;;  %v2431_v6 = vld [vmem:[%s6388_s8 + $0x28] sm:$0xff] }
 0x594   : > { %1660 = vrot.lane.b32.xlu1 %v5696_v32, %s3530_s16  ;;  %2154 = vperm.xlu0 %3411, %v5667_v41   ;;  %s419_s16 = sand.u32 1, %s3510_s22  }
 0x595   : > { %s3253_s28 = sshll.u32 %s419_s16, 6  ;;  %s6338_s25 = scalar_lea.sflag [#allocation3], %s419_s16 }
 0x598   : > { %2158 = vperm.xlu1 %3415, %v5693_v47   ;;  %3414 = vset.pattern.permute.xlu0 %v6932_v59 }
 0x599   : > { %2347 = vperm.xlu0 %3414, %v3453_v33  }
 0x59c   : > { %1835 = vrot.lane.b32.xlu1 %v5722_v56, %s3531_s17 }
 0x59d   : > { %1837 = vrot.lane.b32.xlu0 %v5684_v55, %s3531_s17  ;;  %3416 = vset.pattern.permute.xlu1 %v6932_v59  ;;  %v2057_v59 = vpop.permute.xlu0 %2056 }
 0x59e   : > { %v2077_v50 = vsel %vm2072_vm7, %v5999_v13, %v2057_v59  ;;  %v2089_v19 = vsel %vm2072_vm7, %v2057_v59, %v5999_v13  ;;  %v6184_v13 = vld [vmem:[%s6382_s2 + $0x10] ss:$0 sm:$0xff] }
 0x59f   : > { %v2113_v5 = vmul.f32 %v6935_v51, %v2077_v50  ;;  %v2114_v0 = vmul.f32 %v6936_v36, %v2089_v19 }
 0x5a0   : > { %1859 = vrot.lane.b32.xlu1 %v5728_v43, %s3531_s17 }
 0x5a1   : > { %1861 = vrot.lane.b32.xlu0 %v5696_v32, %s3531_s17  ;;  %v6155_v58 = vpop.permute.xlu0 %1953  ;;  %s421_s17 = scalar_lea.vmem [#allocation2], %s3253_s28 }
 0x5a2   : > { %s3175_s23 = sshll.u32 %s421_s17, 4  ;;  %s6334_s23 = int_to_ptr.vmem [resolvable:$true] %s3175_s23 }
 0x5a3   : > { %s3456_s14 = scalar_lea.vmem %s6334_s23, 1024  ;;  %p3463_p0 = scmp.lt.s32.totalorder %s6334_s23, %s3461_s27 }
 0x5a4   : > { %2355 = vperm.xlu1 %3416, %v5667_v41   ;;  %v2432_v41 = vld [vmem:[%s6388_s8 + $0x30] sm:$0xff]  ;;  %p3457_p11 = scmp.ne.s32.totalorder %s6334_s23, %s3456_s14  ;;  %p3464_p1 = scmp.lt.s32.totalorder %s3462_s26, %s3456_s14 }
 0x5a5   : > { %2359 = vperm.xlu0 %3414, %v5693_v47   ;;  %v2433_v47 = vld [vmem:[%s6388_s8 + $0x38] sm:$0xff]  ;;  %v2147_v60 = vpop.permute.xlu0 %2146 }
 0x5a6   : > { %v2185_v22 = vmul.f32 %v2147_v60, %v2113_v5  ;;  %v2186_v52 = vmul.f32 %v2147_v60, %v2114_v0  ;;  %p3458_p12 = pnand %p3457_p11, %p3642_p5  ;;  %p3465_p2 = por %p3464_p1, %p3463_p0 }
 0x5a8   : > { %2036 = vrot.lane.b32.xlu1 %v5722_v56, %s6933_s21  ;;  %v2209_v16 = vadd.f32 %v2185_v22, %v6092_v40  ;;  %v2210_v21 = vadd.f32 %v2186_v52, %v6095_v10  ;;  %p3459_p13 = pneg %p3458_p12 }
 0x5a9   : > { %3417 = vset.pattern.permute.xlu0 %v6923_v46  ;;  %3418 = vset.pattern.permute.xlu1 %v6923_v46  ;;  %v2236_v8 = vpop.permute.xlu0 %2235 }
 0x5aa   : > { %2465 = vperm.xlu0 %3417, %v2431_v6   ;;  %p3466_p3 = pnand %p3465_p2, %p3459_p13 }
 0x5ac   : > { %2038 = vrot.lane.b32.xlu1 %v5684_v55, %s6933_s21 }
 0x5ae   : > { %2060 = vrot.lane.b32.xlu0 %v5728_v43, %s6933_s21 }
 0x5b0   : > { %2062 = vrot.lane.b32.xlu1 %v5696_v32, %s6933_s21  ;;  %s6332_s21 = scalar_lea.hbm %s6392_s12, %s3283_s29 }
 0x5b2   : > { %2237 = vrot.lane.b32.xlu0 %v5722_v56, %s6934_s18  ;;  %v3071_v56 = vld [vmem:[%s6390_s10 + $0x8] sm:$0xff] }
 0x5b4   : > { %2239 = vrot.lane.b32.xlu1 %v5684_v55, %s6934_s18  ;;  %v3070_v55 = vld [vmem:[%s6390_s10] sm:$0xff] }
 0x5b6   : > { %2261 = vrot.lane.b32.xlu0 %v5728_v43, %s6934_s18  ;;  %v3073_v43 = vld [vmem:[%s6390_s10 + $0x18] sm:$0xff] }
 0x5b8   : > { %2263 = vrot.lane.b32.xlu1 %v5696_v32, %s6934_s18  ;;  %v3072_v32 = vld [vmem:[%s6390_s10 + $0x10] sm:$0xff] }
 0x5ba   : > { %2470 = vperm.xlu0 %3417, %v2432_v41  }
 0x5bc   : > { %2475 = vperm.xlu1 %3418, %v2433_v47  }
 0x5be   : > { %3081 = vperm.xlu0 %3417, %v3071_v56  }
 0x5c0   : > { %3076 = vperm.xlu1 %3418, %v3070_v55  }
 0x5c2   : > { %3091 = vperm.xlu0 %3417, %v3073_v43  }
 0x5c4   : > { %3086 = vperm.xlu1 %3418, %v3072_v32  }
 0x5ca   : > { %v2837_v24 = vpop.xlane.xlu1 %2836 }
 0x5cb   : > { %3443 = vrcp.f32 %v2837_v24 }
 0x5d2   : > { %v2840_v14 = vpop.xlane.xlu0 %2839 }
 0x5d3   : > { %3445 = vrcp.f32 %v2840_v14 }
 0x5d5   : > { %v3444_v50 = vpop.eup %3443 }
 0x5d6   : > { %v2260_v30 = vpop.permute.xlu0 %2259 }
 0x5d7   : > { %v2279_v32 = vsel %vm2273_vm8, %v2236_v8, %v2260_v30  ;;  %v2291_v40 = vsel %vm2273_vm8, %v2260_v30, %v2236_v8 }
 0x5d8   : > { %v2316_v19 = vmul.f32 %v6184_v13, %v2279_v32 }
 0x5da   : > { %v6161_v11 = vpop.permute.xlu0 %1658 }
 0x600   : > { %v6159_v61 = vpop.xlane.xlu1 %2842 }
 0x601   : > { %3447 = vrcp.f32 %v6159_v61 }
 0x604   : > { %v2258_v42 = vpop.permute.xlu1 %2257 }
 0x605   : > { %v2278_v37 = vsel %vm2273_vm8, %v2234_v28, %v2258_v42  ;;  %v2290_v12 = vsel %vm2273_vm8, %v2258_v42, %v2234_v28 }
 0x606   : > { %v2314_v15 = vmul.f32 %v6184_v13, %v2278_v37  ;;  %v2315_v62 = vmul.f32 %v6190_v34, %v2290_v12  ;;  %v2851_v37 = vmul.f32 %v3444_v50, %v5953_v27 }
 0x608   : > { %v2461_v3 = vpop.permute.xlu1 %2460 }
 0x60b   : > { %v6171_v18 = vpop.xlane.xlu0 %2845 }
 0x60c   : > { %v6163_v20 = vpop.permute.xlu1 %1634  ;;  %3449 = vrcp.f32 %v6171_v18 }
 0x610   : > { %v1637_v1 = vpop.permute.xlu1 %1636 }
 0x613   : > { %v6175_v9 = vpop.permute.xlu0 %2154 }
 0x614   : > { %v1661_v57 = vpop.permute.xlu1 %1660 }
 0x615   : > { %v1678_v6 = vsel %vm1670_vm5, %v1637_v1, %v1661_v57  ;;  %v1690_v41 = vsel %vm1670_vm5, %v1661_v57, %v1637_v1  ;;  %v2317_v1 = vmul.f32 %v6190_v34, %v2291_v40 }
 0x616   : > { %v1717_v10 = vmul.f32 %v4643_v48, %v1678_v6  ;;  %v1718_v59 = vmul.f32 %v4645_v63, %v1690_v41 }
 0x618   : > { %v6195_v25 = vpop.permute.xlu1 %2158  ;;  %v2348_v33 = vpop.permute.xlu0 %2347  ;;  %v1789_v22 = vmul.f32 %v6070_v7, %v1717_v10  ;;  %v1790_v8 = vmul.f32 %v6070_v7, %v1718_v59  ;;  %v2389_v7 = vmul.f32 %v5979_v39, %v2317_v1 }
 0x619   : > { %v2386_v47 = vmul.f32 %v2348_v33, %v2314_v15  ;;  %v2387_v56 = vmul.f32 %v2348_v33, %v2315_v62  ;;  %v2388_v15 = vmul.f32 %v5979_v39, %v2316_v19  ;;  %v3446_v39 = vpop.eup %3445 }
 0x61a   : > { %v1813_v27 = vadd.f32 %v1789_v22, %v6085_v17  ;;  %v1677_v17 = vsel %vm1670_vm5, %v6163_v20, %v6161_v11  ;;  %v2413_v32 = vadd.f32 %v2389_v7, %v6055_v49 }
 0x61b   : > { %v2410_v55 = vadd.f32 %v2386_v47, %v2209_v16  ;;  %v2411_v43 = vadd.f32 %v2387_v56, %v2210_v21  ;;  %v1814_v16 = vadd.f32 %v1790_v8, %v6087_v44  ;;  %v2855_v47 = vpack.c.bf16 %v2851_v37, %v2851_v37 }
 0x61c   : > { %v1836_v60 = vpop.permute.xlu1 %1835  ;;  %v1838_v28 = vpop.permute.xlu0 %1837  ;;  %v1689_v44 = vsel %vm1670_vm5, %v6161_v11, %v6163_v20  ;;  %v2852_v20 = vmul.f32 %v3446_v39, %v5967_v53 }
 0x61d   : > { %v2506_v24 = vadd.f32 %v2461_v3, %v2410_v55  ;;  %v2507_v42 = vadd.f32 %v2461_v3, %v2411_v43  ;;  %v2412_v43 = vadd.f32 %v2388_v15, %v6053_v45 }
 0x61e   : > { %v2856_v8 = vpack.c.bf16 %v2852_v20, %v2852_v20 }
 0x61f   : > { %v2643_v5 = vpack.c.bf16 %v2507_v42, %v2507_v42  ;;  %v2642_v0 = vpack.c.bf16 %v2506_v24, %v2506_v24  ;;  %v1715_v24 = vmul.f32 %v4643_v48, %v1677_v17  ;;  %v1716_v42 = vmul.f32 %v4645_v63, %v1689_v44 }
 0x620   : > { %v1860_v30 = vpop.permute.xlu1 %1859  ;;  %v1862_v52 = vpop.permute.xlu0 %1861 }
 0x621   : > { %v1879_v3 = vsel %vm1871_vm6, %v1838_v28, %v1862_v52  ;;  %v1891_v14 = vsel %vm1871_vm6, %v1862_v52, %v1838_v28  ;;  %3266 = vmatprep.subr.msk.bf16.mxu0 %vm2862_vm10, %v2643_v5  ;;  %v2864_v62 = vsel %vm2862_vm10, %v2642_v0, 0  ;;  %v1878_v10 = vsel %vm1871_vm6, %v1836_v60, %v1860_v30 }
 0x622   : > { %v1918_v12 = vmul.f32 %v4650_v2, %v1879_v3  ;;  %v1919_v57 = vmul.f32 %v4652_v4, %v1891_v14  ;;  %2870 = vmatpush1.bf16.msra.mxu0 %v2864_v62  ;;  %v1890_v11 = vsel %vm1871_vm6, %v1860_v30, %v1836_v60  ;;  %v1916_v19 = vmul.f32 %v4650_v2, %v1878_v10 }
 0x623   : > { %v1917_v5 = vmul.f32 %v4652_v4, %v1890_v11  ;;  %v1787_v53 = vmul.f32 %v5989_v54, %v1715_v24  ;;  %v1788_v60 = vmul.f32 %v5989_v54, %v1716_v42 }
 0x624   : > { %v1990_v21 = vmul.f32 %v6157_v35, %v1918_v12  ;;  %v1991_v33 = vmul.f32 %v6157_v35, %v1919_v57  ;;  %v6226_v6 = vpop.permute.xlu1 %2355  ;;  %v6228_v41 = vpop.permute.xlu0 %2359  ;;  %v1988_v3 = vmul.f32 %v6155_v58, %v1916_v19 }
 0x625   : > { %3267 = vmatmul.mubr.msk.bf16.vlgmr.msra.gmra.mrb[16].mxu0 %vm2810_vm9, %v2855_v47  ;;  %v1989_v54 = vmul.f32 %v6155_v58, %v1917_v5  ;;  %v1811_v14 = vadd.f32 %v1787_v53, %v6023_v26  ;;  %v1812_v12 = vadd.f32 %v1788_v60, %v6025_v38 }
 0x626   : > { %v6230_v56 = vadd.f32 %v1990_v21, %v1813_v27  ;;  %v6232_v55 = vadd.f32 %v1991_v33, %v1814_v16  ;;  %3001 = vmatprep.mubr.bf16.mxu0 %v6923_v46 }
 0x627   : > { %v2012_v27 = vadd.f32 %v1988_v3, %v1811_v14  ;;  %v2013_v16 = vadd.f32 %v1989_v54, %v1812_v12 }
 0x628   : > { %v2037_v35 = vpop.permute.xlu1 %2036 }
 0x629   : > { %v2466_v40 = vpop.permute.xlu0 %2465 }
 0x62a   : > { %v2508_v59 = vadd.f32 %v2466_v40, %v2412_v43  ;;  %v2509_v28 = vadd.f32 %v2466_v40, %v2413_v32 }
 0x62c   : > { %v2644_v45 = vpack.c.bf16 %v2508_v59, %v2508_v59  ;;  %v2645_v50 = vpack.c.bf16 %v2509_v28, %v2509_v28  ;;  %v2039_v49 = vpop.permute.xlu1 %2038 }
 0x62d   : > { %v2061_v1 = vpop.permute.xlu0 %2060 }
 0x62e   : > { %v2079_v0 = vsel %vm2072_vm7, %v2037_v35, %v2061_v1  ;;  %v2091_v48 = vsel %vm2072_vm7, %v2061_v1, %v2037_v35  ;;  %3268 = vmatprep.subr.msk.bf16.mxu1 %vm2862_vm10, %v2645_v50  ;;  %v2914_v63 = vsel %vm2862_vm10, %v2644_v45, 0 }
 0x62f   : > { %2920 = vmatpush1.bf16.msra.mxu1 %v2914_v63  ;;  %v2117_v2 = vmul.f32 %v6935_v51, %v2079_v0  ;;  %v2118_v22 = vmul.f32 %v6936_v36, %v2091_v48 }
 0x630   : > { %v2063_v4 = vpop.permute.xlu1 %2062 }
 0x631   : > { %v2080_v30 = vsel %vm2072_vm7, %v2039_v49, %v2063_v4  ;;  %v2092_v52 = vsel %vm2072_vm7, %v2063_v4, %v2039_v49  ;;  %v2238_v37 = vpop.permute.xlu0 %2237  ;;  %v2189_v57 = vmul.f32 %v6175_v9, %v2117_v2  ;;  %v2190_v15 = vmul.f32 %v6175_v9, %v2118_v22 }
 0x632   : > { %3269 = vmatmul.mubr.msk.bf16.vlgmr.msra.gmra.mrb[24].mxu1 %vm2810_vm9, %v2856_v8  ;;  %v2119_v7 = vmul.f32 %v6935_v51, %v2080_v30  ;;  %v2120_v61 = vmul.f32 %v6936_v36, %v2092_v52 }
 0x633   : > { %3051 = vmatprep.mubr.bf16.mxu1 %v6923_v46  ;;  %v2213_v47 = vadd.f32 %v2189_v57, %v2012_v27  ;;  %v2214_v18 = vadd.f32 %v2190_v15, %v2013_v16 }
 0x634   : > { %v2240_v62 = vpop.permute.xlu1 %2239  ;;  %v2191_v51 = vmul.f32 %v6195_v25, %v2119_v7  ;;  %v2192_v36 = vmul.f32 %v6195_v25, %v2120_v61  ;;  %v3448_v25 = vpop.eup %3447  ;;  %v3060_v61 = vld [vmem:[%s6389_s9] sm:$0xff] }
 0x635   : > { %v2262_v58 = vpop.permute.xlu0 %2261  ;;  %v3450_v50 = vpop.eup %3449 }
 0x636   : > { %v2280_v26 = vsel %vm2273_vm8, %v2238_v37, %v2262_v58  ;;  %v2292_v38 = vsel %vm2273_vm8, %v2262_v58, %v2238_v37  ;;  %v2216_v42 = vadd.f32 %v2192_v36, %v6232_v55 }
 0x637   : > { %v2318_v21 = vmul.f32 %v6184_v13, %v2280_v26  ;;  %v2319_v9 = vmul.f32 %v6190_v34, %v2292_v38  ;;  %v3062_v38 = vld [vmem:[%s6389_s9 + $0x10] sm:$0xff] }
 0x638   : > { %v2264_v33 = vpop.permute.xlu1 %2263 }
 0x639   : > { %v2390_v39 = vmul.f32 %v6226_v6, %v2318_v21  ;;  %v2391_v17 = vmul.f32 %v6226_v6, %v2319_v9  ;;  %v2281_v44 = vsel %vm2273_vm8, %v2240_v62, %v2264_v33  ;;  %v2293_v35 = vsel %vm2273_vm8, %v2264_v33, %v2240_v62  ;;  %v2471_v24 = vpop.permute.xlu0 %2470  ;;  %v3061_v62 = vld [vmem:[%s6389_s9 + $0x8] sm:$0xff]  ;;  %v3063_v21 = vld [vmem:[%s6389_s9 + $0x18] sm:$0xff] }
 0x63a   : > { %v2320_v43 = vmul.f32 %v6184_v13, %v2281_v44  ;;  %v2321_v32 = vmul.f32 %v6190_v34, %v2293_v35  ;;  %v2215_v6 = vadd.f32 %v2191_v51, %v6230_v56  ;;  %v2853_v13 = vmul.f32 %v3448_v25, %v6013_v29 }
 0x63b   : > { %v2414_v40 = vadd.f32 %v2390_v39, %v2213_v47  ;;  %v2415_v10 = vadd.f32 %v2391_v17, %v2214_v18  ;;  %v2854_v56 = vmul.f32 %v3450_v50, %v6041_v23  ;;  %v3064_v26 = vpack.c.bf16 %v3061_v62, %v3060_v61 }
 0x63c   : > { %v2392_v59 = vmul.f32 %v6228_v41, %v2320_v43  ;;  %v2393_v28 = vmul.f32 %v6228_v41, %v2321_v32  ;;  %v2476_v19 = vpop.permute.xlu1 %2475  ;;  %v2857_v48 = vpack.c.bf16 %v2853_v13, %v2853_v13  ;;  %v3065_v9 = vpack.c.bf16 %v3063_v21, %v3062_v38 }
 0x63d   : > { %v2510_v11 = vadd.f32 %v2471_v24, %v2414_v40  ;;  %v2511_v20 = vadd.f32 %v2471_v24, %v2415_v10  ;;  %v2858_v29 = vpack.c.bf16 %v2854_v56, %v2854_v56 }
 0x63e   : > { %v2416_v31 = vadd.f32 %v2392_v59, %v2215_v6  ;;  %v2417_v45 = vadd.f32 %v2393_v28, %v2216_v42 }
 0x63f   : > { %v2646_v34 = vpack.c.bf16 %v2510_v11, %v2510_v11  ;;  %v2647_v49 = vpack.c.bf16 %v2511_v20, %v2511_v20 }
 0x640   : > { %v2512_v1 = vadd.f32 %v2476_v19, %v2416_v31  ;;  %v2513_v5 = vadd.f32 %v2476_v19, %v2417_v45  ;;  %v3077_v51 = vpop.permute.xlu1 %3076 }
 0x641   : > { %3270 = vmatprep.subr.msk.bf16.mxu0 %vm2862_vm10, %v2647_v49  ;;  %v2964_v41 = vsel %vm2862_vm10, %v2646_v34, 0 }
 0x642   : > { %v2648_v0 = vpack.c.bf16 %v2512_v1, %v2512_v1  ;;  %v2649_v55 = vpack.c.bf16 %v2513_v5, %v2513_v5  ;;  %2970 = vmatpush1.bf16.msra.mxu0 %v2964_v41 }
 0x644   : > { %3272 = vmatprep.subr.msk.bf16.mxu1 %vm2862_vm10, %v2649_v55  ;;  %v3014_v63 = vsel %vm2862_vm10, %v2648_v0, 0  ;;  %v3087_v43 = vpop.permute.xlu1 %3086 }
 0x645   : > { %3020 = vmatpush1.bf16.msra.mxu1 %v3014_v63  ;;  %3271 = vmatmul.mubr.msk.bf16.vlgmr.msra.gmra.mrb[20].mxu0 %vm2810_vm9, %v2857_v48 }
 0x646   : > { %3132 = vmatprep.mubr.bf16.mxu0 %v6923_v46 }
 0x648   : > { %3273 = vmatmul.mubr.msk.bf16.vlgmr.msra.gmra.mrb[28].mxu1 %vm2810_vm9, %v2858_v29 }
 0x6f8   : > { %v2903_v53 = vpop.f32.mrb[16].mxu0 }
 0x6f9   : > { %v2905_v60 = vpop.f32.mrb[17].mxu0 }
 0x6fa   : > { %v2907_v2 = vpop.f32.mrb[18].mxu0 }
 0x6fb   : > { %v2908_v23 = vpop.f32.mrb[19].mxu0 }
 0x705   : > { %v2953_v22 = vpop.f32.mrb[24].mxu1 }
 0x706   : > { %v3066_v4 = vpack.c.bf16 %v2953_v22, %v2903_v53  ;;  %v2955_v8 = vpop.f32.mrb[25].mxu1 }
 0x707   : > { %v3067_v30 = vpack.c.bf16 %v2955_v8, %v2905_v60  ;;  %v2957_v52 = vpop.f32.mrb[26].mxu1 }
 0x708   : > { %v2958_v37 = vpop.f32.mrb[27].mxu1 }
 0x709   : > { %3100 = vmatprep.subr.bf16.mxu0 %v3067_v30 }
 0x70a   : > { %3101 = vmatpush1.bf16.msra.mxu0 %v3066_v4 }
 0x718   : > { %v3003_v3 = vpop.f32.mrb[20].mxu0 }
 0x719   : > { %v3005_v54 = vpop.f32.mrb[21].mxu0 }
 0x71a   : > { %v3007_v14 = vpop.f32.mrb[22].mxu0 }
 0x71b   : > { %v3053_v12 = vpop.f32.mrb[28].mxu1  ;;  %v3008_v57 = vpop.f32.mrb[23].mxu0 }
 0x71c   : > { %v3068_v15 = vpack.c.bf16 %v3053_v12, %v3003_v3  ;;  %v3055_v7 = vpop.f32.mrb[29].mxu1 }
 0x71d   : > { %v3069_v58 = vpack.c.bf16 %v3055_v7, %v3005_v54  ;;  %v3057_v27 = vpop.f32.mrb[30].mxu1 }
 0x71e   : > { %v3058_v16 = vpop.f32.mrb[31].mxu1 }
 0x71f   : > { %3102 = vmatprep.subr.bf16.mxu0 %v3069_v58 }
 0x720   : > { %3103 = vmatpush1.bf16.msra.mxu0 %v3068_v15 }
 0x723   : > { %3274 = vmatmul.mubr.msk.bf16.vlgmr.msra.gmra.mrb[24].mxu0 %vm509_vm0, %v3064_v26 }
 0x724   : > { %3142 = vmatprep.mubr.bf16.mxu0 %v6923_v46  ;;  %v3082_v46 = vpop.permute.xlu0 %3081 }
 0x728   : > { %v3092_v25 = vpop.permute.xlu0 %3091 }
 0x72b   : > { %3275 = vmatmul.mubr.msk.bf16.gmra.mrb[28].mxu0 %vm509_vm0, %v3065_v9 }
 0x7f6   : > { %v3134_v36 = vpop.f32.mrb[24].mxu0 }
 0x7f7   : > { %v3135_v33 = vadd.f32 %v3134_v36, %v3077_v51  ;;  %v3136_v47 = vpop.f32.mrb[25].mxu0 }
 0x7f8   : > { %v3137_v18 = vadd.f32 %v3136_v47, %v3077_v51  ;;  %v3138_v39 = vpop.f32.mrb[26].mxu0 }
 0x7f9   : > { %3153 = vst [vmem:[%s421_s17] sm:$0xff] %v3135_v33  ;;  %v3139_v17 = vadd.f32 %v3138_v39, %v3082_v46  ;;  %v3140_v44 = vpop.f32.mrb[27].mxu0 }
 0x7fa   : > { %3154 = vst [vmem:[%s421_s17 + $0x8] sm:$0xff] %v3137_v18  ;;  %v3141_v35 = vadd.f32 %v3140_v44, %v3082_v46 }
 0x7fb   : > { %3155 = vst [vmem:[%s421_s17 + $0x10] sm:$0xff] %v3139_v17 }
 0x7fc   : > { %3156 = vst [vmem:[%s421_s17 + $0x18] sm:$0xff] %v3141_v35 }
 0x7fe   : > { %v3144_v32 = vpop.f32.mrb[28].mxu0 }
 0x7ff   : > { %v3145_v40 = vadd.f32 %v3144_v32, %v3087_v43  ;;  %v3146_v10 = vpop.f32.mrb[29].mxu0 }
 0x800   : > { %v3147_v59 = vadd.f32 %v3146_v10, %v3087_v43  ;;  %v3148_v28 = vpop.f32.mrb[30].mxu0 }
 0x801   : > { %3157 = vst [vmem:[%s421_s17 + $0x20] sm:$0xff] %v3145_v40  ;;  %v3149_v24 = vadd.f32 %v3148_v28, %v3092_v25  ;;  %v3150_v6 = vpop.f32.mrb[31].mxu0 }
 0x802   : > { %3158 = vst [vmem:[%s421_s17 + $0x28] sm:$0xff] %v3147_v59  ;;  %v3151_v42 = vadd.f32 %v3150_v6, %v3092_v25 }
 0x803   : > { %3159 = vst [vmem:[%s421_s17 + $0x30] sm:$0xff] %v3149_v24 }
 0x804   : > { %3160 = vst [vmem:[%s421_s17 + $0x38] sm:$0xff] %v3151_v42 }
 0x805   : > { %3469 = shalt.err (!%p3466_p3)
}
 0x806   : > { %s3470_s18 = scalar_lea.hbm %s6332_s21, 1024  ;;  %s3474_s17 = scalar_lea.hbm %s6392_s12, 2048 }
 0x807   : > { %p3471_p4 = scmp.ne.s32.totalorder %s6332_s21, %s3470_s18  ;;  %p3475_p9 = scmp.lt.u32.totalorder %s6332_s21, %s6392_s12 }
 0x808   : > { %p3476_p10 = scmp.lt.u32.totalorder %s3474_s17, %s3470_s18  ;;  %p3478_p12 = scmp.lt.u32.totalorder %s3470_s18, %s6332_s21 }
 0x809   : > { %p3472_p7 = pnand %p3471_p4, %p3642_p5 }
 0x80a   : > { %p3477_p11 = por %p3476_p10, %p3475_p9 }
 0x80b   : > { %p3473_p8 = pneg %p3472_p7 }
 0x80c   : > { %p3479_p13 = por %p3478_p12, %p3477_p11 }
 0x80e   : > { %p3480_p0 = pnand %p3479_p13, %p3473_p8 }
 0x810   : > { %3483 = shalt.err (!%p3480_p0)
}
 0x811   : > { %s3538_s20 = smov 256  }
 0x812   : > { %3288 = dma.vmem_to_hbm [thread:$0]  (%p3642_p5), %s6334_s23, 1024, %s6332_s21, %s6338_s25, %s3538_s20, %s3538_s20, %s3526_s30  }
 0x813 PF: > { %s6937_s14 = sld [smem:[#allocation5_spill]]  ;;  %p3294_p1 = scmp.ge.s32.totalorder %s3518_s24, 2 }
 0x815   : > { %p3291_p2 = pnand %p3294_p1, %p3646_p6 }
 0x819   : > { %s3190_s27 = sand.u32 1, %s6937_s14  }
 0x81a   : > { %s3191_s26 = scalar_lea.sflag [#allocation3], %s3190_s27 }
 0x81b   : > { %3501 = dma.done.wait (!%p3291_p2), %s3191_s26, 1024  }
 0x81c   : > { %3503 = vsyncadd (!%p3291_p2), %s3191_s26, 4294966272  ;;  %s6939_s24 = sld [smem:[#allocation7_spill]]  ;;  %s6940_s18 = sld [smem:[#allocation6_spill]] }
 0x81d   : > { %s6941_s23 = sld [smem:[#allocation8_spill]]  ;;  %s6942_s21 = smov %s3510_s22 }
 0x822   : > { %p22_p3 = scmp.ge.s32.totalorder %s6939_s24, 4   ;;  %s6943_s22 = smov %s6940_s18 }
 0x824   :  { %24 = sbr.rel (!%p22_p3) target bundleno = 3 (0x3), region = 106 }
 0x82b   :  { %3196 = vsyncpa [#allocation3], 1 }
 0x82c   :  { %3198 = vsyncpa [#allocation3 + $0x1], 1 }

</bundles_post_ra>
